<compile_context>
chip_gen: v7x
topology: tpu7x:2x2x1
jax: 0.10.0
libtpu: 0.0.40
codegen_flags: <defaults>
</compile_context>

<pallas_src>
import jax
import jax.numpy as jnp
from jax.experimental import pallas as pl
from jax.experimental.pallas import tpu as pltpu

BN_EPS = 1e-5
MXU_DTYPE = jnp.bfloat16              # matmul operand dtype; accumulation is f32
VMEM_LIMIT = 32 * 1024 * 1024


def _compiler_params():
    return pltpu.CompilerParams(dimension_semantics=("parallel",),
                                vmem_limit_bytes=VMEM_LIMIT)


# ---------------------------------------------------------------------------
# Kernel A: 3x3 "same" conv (+bias) as one im2col matmul, plus per-block
#           BatchNorm partial statistics (sum, sum of squares).
# ---------------------------------------------------------------------------
def _conv3x3_stats_kernel(x_ref, w_ref, b_ref, z_ref, st_ref):
    # x_ref : (H+2, W+2, Cin)  pre-padded input tile (batch dim squeezed)
    # w_ref : (9*Cin, Cmid)    im2col weight, row order (kh, kw, cin), bf16
    # b_ref : (1, Cmid)        conv bias (f32)
    # z_ref : (H, W, Cmid)     pre-BN conv output (f32)
    # st_ref: (2, Cmid)        [sum; sum of squares] over this tile
    H, W, Cmid = z_ref.shape
    Cin = x_ref.shape[-1]
    M = H * W

    # Stack the 9 taps along K (static ref slices) -> ONE MXU dot with K=9*Cin.
    taps = []
    for kh in range(3):
        for kw in range(3):
            taps.append(x_ref[kh:kh + H, kw:kw + W, :].reshape(M, Cin))
    patch = jnp.concatenate(taps, axis=-1).astype(MXU_DTYPE)      # (M, 9*Cin)

    acc = jnp.dot(patch, w_ref[...], preferred_element_type=jnp.float32)
    acc = acc + b_ref[...]                                        # (M, Cmid) f32

    # Single pass over the accumulator for both BN partial reductions.
    s = jnp.sum(acc, axis=0, keepdims=True)
    ss = jnp.sum(acc * acc, axis=0, keepdims=True)
    st_ref[...] = jnp.concatenate([s, ss], axis=0)

    z_ref[...] = acc.reshape(H, W, Cmid)


def _conv3x3_stats(xp, w_im2col, bias):
    N, Hp, Wp, Cin = xp.shape
    H, W = Hp - 2, Wp - 2
    Cmid = w_im2col.shape[-1]
    flops = 2 * N * H * W * 9 * Cin * Cmid
    return pl.pallas_call(
        _conv3x3_stats_kernel,
        grid=(N,),
        in_specs=[
            pl.BlockSpec((None, Hp, Wp, Cin), lambda n: (n, 0, 0, 0)),
            pl.BlockSpec((9 * Cin, Cmid), lambda n: (0, 0)),
            pl.BlockSpec((1, Cmid), lambda n: (0, 0)),
        ],
        out_specs=(
            pl.BlockSpec((None, H, W, Cmid), lambda n: (n, 0, 0, 0)),
            pl.BlockSpec((None, 2, Cmid), lambda n: (n, 0, 0)),
        ),
        out_shape=(
            jax.ShapeDtypeStruct((N, H, W, Cmid), jnp.float32),
            jax.ShapeDtypeStruct((N, 2, Cmid), jnp.float32),
        ),
        compiler_params=_compiler_params(),
        cost_estimate=pl.CostEstimate(
            flops=flops, transcendentals=0,
            bytes_accessed=xp.size * 4 + N * H * W * Cmid * 4),
    )(xp, w_im2col, bias)


# ---------------------------------------------------------------------------
# Kernel B: fused BN1+ReLU and phase-decomposed ConvTranspose2d (+bias), plus
#           BN2 partial statistics.
# ---------------------------------------------------------------------------
def _bn_relu_convT_stats_kernel(z1_ref, scale_ref, shift_ref, w_ref, b_ref,
                                z2_ref, st_ref):
    # z1_ref   : (H, W, Cmid)      stage-1 pre-BN conv output
    # scale_ref: (1, Cmid)         BN1 scale = gamma * rsqrt(var + eps)
    # shift_ref: (1, Cmid)         BN1 shift = beta - mean * scale
    # w_ref    : (4*Cmid, 4*Cout)  phase-decomposed ConvTranspose weight (bf16)
    # b_ref    : (1, 4*Cout)       ConvTranspose bias tiled per phase
    # z2_ref   : (H*W, 4*Cout)     pre-BN2 output, phase-major channel layout
    # st_ref   : (2, 4*Cout)       [sum; sumsq] partials for BN2
    H, W, Cmid = z1_ref.shape
    M = H * W

    # BN1 (global stats, precomputed scale/shift) + ReLU, fused here so the
    # normalized activation never round-trips through HBM.
    y1 = jnp.maximum(z1_ref[...].reshape(M, Cmid) * scale_ref[...]
                     + shift_ref[...], 0.0)
    y1 = y1.reshape(H, W, Cmid)

    # Sub-pixel decomposition of ConvTranspose2d(3, stride=2, pad=1, out_pad=1):
    # out[2a+py, 2b+px] only touches {y1[a,b], y1[a,b+1], y1[a+1,b], y1[a+1,b+1]},
    # so all four output parities come from ONE (M,4Cmid)x(4Cmid,4Cout) matmul.
    y1p = jnp.pad(y1, ((0, 1), (0, 1), (0, 0)))          # zero halo at +H / +W
    n00 = y1p[0:H, 0:W, :].reshape(M, Cmid)
    n01 = y1p[0:H, 1:W + 1, :].reshape(M, Cmid)
    n10 = y1p[1:H + 1, 0:W, :].reshape(M, Cmid)
    n11 = y1p[1:H + 1, 1:W + 1, :].reshape(M, Cmid)
    patch = jnp.concatenate([n00, n01, n10, n11], axis=-1).astype(MXU_DTYPE)

    acc = jnp.dot(patch, w_ref[...], preferred_element_type=jnp.float32)
    acc = acc + b_ref[...]                               # (M, 4*Cout) f32

    s = jnp.sum(acc, axis=0, keepdims=True)
    ss = jnp.sum(acc * acc, axis=0, keepdims=True)
    st_ref[...] = jnp.concatenate([s, ss], axis=0)

    z2_ref[...] = acc


def _bn_relu_convT_stats(z1, scale1, shift1, w_phase, b_phase):
    N, H, W, Cmid = z1.shape
    C4 = w_phase.shape[-1]
    M = H * W
    flops = 2 * N * M * (4 * Cmid) * C4
    return pl.pallas_call(
        _bn_relu_convT_stats_kernel,
        grid=(N,),
        in_specs=[
            pl.BlockSpec((None, H, W, Cmid), lambda n: (n, 0, 0, 0)),
            pl.BlockSpec((1, Cmid), lambda n: (0, 0)),
            pl.BlockSpec((1, Cmid), lambda n: (0, 0)),
            pl.BlockSpec((4 * Cmid, C4), lambda n: (0, 0)),
            pl.BlockSpec((1, C4), lambda n: (0, 0)),
        ],
        out_specs=(
            pl.BlockSpec((None, M, C4), lambda n: (n, 0, 0)),
            pl.BlockSpec((None, 2, C4), lambda n: (n, 0, 0)),
        ),
        out_shape=(
            jax.ShapeDtypeStruct((N, M, C4), jnp.float32),
            jax.ShapeDtypeStruct((N, 2, C4), jnp.float32),
        ),
        compiler_params=_compiler_params(),
        cost_estimate=pl.CostEstimate(
            flops=flops, transcendentals=0,
            bytes_accessed=z1.size * 4 + N * M * C4 * 4),
    )(z1, scale1, shift1, w_phase, b_phase)


# ---------------------------------------------------------------------------
# Kernel C: final BN2 + ReLU (elementwise on the lane-dense phase layout).
# ---------------------------------------------------------------------------
def _bn_relu_kernel(z_ref, scale_ref, shift_ref, o_ref):
    o_ref[...] = jnp.maximum(z_ref[...] * scale_ref[...] + shift_ref[...], 0.0)


def _bn_relu(z, scale_ph, shift_ph):
    N, M, C4 = z.shape
    return pl.pallas_call(
        _bn_relu_kernel,
        grid=(N,),
        in_specs=[
            pl.BlockSpec((None, M, C4), lambda n: (n, 0, 0)),
            pl.BlockSpec((1, C4), lambda n: (0, 0)),
            pl.BlockSpec((1, C4), lambda n: (0, 0)),
        ],
        out_specs=pl.BlockSpec((None, M, C4), lambda n: (n, 0, 0)),
        out_shape=jax.ShapeDtypeStruct((N, M, C4), jnp.float32),
        compiler_params=_compiler_params(),
    )(z, scale_ph, shift_ph)


# ---------------------------------------------------------------------------
# Parameters (PyTorch layouts) + one-time hoisted preprocessing.
# ---------------------------------------------------------------------------
def init_decoder_block_params(key, in_channels, middle_channels, out_channels):
    ks = jax.random.split(key, 8)
    return {
        # nn.Conv2d(in, mid, 3, padding=1): OIHW weight, bias
        "w1": jax.random.normal(ks[0], (middle_channels, in_channels, 3, 3), jnp.float32) * 0.1,
        "b1": jax.random.normal(ks[1], (middle_channels,), jnp.float32) * 0.1,
        "gamma1": 1.0 + 0.1 * jax.random.normal(ks[2], (middle_channels,), jnp.float32),
        "beta1": 0.1 * jax.random.normal(ks[3], (middle_channels,), jnp.float32),
        # nn.ConvTranspose2d(mid, out, 3, stride=2, pad=1, out_pad=1): (mid,out,3,3), bias
        "wt2": jax.random.normal(ks[4], (middle_channels, out_channels, 3, 3), jnp.float32) * 0.1,
        "b2": jax.random.normal(ks[5], (out_channels,), jnp.float32) * 0.1,
        "gamma2": 1.0 + 0.1 * jax.random.normal(ks[6], (out_channels,), jnp.float32),
        "beta2": 0.1 * jax.random.normal(ks[7], (out_channels,), jnp.float32),
    }


def prepare_decoder_params(raw):
    """One-time layout preprocessing, hoisted out of the per-call path."""
    w1_oihw = raw["w1"]                               # (Cmid, Cin, 3, 3)
    Cmid, Cin = w1_oihw.shape[0], w1_oihw.shape[1]
    # OIHW -> HWIO -> (9*Cin, Cmid); row order (kh, kw, cin) matches the
    # in-kernel tap stacking.
    w1 = jnp.transpose(w1_oihw, (2, 3, 1, 0)).reshape(9 * Cin, Cmid).astype(MXU_DTYPE)

    wt = raw["wt2"]                                   # (Cmid, Cout, 3, 3)
    Cout = wt.shape[1]
    zero = jnp.zeros((Cmid, Cout), jnp.float32)
    t = lambda ky, kx: wt[:, :, ky, kx]               # (Cmid, Cout) tap
    # Phase-decomposed ConvTranspose weight.  Row blocks = 2x2 neighbourhood
    # [n00|n01|n10|n11]; column blocks = output parity [(0,0)|(0,1)|(1,0)|(1,1)]
    # (oy = 2a+py, ox = 2b+px); derived from oy = 2*iy - 1 + ky.
    w2 = jnp.concatenate([
        jnp.concatenate([t(1, 1), t(1, 2), t(2, 1), t(2, 2)], axis=1),
        jnp.concatenate([zero,    t(1, 0), zero,    t(2, 0)], axis=1),
        jnp.concatenate([zero,    zero,    t(0, 1), t(0, 2)], axis=1),
        jnp.concatenate([zero,    zero,    zero,    t(0, 0)], axis=1),
    ], axis=0).astype(MXU_DTYPE)                      # (4*Cmid, 4*Cout)

    return {
        "w1": w1,
        "b1": raw["b1"].reshape(1, Cmid),
        "gamma1": raw["gamma1"], "beta1": raw["beta1"],
        "w2": w2,
        "b2ph": jnp.tile(raw["b2"], 4).reshape(1, 4 * Cout),
        "gamma2": raw["gamma2"], "beta2": raw["beta2"],
    }


# ---------------------------------------------------------------------------
# Forward (NCHW in / NCHW out, train-mode BatchNorm batch statistics).
# ---------------------------------------------------------------------------
def decoder_block_forward(x_nchw, p):
    N, _, H, W = x_nchw.shape
    Cmid = p["b1"].shape[-1]
    Cout = p["gamma2"].shape[0]

    x = jnp.transpose(x_nchw, (0, 2, 3, 1))                      # NCHW -> NHWC
    xp = jnp.pad(x, ((0, 0), (1, 1), (1, 1), (0, 0)))            # conv1 padding=1

    # ---- Stage 1: conv3x3 (+bias) and BN1 partial stats ----
    z1, st1 = _conv3x3_stats(xp, p["w1"], p["b1"])

    # BN1 finalise (tiny per-channel math; statistics stay global over (N,H,W)).
    cnt1 = N * H * W
    tot1 = jnp.sum(st1, axis=0)                                  # (2, Cmid)
    mean1 = tot1[0] / cnt1
    var1 = jnp.maximum(tot1[1] / cnt1 - mean1 * mean1, 0.0)      # biased (train mode)
    scale1 = p["gamma1"] * jax.lax.rsqrt(var1 + BN_EPS)
    shift1 = p["beta1"] - mean1 * scale1

    # ---- Stage 2: fused BN1+ReLU + phase-decomposed ConvTranspose + BN2 stats ----
    z2, st2 = _bn_relu_convT_stats(
        z1, scale1.reshape(1, Cmid), shift1.reshape(1, Cmid), p["w2"], p["b2ph"])

    # BN2 finalise: fold the 4 phases back into per-channel stats over (N,2H,2W).
    cnt2 = N * H * W * 4
    tot2 = jnp.sum(st2, axis=0)                                  # (2, 4*Cout)
    sum2 = jnp.sum(tot2[0].reshape(4, Cout), axis=0)
    sumsq2 = jnp.sum(tot2[1].reshape(4, Cout), axis=0)
    mean2 = sum2 / cnt2
    var2 = jnp.maximum(sumsq2 / cnt2 - mean2 * mean2, 0.0)
    scale2 = p["gamma2"] * jax.lax.rsqrt(var2 + BN_EPS)
    shift2 = p["beta2"] - mean2 * scale2
    scale2ph = jnp.tile(scale2, 4).reshape(1, 4 * Cout)
    shift2ph = jnp.tile(shift2, 4).reshape(1, 4 * Cout)

    # ---- BN2 + ReLU (elementwise, phase layout) ----
    y2 = _bn_relu(z2, scale2ph, shift2ph)                        # (N, H*W, 4*Cout)

    # Un-phase: (N, H*W, (py,px,co)) -> (N, Cout, 2H, 2W)  (single XLA transpose).
    y2 = y2.reshape(N, H, W, 2, 2, Cout)
    y2 = jnp.transpose(y2, (0, 5, 1, 3, 2, 4))                   # (N, Cout, H, py, W, px)
    return y2.reshape(N, Cout, 2 * H, 2 * W)


if __name__ == "__main__":
    key = jax.random.PRNGKey(0)
    k_x, k_p = jax.random.split(key)
    # N=2, Cin=4, Cmid=8, Cout=4, 16x16 spatial (NCHW like PyTorch).
    x = jax.random.normal(k_x, (2, 4, 16, 16), jnp.float32)
    raw_params = init_decoder_block_params(k_p, in_channels=4, middle_channels=8,
                                           out_channels=4)
    params = jax.device_put(prepare_decoder_params(raw_params))  # hoisted, one-time

    fwd = jax.jit(decoder_block_forward)
    out = jax.block_until_ready(fwd(x, params))

    assert out.shape == (2, 4, 32, 32), out.shape                # (N, out_ch, 2H, 2W)
    assert bool(jnp.all(jnp.isfinite(out)))
    assert bool(jnp.all(out >= 0.0))                             # final ReLU
    print("KERNEL_OK")
</pallas_src>

<mosaic_0001>
module attributes {stable_mosaic.version = 11 : i64} {
  func.func @_conv3x3_stats_kernel(%arg0: i32, %arg1: memref<1x18x18x4xf32, #tpu.memory_space<vmem>>, %arg2: memref<36x8xbf16, #tpu.memory_space<vmem>>, %arg3: memref<1x8xf32, #tpu.memory_space<vmem>>, %arg4: memref<1x16x16x8xf32, #tpu.memory_space<vmem>>, %arg5: memref<1x2x8xf32, #tpu.memory_space<vmem>>) attributes {dimension_semantics = [#tpu.dimension_semantics<parallel>], iteration_bounds = array<i64: 2>, scalar_prefetch = 0 : i64, scratch_operands = 0 : i64, tpu.core_type = #tpu.core_type<tc>, window_params = [{transform_indices = @transform_0, window_bounds = array<i64: 1, 18, 18, 4>}, {pipeline_mode = #tpu.pipeline_mode<synchronous>, transform_indices = @transform_1, window_bounds = array<i64: 36, 8>}, {pipeline_mode = #tpu.pipeline_mode<synchronous>, transform_indices = @transform_2, window_bounds = array<i64: 1, 8>}, {transform_indices = @transform_3, window_bounds = array<i64: 1, 16, 16, 8>}, {transform_indices = @transform_4, window_bounds = array<i64: 1, 2, 8>}]} {
    %c0 = arith.constant 0 : index
    %c0_0 = arith.constant 0 : index
    %c0_1 = arith.constant 0 : index
    %c0_2 = arith.constant 0 : index
    %0 = vector.load %arg1[%c0, %c0_0, %c0_1, %c0_2] : memref<1x18x18x4xf32, #tpu.memory_space<vmem>>, vector<1x16x16x4xf32>
    %1 = vector.shape_cast %0 : vector<1x16x16x4xf32> to vector<16x16x4xf32>
    %2 = vector.shape_cast %1 : vector<16x16x4xf32> to vector<256x4xf32>
    %c0_3 = arith.constant 0 : index
    %c0_4 = arith.constant 0 : index
    %c1 = arith.constant 1 : index
    %c0_5 = arith.constant 0 : index
    %3 = vector.load %arg1[%c0_3, %c0_4, %c1, %c0_5] : memref<1x18x18x4xf32, #tpu.memory_space<vmem>>, vector<1x16x16x4xf32>
    %4 = vector.shape_cast %3 : vector<1x16x16x4xf32> to vector<16x16x4xf32>
    %5 = vector.shape_cast %4 : vector<16x16x4xf32> to vector<256x4xf32>
    %c0_6 = arith.constant 0 : index
    %c0_7 = arith.constant 0 : index
    %c2 = arith.constant 2 : index
    %c0_8 = arith.constant 0 : index
    %6 = vector.load %arg1[%c0_6, %c0_7, %c2, %c0_8] : memref<1x18x18x4xf32, #tpu.memory_space<vmem>>, vector<1x16x16x4xf32>
    %7 = vector.shape_cast %6 : vector<1x16x16x4xf32> to vector<16x16x4xf32>
    %8 = vector.shape_cast %7 : vector<16x16x4xf32> to vector<256x4xf32>
    %c0_9 = arith.constant 0 : index
    %c1_10 = arith.constant 1 : index
    %c0_11 = arith.constant 0 : index
    %c0_12 = arith.constant 0 : index
    %9 = vector.load %arg1[%c0_9, %c1_10, %c0_11, %c0_12] : memref<1x18x18x4xf32, #tpu.memory_space<vmem>>, vector<1x16x16x4xf32>
    %10 = vector.shape_cast %9 : vector<1x16x16x4xf32> to vector<16x16x4xf32>
    %11 = vector.shape_cast %10 : vector<16x16x4xf32> to vector<256x4xf32>
    %c0_13 = arith.constant 0 : index
    %c1_14 = arith.constant 1 : index
    %c1_15 = arith.constant 1 : index
    %c0_16 = arith.constant 0 : index
    %12 = vector.load %arg1[%c0_13, %c1_14, %c1_15, %c0_16] : memref<1x18x18x4xf32, #tpu.memory_space<vmem>>, vector<1x16x16x4xf32>
    %13 = vector.shape_cast %12 : vector<1x16x16x4xf32> to vector<16x16x4xf32>
    %14 = vector.shape_cast %13 : vector<16x16x4xf32> to vector<256x4xf32>
    %c0_17 = arith.constant 0 : index
    %c1_18 = arith.constant 1 : index
    %c2_19 = arith.constant 2 : index
    %c0_20 = arith.constant 0 : index
    %15 = vector.load %arg1[%c0_17, %c1_18, %c2_19, %c0_20] : memref<1x18x18x4xf32, #tpu.memory_space<vmem>>, vector<1x16x16x4xf32>
    %16 = vector.shape_cast %15 : vector<1x16x16x4xf32> to vector<16x16x4xf32>
    %17 = vector.shape_cast %16 : vector<16x16x4xf32> to vector<256x4xf32>
    %c0_21 = arith.constant 0 : index
    %c2_22 = arith.constant 2 : index
    %c0_23 = arith.constant 0 : index
    %c0_24 = arith.constant 0 : index
    %18 = vector.load %arg1[%c0_21, %c2_22, %c0_23, %c0_24] : memref<1x18x18x4xf32, #tpu.memory_space<vmem>>, vector<1x16x16x4xf32>
    %19 = vector.shape_cast %18 : vector<1x16x16x4xf32> to vector<16x16x4xf32>
    %20 = vector.shape_cast %19 : vector<16x16x4xf32> to vector<256x4xf32>
    %c0_25 = arith.constant 0 : index
    %c2_26 = arith.constant 2 : index
    %c1_27 = arith.constant 1 : index
    %c0_28 = arith.constant 0 : index
    %21 = vector.load %arg1[%c0_25, %c2_26, %c1_27, %c0_28] : memref<1x18x18x4xf32, #tpu.memory_space<vmem>>, vector<1x16x16x4xf32>
    %22 = vector.shape_cast %21 : vector<1x16x16x4xf32> to vector<16x16x4xf32>
    %23 = vector.shape_cast %22 : vector<16x16x4xf32> to vector<256x4xf32>
    %c0_29 = arith.constant 0 : index
    %c2_30 = arith.constant 2 : index
    %c2_31 = arith.constant 2 : index
    %c0_32 = arith.constant 0 : index
    %24 = vector.load %arg1[%c0_29, %c2_30, %c2_31, %c0_32] : memref<1x18x18x4xf32, #tpu.memory_space<vmem>>, vector<1x16x16x4xf32>
    %25 = vector.shape_cast %24 : vector<1x16x16x4xf32> to vector<16x16x4xf32>
    %26 = vector.shape_cast %25 : vector<16x16x4xf32> to vector<256x4xf32>
    %27 = tpu.concatenate %2, %5, %8, %11, %14, %17, %20, %23, %26 in 1 : vector<256x4xf32>, vector<256x4xf32>, vector<256x4xf32>, vector<256x4xf32>, vector<256x4xf32>, vector<256x4xf32>, vector<256x4xf32>, vector<256x4xf32>, vector<256x4xf32> -> vector<256x36xf32>
    %28 = arith.truncf %27 : vector<256x36xf32> to vector<256x36xbf16>
    %c0_33 = arith.constant 0 : index
    %c0_34 = arith.constant 0 : index
    %29 = vector.load %arg2[%c0_33, %c0_34] : memref<36x8xbf16, #tpu.memory_space<vmem>>, vector<36x8xbf16>
    %cst = arith.constant dense<0.000000e+00> : vector<256x8xf32>
    %30 = tpu.matmul %28, %29, %cst {dimension_numbers = #tpu.dot_dimension_numbers<[1], [0], [0], [1], [0, 0, 1, 1], [], []>} : vector<256x36xbf16>, vector<36x8xbf16>, vector<256x8xf32> -> vector<256x8xf32>
    %c0_35 = arith.constant 0 : index
    %c0_36 = arith.constant 0 : index
    %31 = vector.load %arg3[%c0_35, %c0_36] : memref<1x8xf32, #tpu.memory_space<vmem>>, vector<1x8xf32>
    %32 = vector.broadcast %31 : vector<1x8xf32> to vector<256x8xf32>
    %33 = arith.addf %30, %32 : vector<256x8xf32>
    %cst_37 = arith.constant dense<0.000000e+00> : vector<8xf32>
    %34 = vector.multi_reduction <add>, %33, %cst_37 [0] : vector<256x8xf32> to vector<8xf32>
    %35 = vector.shape_cast %34 : vector<8xf32> to vector<1x8xf32>
    %36 = arith.mulf %33, %33 : vector<256x8xf32>
    %cst_38 = arith.constant dense<0.000000e+00> : vector<8xf32>
    %37 = vector.multi_reduction <add>, %36, %cst_38 [0] : vector<256x8xf32> to vector<8xf32>
    %38 = vector.shape_cast %37 : vector<8xf32> to vector<1x8xf32>
    %39 = tpu.concatenate %35, %38 in 0 : vector<1x8xf32>, vector<1x8xf32> -> vector<2x8xf32>
    %c0_39 = arith.constant 0 : index
    %c0_40 = arith.constant 0 : index
    %c0_41 = arith.constant 0 : index
    %40 = vector.load %arg5[%c0_39, %c0_40, %c0_41] : memref<1x2x8xf32, #tpu.memory_space<vmem>>, vector<1x2x8xf32>
    %41 = vector.shape_cast %40 : vector<1x2x8xf32> to vector<2x8xf32>
    %42 = vector.shape_cast %39 : vector<2x8xf32> to vector<1x2x8xf32>
    tpu.vector_store %arg5[%c0_39, %c0_40, %c0_41], %42 {strides = array<i32>} : memref<1x2x8xf32, #tpu.memory_space<vmem>>, vector<1x2x8xf32>,
    %43 = vector.shape_cast %33 : vector<256x8xf32> to vector<16x16x8xf32>
    %c0_42 = arith.constant 0 : index
    %c0_43 = arith.constant 0 : index
    %c0_44 = arith.constant 0 : index
    %c0_45 = arith.constant 0 : index
    %44 = vector.load %arg4[%c0_42, %c0_43, %c0_44, %c0_45] : memref<1x16x16x8xf32, #tpu.memory_space<vmem>>, vector<1x16x16x8xf32>
    %45 = vector.shape_cast %44 : vector<1x16x16x8xf32> to vector<16x16x8xf32>
    %46 = vector.shape_cast %43 : vector<16x16x8xf32> to vector<1x16x16x8xf32>
    tpu.vector_store %arg4[%c0_42, %c0_43, %c0_44, %c0_45], %46 {strides = array<i32>} : memref<1x16x16x8xf32, #tpu.memory_space<vmem>>, vector<1x16x16x8xf32>,
    return
  }
  func.func @transform_0(%arg0: i32) -> (i32, i32, i32, i32) {
    %c0_i32 = arith.constant 0 : i32
    %c0_i32_0 = arith.constant 0 : i32
    %c0_i32_1 = arith.constant 0 : i32
    %c0_i32_2 = arith.constant 0 : i32
    return %arg0, %c0_i32, %c0_i32_0, %c0_i32_1 : i32, i32, i32, i32
  }
  func.func @transform_1(%arg0: i32) -> (i32, i32) {
    %c0_i32 = arith.constant 0 : i32
    %c0_i32_0 = arith.constant 0 : i32
    %c0_i32_1 = arith.constant 0 : i32
    return %c0_i32, %c0_i32_0 : i32, i32
  }
  func.func @transform_2(%arg0: i32) -> (i32, i32) {
    %c0_i32 = arith.constant 0 : i32
    %c0_i32_0 = arith.constant 0 : i32
    %c0_i32_1 = arith.constant 0 : i32
    return %c0_i32, %c0_i32_0 : i32, i32
  }
  func.func @transform_3(%arg0: i32) -> (i32, i32, i32, i32) {
    %c0_i32 = arith.constant 0 : i32
    %c0_i32_0 = arith.constant 0 : i32
    %c0_i32_1 = arith.constant 0 : i32
    %c0_i32_2 = arith.constant 0 : i32
    return %arg0, %c0_i32, %c0_i32_0, %c0_i32_1 : i32, i32, i32, i32
  }
  func.func @transform_4(%arg0: i32) -> (i32, i32, i32) {
    %c0_i32 = arith.constant 0 : i32
    %c0_i32_0 = arith.constant 0 : i32
    %c0_i32_1 = arith.constant 0 : i32
    return %arg0, %c0_i32, %c0_i32_0 : i32, i32, i32
  }
}

module attributes {stable_mosaic.version = 11 : i64} {
  func.func @_bn_relu_convT_stats_kernel(%arg0: i32, %arg1: memref<1x16x16x8xf32, #tpu.memory_space<vmem>>, %arg2: memref<1x8xf32, #tpu.memory_space<vmem>>, %arg3: memref<1x8xf32, #tpu.memory_space<vmem>>, %arg4: memref<32x16xbf16, #tpu.memory_space<vmem>>, %arg5: memref<1x16xf32, #tpu.memory_space<vmem>>, %arg6: memref<1x256x16xf32, #tpu.memory_space<vmem>>, %arg7: memref<1x2x16xf32, #tpu.memory_space<vmem>>) attributes {dimension_semantics = [#tpu.dimension_semantics<parallel>], iteration_bounds = array<i64: 2>, scalar_prefetch = 0 : i64, scratch_operands = 0 : i64, tpu.core_type = #tpu.core_type<tc>, window_params = [{transform_indices = @transform_0, window_bounds = array<i64: 1, 16, 16, 8>}, {pipeline_mode = #tpu.pipeline_mode<synchronous>, transform_indices = @transform_1, window_bounds = array<i64: 1, 8>}, {pipeline_mode = #tpu.pipeline_mode<synchronous>, transform_indices = @transform_2, window_bounds = array<i64: 1, 8>}, {pipeline_mode = #tpu.pipeline_mode<synchronous>, transform_indices = @transform_3, window_bounds = array<i64: 32, 16>}, {pipeline_mode = #tpu.pipeline_mode<synchronous>, transform_indices = @transform_4, window_bounds = array<i64: 1, 16>}, {transform_indices = @transform_5, window_bounds = array<i64: 1, 256, 16>}, {transform_indices = @transform_6, window_bounds = array<i64: 1, 2, 16>}]} {
    %c0 = arith.constant 0 : index
    %c0_0 = arith.constant 0 : index
    %c0_1 = arith.constant 0 : index
    %c0_2 = arith.constant 0 : index
    %0 = vector.load %arg1[%c0, %c0_0, %c0_1, %c0_2] : memref<1x16x16x8xf32, #tpu.memory_space<vmem>>, vector<1x16x16x8xf32>
    %1 = vector.shape_cast %0 : vector<1x16x16x8xf32> to vector<16x16x8xf32>
    %2 = vector.shape_cast %1 : vector<16x16x8xf32> to vector<256x8xf32>
    %c0_3 = arith.constant 0 : index
    %c0_4 = arith.constant 0 : index
    %3 = vector.load %arg2[%c0_3, %c0_4] : memref<1x8xf32, #tpu.memory_space<vmem>>, vector<1x8xf32>
    %4 = vector.broadcast %3 : vector<1x8xf32> to vector<256x8xf32>
    %5 = arith.mulf %2, %4 : vector<256x8xf32>
    %c0_5 = arith.constant 0 : index
    %c0_6 = arith.constant 0 : index
    %6 = vector.load %arg3[%c0_5, %c0_6] : memref<1x8xf32, #tpu.memory_space<vmem>>, vector<1x8xf32>
    %7 = vector.broadcast %6 : vector<1x8xf32> to vector<256x8xf32>
    %8 = arith.addf %5, %7 : vector<256x8xf32>
    %cst = arith.constant 0.000000e+00 : f32
    %9 = vector.broadcast %cst : f32 to vector<256x8xf32>
    %10 = arith.maximumf %8, %9 : vector<256x8xf32>
    %11 = vector.shape_cast %10 : vector<256x8xf32> to vector<16x16x8xf32>
    %c0_i32 = arith.constant 0 : i32
    %12 = arith.sitofp %c0_i32 : i32 to f32
    %13 = vector.broadcast %12 : f32 to vector<1x16x8xf32>
    %14 = tpu.concatenate %11, %13 in 0 : vector<16x16x8xf32>, vector<1x16x8xf32> -> vector<17x16x8xf32>
    %15 = vector.broadcast %12 : f32 to vector<17x1x8xf32>
    %16 = tpu.concatenate %14, %15 in 1 : vector<17x16x8xf32>, vector<17x1x8xf32> -> vector<17x17x8xf32>
    %17 = vector.extract_strided_slice %16 {offsets = [0, 0, 0], sizes = [16, 16, 8], strides = [1, 1, 1]} : vector<17x17x8xf32> to vector<16x16x8xf32>
    %18 = vector.shape_cast %17 : vector<16x16x8xf32> to vector<256x8xf32>
    %19 = vector.extract_strided_slice %16 {offsets = [0, 1, 0], sizes = [16, 16, 8], strides = [1, 1, 1]} : vector<17x17x8xf32> to vector<16x16x8xf32>
    %20 = vector.shape_cast %19 : vector<16x16x8xf32> to vector<256x8xf32>
    %21 = vector.extract_strided_slice %16 {offsets = [1, 0, 0], sizes = [16, 16, 8], strides = [1, 1, 1]} : vector<17x17x8xf32> to vector<16x16x8xf32>
    %22 = vector.shape_cast %21 : vector<16x16x8xf32> to vector<256x8xf32>
    %23 = vector.extract_strided_slice %16 {offsets = [1, 1, 0], sizes = [16, 16, 8], strides = [1, 1, 1]} : vector<17x17x8xf32> to vector<16x16x8xf32>
    %24 = vector.shape_cast %23 : vector<16x16x8xf32> to vector<256x8xf32>
    %25 = tpu.concatenate %18, %20, %22, %24 in 1 : vector<256x8xf32>, vector<256x8xf32>, vector<256x8xf32>, vector<256x8xf32> -> vector<256x32xf32>
    %26 = arith.truncf %25 : vector<256x32xf32> to vector<256x32xbf16>
    %c0_7 = arith.constant 0 : index
    %c0_8 = arith.constant 0 : index
    %27 = vector.load %arg4[%c0_7, %c0_8] : memref<32x16xbf16, #tpu.memory_space<vmem>>, vector<32x16xbf16>
    %cst_9 = arith.constant dense<0.000000e+00> : vector<256x16xf32>
    %28 = tpu.matmul %26, %27, %cst_9 {dimension_numbers = #tpu.dot_dimension_numbers<[1], [0], [0], [1], [0, 0, 1, 1], [], []>} : vector<256x32xbf16>, vector<32x16xbf16>, vector<256x16xf32> -> vector<256x16xf32>
    %c0_10 = arith.constant 0 : index
    %c0_11 = arith.constant 0 : index
    %29 = vector.load %arg5[%c0_10, %c0_11] : memref<1x16xf32, #tpu.memory_space<vmem>>, vector<1x16xf32>
    %30 = vector.broadcast %29 : vector<1x16xf32> to vector<256x16xf32>
    %31 = arith.addf %28, %30 : vector<256x16xf32>
    %cst_12 = arith.constant dense<0.000000e+00> : vector<16xf32>
    %32 = vector.multi_reduction <add>, %31, %cst_12 [0] : vector<256x16xf32> to vector<16xf32>
    %33 = vector.shape_cast %32 : vector<16xf32> to vector<1x16xf32>
    %34 = arith.mulf %31, %31 : vector<256x16xf32>
    %cst_13 = arith.constant dense<0.000000e+00> : vector<16xf32>
    %35 = vector.multi_reduction <add>, %34, %cst_13 [0] : vector<256x16xf32> to vector<16xf32>
    %36 = vector.shape_cast %35 : vector<16xf32> to vector<1x16xf32>
    %37 = tpu.concatenate %33, %36 in 0 : vector<1x16xf32>, vector<1x16xf32> -> vector<2x16xf32>
    %c0_14 = arith.constant 0 : index
    %c0_15 = arith.constant 0 : index
    %c0_16 = arith.constant 0 : index
    %38 = vector.load %arg7[%c0_14, %c0_15, %c0_16] : memref<1x2x16xf32, #tpu.memory_space<vmem>>, vector<1x2x16xf32>
    %39 = vector.shape_cast %38 : vector<1x2x16xf32> to vector<2x16xf32>
    %40 = vector.shape_cast %37 : vector<2x16xf32> to vector<1x2x16xf32>
    tpu.vector_store %arg7[%c0_14, %c0_15, %c0_16], %40 {strides = array<i32>} : memref<1x2x16xf32, #tpu.memory_space<vmem>>, vector<1x2x16xf32>,
    %c0_17 = arith.constant 0 : index
    %c0_18 = arith.constant 0 : index
    %c0_19 = arith.constant 0 : index
    %41 = vector.load %arg6[%c0_17, %c0_18, %c0_19] : memref<1x256x16xf32, #tpu.memory_space<vmem>>, vector<1x256x16xf32>
    %42 = vector.shape_cast %41 : vector<1x256x16xf32> to vector<256x16xf32>
    %43 = vector.shape_cast %31 : vector<256x16xf32> to vector<1x256x16xf32>
    tpu.vector_store %arg6[%c0_17, %c0_18, %c0_19], %43 {strides = array<i32>} : memref<1x256x16xf32, #tpu.memory_space<vmem>>, vector<1x256x16xf32>,
    return
  }
  func.func @transform_0(%arg0: i32) -> (i32, i32, i32, i32) {
    %c0_i32 = arith.constant 0 : i32
    %c0_i32_0 = arith.constant 0 : i32
    %c0_i32_1 = arith.constant 0 : i32
    %c0_i32_2 = arith.constant 0 : i32
    return %arg0, %c0_i32, %c0_i32_0, %c0_i32_1 : i32, i32, i32, i32
  }
  func.func @transform_1(%arg0: i32) -> (i32, i32) {
    %c0_i32 = arith.constant 0 : i32
    %c0_i32_0 = arith.constant 0 : i32
    %c0_i32_1 = arith.constant 0 : i32
    return %c0_i32, %c0_i32_0 : i32, i32
  }
  func.func @transform_2(%arg0: i32) -> (i32, i32) {
    %c0_i32 = arith.constant 0 : i32
    %c0_i32_0 = arith.constant 0 : i32
    %c0_i32_1 = arith.constant 0 : i32
    return %c0_i32, %c0_i32_0 : i32, i32
  }
  func.func @transform_3(%arg0: i32) -> (i32, i32) {
    %c0_i32 = arith.constant 0 : i32
    %c0_i32_0 = arith.constant 0 : i32
    %c0_i32_1 = arith.constant 0 : i32
    return %c0_i32, %c0_i32_0 : i32, i32
  }
  func.func @transform_4(%arg0: i32) -> (i32, i32) {
    %c0_i32 = arith.constant 0 : i32
    %c0_i32_0 = arith.constant 0 : i32
    %c0_i32_1 = arith.constant 0 : i32
    return %c0_i32, %c0_i32_0 : i32, i32
  }
  func.func @transform_5(%arg0: i32) -> (i32, i32, i32) {
    %c0_i32 = arith.constant 0 : i32
    %c0_i32_0 = arith.constant 0 : i32
    %c0_i32_1 = arith.constant 0 : i32
    return %arg0, %c0_i32, %c0_i32_0 : i32, i32, i32
  }
  func.func @transform_6(%arg0: i32) -> (i32, i32, i32) {
    %c0_i32 = arith.constant 0 : i32
    %c0_i32_0 = arith.constant 0 : i32
    %c0_i32_1 = arith.constant 0 : i32
    return %arg0, %c0_i32, %c0_i32_0 : i32, i32, i32
  }
}

module attributes {stable_mosaic.version = 11 : i64} {
  func.func @_bn_relu_kernel(%arg0: i32, %arg1: memref<1x256x16xf32, #tpu.memory_space<vmem>>, %arg2: memref<1x16xf32, #tpu.memory_space<vmem>>, %arg3: memref<1x16xf32, #tpu.memory_space<vmem>>, %arg4: memref<1x256x16xf32, #tpu.memory_space<vmem>>) attributes {dimension_semantics = [#tpu.dimension_semantics<parallel>], iteration_bounds = array<i64: 2>, scalar_prefetch = 0 : i64, scratch_operands = 0 : i64, tpu.core_type = #tpu.core_type<tc>, window_params = [{transform_indices = @transform_0, window_bounds = array<i64: 1, 256, 16>}, {pipeline_mode = #tpu.pipeline_mode<synchronous>, transform_indices = @transform_1, window_bounds = array<i64: 1, 16>}, {pipeline_mode = #tpu.pipeline_mode<synchronous>, transform_indices = @transform_2, window_bounds = array<i64: 1, 16>}, {transform_indices = @transform_3, window_bounds = array<i64: 1, 256, 16>}]} {
    %c0 = arith.constant 0 : index
    %c0_0 = arith.constant 0 : index
    %c0_1 = arith.constant 0 : index
    %0 = vector.load %arg1[%c0, %c0_0, %c0_1] : memref<1x256x16xf32, #tpu.memory_space<vmem>>, vector<1x256x16xf32>
    %1 = vector.shape_cast %0 : vector<1x256x16xf32> to vector<256x16xf32>
    %c0_2 = arith.constant 0 : index
    %c0_3 = arith.constant 0 : index
    %2 = vector.load %arg2[%c0_2, %c0_3] : memref<1x16xf32, #tpu.memory_space<vmem>>, vector<1x16xf32>
    %3 = vector.broadcast %2 : vector<1x16xf32> to vector<256x16xf32>
    %4 = arith.mulf %1, %3 : vector<256x16xf32>
    %c0_4 = arith.constant 0 : index
    %c0_5 = arith.constant 0 : index
    %5 = vector.load %arg3[%c0_4, %c0_5] : memref<1x16xf32, #tpu.memory_space<vmem>>, vector<1x16xf32>
    %6 = vector.broadcast %5 : vector<1x16xf32> to vector<256x16xf32>
    %7 = arith.addf %4, %6 : vector<256x16xf32>
    %cst = arith.constant 0.000000e+00 : f32
    %8 = vector.broadcast %cst : f32 to vector<256x16xf32>
    %9 = arith.maximumf %7, %8 : vector<256x16xf32>
    %c0_6 = arith.constant 0 : index
    %c0_7 = arith.constant 0 : index
    %c0_8 = arith.constant 0 : index
    %10 = vector.load %arg4[%c0_6, %c0_7, %c0_8] : memref<1x256x16xf32, #tpu.memory_space<vmem>>, vector<1x256x16xf32>
    %11 = vector.shape_cast %10 : vector<1x256x16xf32> to vector<256x16xf32>
    %12 = vector.shape_cast %9 : vector<256x16xf32> to vector<1x256x16xf32>
    tpu.vector_store %arg4[%c0_6, %c0_7, %c0_8], %12 {strides = array<i32>} : memref<1x256x16xf32, #tpu.memory_space<vmem>>, vector<1x256x16xf32>,
    return
  }
  func.func @transform_0(%arg0: i32) -> (i32, i32, i32) {
    %c0_i32 = arith.constant 0 : i32
    %c0_i32_0 = arith.constant 0 : i32
    %c0_i32_1 = arith.constant 0 : i32
    return %arg0, %c0_i32, %c0_i32_0 : i32, i32, i32
  }
  func.func @transform_1(%arg0: i32) -> (i32, i32) {
    %c0_i32 = arith.constant 0 : i32
    %c0_i32_0 = arith.constant 0 : i32
    %c0_i32_1 = arith.constant 0 : i32
    return %c0_i32, %c0_i32_0 : i32, i32
  }
  func.func @transform_2(%arg0: i32) -> (i32, i32) {
    %c0_i32 = arith.constant 0 : i32
    %c0_i32_0 = arith.constant 0 : i32
    %c0_i32_1 = arith.constant 0 : i32
    return %c0_i32, %c0_i32_0 : i32, i32
  }
  func.func @transform_3(%arg0: i32) -> (i32, i32, i32) {
    %c0_i32 = arith.constant 0 : i32
    %c0_i32_0 = arith.constant 0 : i32
    %c0_i32_1 = arith.constant 0 : i32
    return %arg0, %c0_i32, %c0_i32_0 : i32, i32, i32
  }
}

</mosaic_0001>

<bundles_post_ra>
// kernel: squeeze.6
= control target key start
LH: loop header
LB: loop body
LE: loop exit
PB: predicated region body
PF: predicated region fallthrough
CT: control target
= control target key end

     0   :  { %s37_s8 = smov 116   ;;  %vm7_vm0 = vcmask 31744   ;;  %s38_s9 = smov 120   ;;  %s55_s0 = inlined_call_operand.vmem [shape: f32[16], index: 0, kind: input, shape index: {}]   ;;  %s56_s1 = inlined_call_operand.vmem [shape: f32[4,4], index: 1, kind: output, shape index: {}]  }
   0x1   :  { %v4_v0 = vld [vmem:[%s55_s0] sm:$0x1]  ;;  %s36_s0 = smov 124  }
   0x2   :  { %5 = vst [vmem:[#allocation1] sm:$0x1] %v4_v0 }
   0x9   :  { %v9_v1 = vld [vmem:[#allocation1] sm:$0x1]  }
   0xa   :  { %v21_v2 = vld [vmem:[#allocation1] sm:$0x1]   ;;  %10 = vrot.lane.b32.xlu0 %v9_v1, %s36_s0 }
   0xb   :  { %22 = vrot.lane.b32.xlu1 %v21_v2, %s37_s8  ;;  %v6_v3 = vld [vmem:[#allocation1] sm:$0x1]  }
   0xc   :  { %v15_v4 = vld [vmem:[#allocation1] sm:$0x1]   ;;  %8 = vst.msk [vmem:[#allocation0] sm:$0x1] %vm7_vm0, %v6_v3  }
   0xe   :  { %16 = vrot.lane.b32.xlu0 %v15_v4, %s38_s9 }
  0x7c   :  { %v11_v5 = vpop.permute.xlu0 %10  }
  0x7d   :  { %v23_v6 = vpop.permute.xlu1 %22   ;;  %14 = vst.msk [vmem:[#allocation0 + $0x1] sm:$0x1] %vm7_vm0, %v11_v5  }
  0x7e   :  { %26 = vst.msk [vmem:[#allocation0 + $0x3] sm:$0x1] %vm7_vm0, %v23_v6  }
  0x80   :  { %v17_v7 = vpop.permute.xlu0 %16  }
  0x81   :  { %20 = vst.msk [vmem:[#allocation0 + $0x2] sm:$0x1] %vm7_vm0, %v17_v7  }
  0x88   :  { %v30_v8 = vld [vmem:[#allocation0] sm:$0xf] }
  0x89   :  { %32 = vst [vmem:[%s56_s1] sm:$0xf] %v30_v8 }

// kernel: tile.18
= control target key start
LH: loop header
LB: loop body
LE: loop exit
PB: predicated region body
PF: predicated region fallthrough
CT: control target
= control target key end

     0   :  { %s22_s0 = inlined_call_operand.vmem [shape: f32[4], index: 0, kind: input, shape index: {}]   ;;  %s23_s1 = inlined_call_operand.vmem [shape: f32[4,4], index: 1, kind: output, shape index: {}]  }
   0x1   :  { %v4_v0 = vld [vmem:[%s22_s0] ss:$0 sm:$0xff] }
   0x2   :  { %5 = vst [vmem:[%s23_s1] sm:$0xf] %v4_v0 }

// kernel: tile.19
= control target key start
LH: loop header
LB: loop body
LE: loop exit
PB: predicated region body
PF: predicated region fallthrough
CT: control target
= control target key end

     0   :  { %vm7_vm0 = vcmask 31744   ;;  %s37_s8 = smov 4   ;;  %s38_s9 = smov 8   ;;  %vm13_vm1 = vcmask 130144   ;;  %vm19_vm2 = vcmask 97344   ;;  %vm25_vm3 = vcmask 64544   ;;  %s55_s0 = inlined_call_operand.vmem [shape: f32[4,4], index: 0, kind: input, shape index: {}]   ;;  %s56_s1 = inlined_call_operand.vmem [shape: f32[1,16], index: 1, kind: output, shape index: {}]  }
   0x1   :  { %v4_v0 = vld [vmem:[%s55_s0] sm:$0xf]  ;;  %s36_s0 = smov 12  }
   0x2   :  { %5 = vst [vmem:[#allocation1] sm:$0xf] %v4_v0 }
   0x9   :  { %v10_v1 = vld [vmem:[#allocation1 + $0x3] sm:$0x1]   ;;  %v22_v2 = vld [vmem:[#allocation1 + $0x1] sm:$0x1]   ;;  %v6_v3 = vld [vmem:[#allocation1] sm:$0x1]  }
   0xa   :  { %11 = vrot.lane.b32.xlu0 %v10_v1, %s36_s0  ;;  %23 = vrot.lane.b32.xlu1 %v22_v2, %s37_s8  ;;  %v16_v4 = vld [vmem:[#allocation1 + $0x2] sm:$0x1]   ;;  %8 = vst.msk [vmem:[#allocation0] sm:$0x1] %vm7_vm0, %v6_v3  }
   0xe   :  { %17 = vrot.lane.b32.xlu0 %v16_v4, %s38_s9 }
  0x7c   :  { %v12_v5 = vpop.permute.xlu0 %11   ;;  %v24_v6 = vpop.permute.xlu1 %23  }
  0x7d   :  { %14 = vst.msk [vmem:[#allocation0] sm:$0x1] %vm13_vm1, %v12_v5  }
  0x80   :  { %v18_v7 = vpop.permute.xlu0 %17  }
  0x81   :  { %20 = vst.msk [vmem:[#allocation0] sm:$0x1] %vm19_vm2, %v18_v7  }
  0x82   :  { %26 = vst.msk [vmem:[#allocation0] sm:$0x1] %vm25_vm3, %v24_v6  }
  0x89   :  { %v30_v8 = vld [vmem:[#allocation0] sm:$0x1] }
  0x8a   :  { %32 = vst [vmem:[%s56_s1] sm:$0x1] %v30_v8 }

// kernel: decoder_block_forward.5
= control target key start
LH: loop header
LB: loop body
LE: loop exit
PB: predicated region body
PF: predicated region fallthrough
CT: control target
= control target key end

     0   :  { %s452_s12 = smov 0   ;;  %s643_s0 = inlined_call_operand.vmem [shape: f32[2,256,16], index: 0, kind: input, shape index: {}]   ;;  %s644_s1 = inlined_call_operand.vmem [shape: f32[1,16], index: 1, kind: input, shape index: {}]   ;;  %s645_s2 = inlined_call_operand.vmem [shape: f32[1,16], index: 2, kind: input, shape index: {}]   ;;  %s646_s3 = inlined_call_operand.vmem [shape: f32[2,256,16], index: 3, kind: output, shape index: {}]  }
   0x1 LB: > { %s401_s13 = sadd.s32 4294967295, %s430_s12   ;;  %p405_p0 = scmp.ge.s32.totalorder %s430_s12, 1  ;;  %s430_s12 = sphi %s452_s12, %s13_s12  }
   0x2   : > { %p137_p1 = scmp.lt.s32.totalorder %s430_s12, 3 }
   0x4   : > { %p138_p2 = pnand %p405_p0, %p137_p1 }
   0x5   : > { %p161_p3 = scmp.lt.s32.totalorder (!%p138_p2), %s401_s13, 1  ;;  %v463_v0 = vld [vmem:[%s644_s1] ss:$0 sm:$0xff] (!%p138_p2)  ;;  %vm313_vm0 = vcmask (!%p138_p2), 130048  }
   0x6   : > { %141 = sbr.rel (%p138_p2) target bundleno = 46 (0x2e), region = 32  ;;  %v473_v1 = vld [vmem:[%s645_s2] ss:$0 sm:$0xff] (!%p138_p2) }
   0xd   : > { %s648_s13 = smov (!%p161_p3, %s401_s13), 1 }
   0xe   : > { %s414_s14 = sshll.u32 %s648_s13, 8 }
   0xf   : > { %s468_s19 = scalar_lea.vmem %s643_s0, %s414_s14  ;;  %s496_s24 = scalar_lea.vmem %s646_s3, %s414_s14 }
  0x10   : > { %v171_v2 = vld [vmem:[%s468_s19] sm:$0xff]  ;;  %v172_v3 = vld [vmem:[%s468_s19 + $0x8] sm:$0xff]  ;;  %v173_v4 = vld [vmem:[%s468_s19 + $0x10] sm:$0xff] }
  0x11   : > { %v210_v5 = vmul.f32 %v463_v0, %v171_v2  ;;  %v211_v6 = vmul.f32 %v463_v0, %v172_v3  ;;  %v212_v7 = vmul.f32 %v463_v0, %v173_v4  ;;  %v174_v8 = vld [vmem:[%s468_s19 + $0x18] sm:$0xff]  ;;  %v175_v9 = vld [vmem:[%s468_s19 + $0x20] sm:$0xff]  ;;  %v176_v10 = vld [vmem:[%s468_s19 + $0x28] sm:$0xff] }
  0x12   : > { %v213_v11 = vmul.f32 %v463_v0, %v174_v8  ;;  %v214_v12 = vmul.f32 %v463_v0, %v175_v9  ;;  %v215_v13 = vmul.f32 %v463_v0, %v176_v10  ;;  %v177_v14 = vld [vmem:[%s468_s19 + $0x30] sm:$0xff]  ;;  %v178_v15 = vld [vmem:[%s468_s19 + $0x38] sm:$0xff]  ;;  %v179_v24 = vld [vmem:[%s468_s19 + $0x40] sm:$0xff] }
  0x13   : > { %v249_v16 = vadd.f32 %v473_v1, %v210_v5  ;;  %v250_v17 = vadd.f32 %v473_v1, %v211_v6  ;;  %v251_v18 = vadd.f32 %v473_v1, %v212_v7  ;;  %v216_v19 = vmul.f32 %v463_v0, %v177_v14  ;;  %v180_v25 = vld [vmem:[%s468_s19 + $0x48] sm:$0xff]  ;;  %v181_v26 = vld [vmem:[%s468_s19 + $0x50] sm:$0xff]  ;;  %v182_v31 = vld [vmem:[%s468_s19 + $0x58] sm:$0xff] }
  0x14   : > { %v252_v20 = vadd.f32 %v473_v1, %v213_v11  ;;  %v253_v21 = vadd.f32 %v473_v1, %v214_v12  ;;  %v254_v22 = vadd.f32 %v473_v1, %v215_v13  ;;  %v217_v23 = vmul.f32 %v463_v0, %v178_v15  ;;  %v183_v32 = vld [vmem:[%s468_s19 + $0x60] sm:$0xff]  ;;  %v184_v33 = vld [vmem:[%s468_s19 + $0x68] sm:$0xff]  ;;  %v185_v38 = vld [vmem:[%s468_s19 + $0x70] sm:$0xff] }
  0x15   : > { %v281_v27 = vmax.f32 %v249_v16, 0.0  ;;  %v282_v28 = vmax.f32 %v250_v17, 0.0  ;;  %v283_v29 = vmax.f32 %v251_v18, 0.0  ;;  %v255_v30 = vadd.f32 %v473_v1, %v216_v19  ;;  %v186_v43 = vld [vmem:[%s468_s19 + $0x78] sm:$0xff]  ;;  %v187_v56 = vld [vmem:[%s468_s19 + $0x80] sm:$0xff]  ;;  %v188_v57 = vld [vmem:[%s468_s19 + $0x88] sm:$0xff] }
  0x16   : > { %v284_v34 = vmax.f32 %v252_v20, 0.0  ;;  %v285_v35 = vmax.f32 %v253_v21, 0.0  ;;  %v286_v36 = vmax.f32 %v254_v22, 0.0  ;;  %v256_v37 = vadd.f32 %v473_v1, %v217_v23  ;;  %v189_v58 = vld [vmem:[%s468_s19 + $0x90] sm:$0xff]  ;;  %v190_v63 = vld [vmem:[%s468_s19 + $0x98] sm:$0xff]  ;;  %v191_v2 = vld [vmem:[%s468_s19 + $0xa0] sm:$0xff] }
  0x17   : > { %314 = vst.msk [vmem:[%s496_s24] sm:$0xff] %vm313_vm0, %v281_v27  ;;  %315 = vst.msk [vmem:[%s496_s24 + $0x8] sm:$0xff] %vm313_vm0, %v282_v28  ;;  %v287_v39 = vmax.f32 %v255_v30, 0.0  ;;  %v218_v40 = vmul.f32 %v463_v0, %v179_v24  ;;  %v219_v41 = vmul.f32 %v463_v0, %v180_v25  ;;  %v220_v42 = vmul.f32 %v463_v0, %v181_v26  ;;  %v192_v3 = vld [vmem:[%s468_s19 + $0xa8] sm:$0xff]  ;;  %v193_v8 = vld [vmem:[%s468_s19 + $0xb0] sm:$0xff] }
  0x18   : > { %316 = vst.msk [vmem:[%s496_s24 + $0x10] sm:$0xff] %vm313_vm0, %v283_v29  ;;  %317 = vst.msk [vmem:[%s496_s24 + $0x18] sm:$0xff] %vm313_vm0, %v284_v34  ;;  %v288_v44 = vmax.f32 %v256_v37, 0.0  ;;  %v221_v45 = vmul.f32 %v463_v0, %v182_v31  ;;  %v222_v46 = vmul.f32 %v463_v0, %v183_v32  ;;  %v223_v47 = vmul.f32 %v463_v0, %v184_v33  ;;  %v194_v13 = vld [vmem:[%s468_s19 + $0xb8] sm:$0xff]  ;;  %v195_v26 = vld [vmem:[%s468_s19 + $0xc0] sm:$0xff] }
  0x19   : > { %318 = vst.msk [vmem:[%s496_s24 + $0x20] sm:$0xff] %vm313_vm0, %v285_v35  ;;  %319 = vst.msk [vmem:[%s496_s24 + $0x28] sm:$0xff] %vm313_vm0, %v286_v36  ;;  %v257_v48 = vadd.f32 %v473_v1, %v218_v40  ;;  %v258_v49 = vadd.f32 %v473_v1, %v219_v41  ;;  %v259_v50 = vadd.f32 %v473_v1, %v220_v42  ;;  %v196_v27 = vld [vmem:[%s468_s19 + $0xc8] sm:$0xff]  ;;  %v197_v28 = vld [vmem:[%s468_s19 + $0xd0] sm:$0xff] }
  0x1a   : > { %320 = vst.msk [vmem:[%s496_s24 + $0x30] sm:$0xff] %vm313_vm0, %v287_v39  ;;  %v224_v51 = vmul.f32 %v463_v0, %v185_v38  ;;  %321 = vst.msk [vmem:[%s496_s24 + $0x38] sm:$0xff] %vm313_vm0, %v288_v44  ;;  %v260_v52 = vadd.f32 %v473_v1, %v221_v45  ;;  %v261_v53 = vadd.f32 %v473_v1, %v222_v46  ;;  %v198_v33 = vld [vmem:[%s468_s19 + $0xd8] sm:$0xff]  ;;  %v199_v34 = vld [vmem:[%s468_s19 + $0xe0] sm:$0xff] }
  0x1b   : > { %v262_v54 = vadd.f32 %v473_v1, %v223_v47  ;;  %v225_v55 = vmul.f32 %v463_v0, %v186_v43  ;;  %v289_v59 = vmax.f32 %v257_v48, 0.0  ;;  %v290_v60 = vmax.f32 %v258_v49, 0.0  ;;  %v200_v35 = vld [vmem:[%s468_s19 + $0xe8] sm:$0xff]  ;;  %v201_v40 = vld [vmem:[%s468_s19 + $0xf0] sm:$0xff]  ;;  %v202_v45 = vld [vmem:[%s468_s19 + $0xf8] sm:$0xff] }
  0x1c   : > { %v291_v61 = vmax.f32 %v259_v50, 0.0  ;;  %v263_v62 = vadd.f32 %v473_v1, %v224_v51  ;;  %v292_v4 = vmax.f32 %v260_v52, 0.0  ;;  %v293_v5 = vmax.f32 %v261_v53, 0.0 }
  0x1d   : > { %v294_v6 = vmax.f32 %v262_v54, 0.0  ;;  %v264_v7 = vadd.f32 %v473_v1, %v225_v55  ;;  %322 = vst.msk [vmem:[%s496_s24 + $0x40] sm:$0xff] %vm313_vm0, %v289_v59  ;;  %323 = vst.msk [vmem:[%s496_s24 + $0x48] sm:$0xff] %vm313_vm0, %v290_v60  ;;  %v226_v10 = vmul.f32 %v463_v0, %v187_v56  ;;  %v227_v11 = vmul.f32 %v463_v0, %v188_v57 }
  0x1e   : > { %324 = vst.msk [vmem:[%s496_s24 + $0x50] sm:$0xff] %vm313_vm0, %v291_v61  ;;  %v295_v9 = vmax.f32 %v263_v62, 0.0  ;;  %v228_v12 = vmul.f32 %v463_v0, %v189_v58  ;;  %325 = vst.msk [vmem:[%s496_s24 + $0x58] sm:$0xff] %vm313_vm0, %v292_v4  ;;  %v229_v15 = vmul.f32 %v463_v0, %v190_v63  ;;  %v230_v16 = vmul.f32 %v463_v0, %v191_v2 }
  0x1f   : > { %326 = vst.msk [vmem:[%s496_s24 + $0x60] sm:$0xff] %vm313_vm0, %v293_v5  ;;  %327 = vst.msk [vmem:[%s496_s24 + $0x68] sm:$0xff] %vm313_vm0, %v294_v6  ;;  %v296_v14 = vmax.f32 %v264_v7, 0.0  ;;  %v231_v17 = vmul.f32 %v463_v0, %v192_v3  ;;  %v265_v18 = vadd.f32 %v473_v1, %v226_v10  ;;  %v266_v19 = vadd.f32 %v473_v1, %v227_v11 }
  0x20   : > { %328 = vst.msk [vmem:[%s496_s24 + $0x70] sm:$0xff] %vm313_vm0, %v295_v9  ;;  %v267_v20 = vadd.f32 %v473_v1, %v228_v12  ;;  %v232_v21 = vmul.f32 %v463_v0, %v193_v8  ;;  %v268_v22 = vadd.f32 %v473_v1, %v229_v15  ;;  %v269_v23 = vadd.f32 %v473_v1, %v230_v16 }
  0x21   : > { %329 = vst.msk [vmem:[%s496_s24 + $0x78] sm:$0xff] %vm313_vm0, %v296_v14  ;;  %v270_v24 = vadd.f32 %v473_v1, %v231_v17  ;;  %v233_v25 = vmul.f32 %v463_v0, %v194_v13  ;;  %v297_v29 = vmax.f32 %v265_v18, 0.0  ;;  %v298_v30 = vmax.f32 %v266_v19, 0.0 }
  0x22   : > { %v299_v31 = vmax.f32 %v267_v20, 0.0  ;;  %v271_v32 = vadd.f32 %v473_v1, %v232_v21  ;;  %v300_v36 = vmax.f32 %v268_v22, 0.0  ;;  %v301_v37 = vmax.f32 %v269_v23, 0.0 }
  0x23   : > { %v302_v38 = vmax.f32 %v270_v24, 0.0  ;;  %v272_v39 = vadd.f32 %v473_v1, %v233_v25  ;;  %330 = vst.msk [vmem:[%s496_s24 + $0x80] sm:$0xff] %vm313_vm0, %v297_v29  ;;  %331 = vst.msk [vmem:[%s496_s24 + $0x88] sm:$0xff] %vm313_vm0, %v298_v30  ;;  %v234_v42 = vmul.f32 %v463_v0, %v195_v26  ;;  %v235_v43 = vmul.f32 %v463_v0, %v196_v27 }
  0x24   : > { %332 = vst.msk [vmem:[%s496_s24 + $0x90] sm:$0xff] %vm313_vm0, %v299_v31  ;;  %v303_v41 = vmax.f32 %v271_v32, 0.0  ;;  %v236_v44 = vmul.f32 %v463_v0, %v197_v28  ;;  %333 = vst.msk [vmem:[%s496_s24 + $0x98] sm:$0xff] %vm313_vm0, %v300_v36  ;;  %v237_v47 = vmul.f32 %v463_v0, %v198_v33  ;;  %v238_v48 = vmul.f32 %v463_v0, %v199_v34 }
  0x25   : > { %334 = vst.msk [vmem:[%s496_s24 + $0xa0] sm:$0xff] %vm313_vm0, %v301_v37  ;;  %335 = vst.msk [vmem:[%s496_s24 + $0xa8] sm:$0xff] %vm313_vm0, %v302_v38  ;;  %v304_v46 = vmax.f32 %v272_v39, 0.0  ;;  %v239_v49 = vmul.f32 %v463_v0, %v200_v35  ;;  %v273_v50 = vadd.f32 %v473_v1, %v234_v42  ;;  %v274_v51 = vadd.f32 %v473_v1, %v235_v43 }
  0x26   : > { %336 = vst.msk [vmem:[%s496_s24 + $0xb0] sm:$0xff] %vm313_vm0, %v303_v41  ;;  %v275_v52 = vadd.f32 %v473_v1, %v236_v44  ;;  %v240_v53 = vmul.f32 %v463_v0, %v201_v40  ;;  %v276_v54 = vadd.f32 %v473_v1, %v237_v47  ;;  %v277_v55 = vadd.f32 %v473_v1, %v238_v48 }
  0x27   : > { %337 = vst.msk [vmem:[%s496_s24 + $0xb8] sm:$0xff] %vm313_vm0, %v304_v46  ;;  %v278_v56 = vadd.f32 %v473_v1, %v239_v49  ;;  %v241_v57 = vmul.f32 %v463_v0, %v202_v45  ;;  %v305_v58 = vmax.f32 %v273_v50, 0.0  ;;  %v306_v59 = vmax.f32 %v274_v51, 0.0 }
  0x28   : > { %v307_v60 = vmax.f32 %v275_v52, 0.0  ;;  %v279_v61 = vadd.f32 %v473_v1, %v240_v53  ;;  %v308_v62 = vmax.f32 %v276_v54, 0.0  ;;  %v309_v63 = vmax.f32 %v277_v55, 0.0 }
  0x29   : > { %v310_v2 = vmax.f32 %v278_v56, 0.0  ;;  %v280_v3 = vadd.f32 %v473_v1, %v241_v57  ;;  %338 = vst.msk [vmem:[%s496_s24 + $0xc0] sm:$0xff] %vm313_vm0, %v305_v58  ;;  %339 = vst.msk [vmem:[%s496_s24 + $0xc8] sm:$0xff] %vm313_vm0, %v306_v59 }
  0x2a   : > { %340 = vst.msk [vmem:[%s496_s24 + $0xd0] sm:$0xff] %vm313_vm0, %v307_v60  ;;  %v311_v4 = vmax.f32 %v279_v61, 0.0  ;;  %341 = vst.msk [vmem:[%s496_s24 + $0xd8] sm:$0xff] %vm313_vm0, %v308_v62 }
  0x2b   : > { %342 = vst.msk [vmem:[%s496_s24 + $0xe0] sm:$0xff] %vm313_vm0, %v309_v63  ;;  %343 = vst.msk [vmem:[%s496_s24 + $0xe8] sm:$0xff] %vm313_vm0, %v310_v2  ;;  %v312_v0 = vmax.f32 %v280_v3, 0.0 }
  0x2c   : > { %344 = vst.msk [vmem:[%s496_s24 + $0xf0] sm:$0xff] %vm313_vm0, %v311_v4 }
  0x2d   : > { %345 = vst.msk [vmem:[%s496_s24 + $0xf8] sm:$0xff] %vm313_vm0, %v312_v0 }
  0x2e PF: > { %s13_s12 = sadd.s32 1, %s430_s12  }
  0x2f   : > { %p10_p4 = scmp.ge.s32.totalorder %s13_s12, 4  }
  0x31   :  { %12 = sbr.rel (!%p10_p4) target bundleno = 1 (0x1), region = 62 }

// kernel: decoder_block_forward.4
= control target key start
LH: loop header
LB: loop body
LE: loop exit
PB: predicated region body
PF: predicated region fallthrough
CT: control target
= control target key end

     0   :  { %s1812_s21 = smov 0   ;;  %s2520_s0 = inlined_call_operand.vmem [shape: f32[2,16,16,8], index: 0, kind: input, shape index: {}]   ;;  %s2521_s1 = inlined_call_operand.vmem [shape: f32[1,8], index: 1, kind: input, shape index: {}]   ;;  %s2522_s2 = inlined_call_operand.vmem [shape: f32[1,8], index: 2, kind: input, shape index: {}]   ;;  %s2523_s3 = inlined_call_operand.vmem [shape: bf16[32,16], index: 3, kind: input, shape index: {}]   ;;  %s2524_s4 = inlined_call_operand.vmem [shape: f32[1,16], index: 4, kind: input, shape index: {}]   ;;  %s2525_s5 = inlined_call_operand.vmem [shape: f32[2,256,16], index: 5, kind: output, shape index: {0}]   ;;  %s2526_s6 = inlined_call_operand.vmem [shape: f32[2,2,16], index: 6, kind: output, shape index: {1}]  }
   0x1 LB: > { %s1428_s22 = sadd.s32 4294967295, %s1771_s21   ;;  %p1432_p0 = scmp.ge.s32.totalorder %s1771_s21, 1  ;;  %s1771_s21 = sphi %s1812_s21, %s17_s21  }
   0x2   : > { %p215_p1 = scmp.lt.s32.totalorder %s1771_s21, 3 }
   0x4   : > { %p216_p2 = pnand %p1432_p0, %p215_p1 }
   0x5   : > { %p249_p3 = scmp.lt.s32.totalorder (!%p216_p2), %s1428_s22, 1  ;;  %v1826_v0 = vld [vmem:[%s2521_s1] ss:$0 sm:$0xff] (!%p216_p2)  ;;  %vm439_vm0 = vcmask (!%p216_p2), 1046528   ;;  %v1773_v40 = vmov (!%p216_p2), 0.0   ;;  %s1774_s7 = smov (!%p216_p2), 16  }
   0x6   : > { %219 = sbr.rel (%p216_p2) target bundleno = 480 (0x1e0), region = 40  ;;  %v1838_v1 = vld [vmem:[%s2522_s2] ss:$0 sm:$0xff] (!%p216_p2)  ;;  %v1891_v41 = vrot.slane (!%p216_p2), %v1773_v40, 1  ;;  %v1764_v54 = vld [vmem:[%s2523_s3 + $0x8] sm:$0xff] (!%p216_p2)   ;;  %s1775_s12 = smov (!%p216_p2), 8  }
   0x7   : > { %v1763_v53 = vld [vmem:[%s2523_s3] sm:$0xff] (!%p216_p2)   ;;  %s1776_s13 = smov (!%p216_p2), 24   ;;  %vm788_vm1 = vcmask (!%p216_p2), 64512   ;;  %vm821_vm2 = vcmask (!%p216_p2), 130048   ;;  %vm854_vm3 = vcmask (!%p216_p2), 195584   ;;  %vm926_vm4 = vcmask (!%p216_p2), 261120  }
   0x8   : > { %1481 = vmatprep.subr.bf16.mxu0 (!%p216_p2), %v1763_v53  ;;  %1517 = vmatprep.subr.bf16.mxu1 (!%p216_p2), %v1763_v53  ;;  %vm1306_vm5 = vcmask (!%p216_p2), 1040384   ;;  %vm1308_vm6 = vcmask (!%p216_p2), 123904  }
   0x9   : > { %1482 = vmatpush3.bf16.msra.mxu0 (!%p216_p2), %v1763_v53  ;;  %1519 = vmatpush3.bf16.msra.mxu1 (!%p216_p2), %v1763_v53 }
   0xa   : > { %1483 = vmatprep.subr.bf16.mxu0 (!%p216_p2), %v1764_v54  ;;  %1518 = vmatprep.subr.bf16.mxu1 (!%p216_p2), %v1764_v54 }
   0xd   : > { %s2528_s22 = smov (!%p249_p3, %s1428_s22), 1  ;;  %1484 = vmatpush3.bf16.msra.mxu0 %v1764_v54  ;;  %1520 = vmatpush3.bf16.msra.mxu1 %v1764_v54 }
   0xe   : > { %s1461_s23 = sshll.u32 %s2528_s22, 8  ;;  %s1437_s19 = sshll.u32 %s2528_s22, 1 }
   0xf   : > { %s1833_s28 = scalar_lea.vmem %s2520_s0, %s1461_s23  ;;  %s2351_s18 = scalar_lea.vmem %s2525_s5, %s1461_s23 }
  0x10   : > { %v270_v2 = vld [vmem:[%s1833_s28 + $0x30] sm:$0xff]  ;;  %v271_v3 = vld [vmem:[%s1833_s28 + $0x38] sm:$0xff]  ;;  %v268_v9 = vld [vmem:[%s1833_s28 + $0x20] sm:$0xff]  ;;  %s262_s24 = scalar_lea.vmem %s2526_s6, %s1437_s19 }
  0x11   : > { %v266_v4 = vld [vmem:[%s1833_s28 + $0x10] sm:$0xff]  ;;  %v309_v5 = vmul.f32 %v1826_v0, %v270_v2  ;;  %v310_v6 = vmul.f32 %v1826_v0, %v271_v3  ;;  %v267_v7 = vld [vmem:[%s1833_s28 + $0x18] sm:$0xff]  ;;  %v269_v10 = vld [vmem:[%s1833_s28 + $0x28] sm:$0xff]  ;;  %v307_v12 = vmul.f32 %v1826_v0, %v268_v9 }
  0x12   : > { %v305_v8 = vmul.f32 %v1826_v0, %v266_v4  ;;  %v306_v11 = vmul.f32 %v1826_v0, %v267_v7  ;;  %v308_v13 = vmul.f32 %v1826_v0, %v269_v10  ;;  %v264_v14 = vld [vmem:[%s1833_s28] sm:$0xff]  ;;  %v265_v15 = vld [vmem:[%s1833_s28 + $0x8] sm:$0xff]  ;;  %v274_v59 = vld [vmem:[%s1833_s28 + $0x50] sm:$0xff] }
  0x13   : > { %v348_v16 = vadd.f32 %v1838_v1, %v309_v5  ;;  %v349_v17 = vadd.f32 %v1838_v1, %v310_v6  ;;  %v303_v19 = vmul.f32 %v1826_v0, %v264_v14  ;;  %v346_v21 = vadd.f32 %v1838_v1, %v307_v12  ;;  %v272_v24 = vld [vmem:[%s1833_s28 + $0x40] sm:$0xff]  ;;  %v273_v25 = vld [vmem:[%s1833_s28 + $0x48] sm:$0xff]  ;;  %v275_v60 = vld [vmem:[%s1833_s28 + $0x58] sm:$0xff] }
  0x14   : > { %v344_v18 = vadd.f32 %v1838_v1, %v305_v8  ;;  %v345_v20 = vadd.f32 %v1838_v1, %v306_v11  ;;  %v347_v22 = vadd.f32 %v1838_v1, %v308_v13  ;;  %v304_v23 = vmul.f32 %v1826_v0, %v265_v15  ;;  %v276_v8 = vld [vmem:[%s1833_s28 + $0x60] sm:$0xff]  ;;  %v277_v9 = vld [vmem:[%s1833_s28 + $0x68] sm:$0xff]  ;;  %v278_v15 = vld [vmem:[%s1833_s28 + $0x70] sm:$0xff] }
  0x15   : > { %v1864_v26 = vmax.f32 %v348_v16, 0.0  ;;  %v1866_v27 = vmax.f32 %v349_v17, 0.0  ;;  %v1871_v29 = vadd.f32 %v1838_v1, %v303_v19  ;;  %v1875_v31 = vmax.f32 %v346_v21, 0.0 }
  0x16   : > { %v1868_v28 = vmax.f32 %v344_v18, 0.0  ;;  %v1873_v30 = vmax.f32 %v345_v20, 0.0  ;;  %v1877_v32 = vmax.f32 %v347_v22, 0.0  ;;  %v1880_v33 = vadd.f32 %v1838_v1, %v304_v23  ;;  %v279_v20 = vld [vmem:[%s1833_s28 + $0x78] sm:$0xff] }
  0x17   : > { %v1543_v34 = vpack.i.bf16 %v1866_v27, %v1864_v26  ;;  %v374_v35 = vmax.f32 %v1871_v29, 0.0  ;;  %v311_v36 = vmul.f32 %v1826_v0, %v272_v24  ;;  %v312_v37 = vmul.f32 %v1826_v0, %v273_v25 }
  0x18   : > { %v1533_v38 = vpack.i.bf16 %v1873_v30, %v1868_v28  ;;  %v375_v39 = vmax.f32 %v1880_v33, 0.0  ;;  %v445_v42 = vrot.slane %v1868_v28, 1  ;;  %v446_v46 = vrot.slane %v1873_v30, 1 }
  0x19   : > { %1544 = vrot.lane.b32.xlu0 %v1543_v34, %s1774_s7  ;;  %v440_v43 = vrot.slane %v374_v35, 1  ;;  %v350_v44 = vadd.f32 %v1838_v1, %v311_v36  ;;  %v351_v45 = vadd.f32 %v1838_v1, %v312_v37  ;;  %v1538_v47 = vpack.i.bf16 %v1877_v32, %v1875_v31 }
  0x1a   : > { %1534 = vrot.lane.b32.xlu1 %v1533_v38, %s1774_s7  ;;  %v441_v48 = vrot.slane %v375_v39, 1  ;;  %v449_v49 = vrot.slane %v1875_v31, 1  ;;  %v450_v50 = vrot.slane %v1877_v32, 1  ;;  %v447_v57 = vsel %vm439_vm0, %v445_v42, %v446_v46 }
  0x1b   : > { %v1907_v51 = vmax.f32 %v350_v44, 0.0  ;;  %v1909_v52 = vmax.f32 %v351_v45, 0.0  ;;  %v448_v58 = vsel %vm439_vm0, %v446_v46, %v1891_v41  ;;  %v453_v3 = vrot.slane %v1864_v26, 1  ;;  %v280_v44 = vld [vmem:[%s1833_s28 + $0x80] sm:$0xff] }
  0x1c   : > { %v442_v55 = vsel %vm439_vm0, %v440_v43, %v441_v48  ;;  %v444_v56 = vsel %vm439_vm0, %v441_v48, %v1891_v41  ;;  %v451_v63 = vsel %vm439_vm0, %v449_v49, %v450_v50  ;;  %v452_v2 = vsel %vm439_vm0, %v450_v50, %v1891_v41  ;;  %v281_v48 = vld [vmem:[%s1833_s28 + $0x88] sm:$0xff] }
  0x1d   : > { %v1553_v61 = vpack.i.bf16 %v444_v56, %v442_v55  ;;  %v1548_v62 = vpack.i.bf16 %v1909_v52, %v1907_v51  ;;  %v1558_v4 = vpack.i.bf16 %v448_v58, %v447_v57  ;;  %v454_v5 = vrot.slane %v1866_v27, 1 }
  0x1e   : > { %1539 = vrot.lane.b32.xlu1 %v1538_v47, %s1774_s7  ;;  %v313_v6 = vmul.f32 %v1826_v0, %v274_v59  ;;  %v314_v7 = vmul.f32 %v1826_v0, %v275_v60  ;;  %v1568_v10 = vpack.i.bf16 %v452_v2, %v451_v63  ;;  %v457_v11 = vrot.slane %v1907_v51, 1  ;;  %v282_v2 = vld [vmem:[%s1833_s28 + $0x90] sm:$0xff] }
  0x1f   : > { %1554 = vrot.lane.b32.xlu0 %v1553_v61, %s1775_s12  ;;  %v458_v12 = vrot.slane %v1909_v52, 1  ;;  %v455_v16 = vsel %vm439_vm0, %v453_v3, %v454_v5  ;;  %v456_v17 = vsel %vm439_vm0, %v454_v5, %v1891_v41  ;;  %v315_v18 = vmul.f32 %v1826_v0, %v276_v8  ;;  %v283_v3 = vld [vmem:[%s1833_s28 + $0x98] sm:$0xff] }
  0x20   : > { %v352_v13 = vadd.f32 %v1838_v1, %v313_v6  ;;  %v353_v14 = vadd.f32 %v1838_v1, %v314_v7  ;;  %v316_v19 = vmul.f32 %v1826_v0, %v277_v9  ;;  %v317_v23 = vmul.f32 %v1826_v0, %v278_v15  ;;  %v289_v6 = vld [vmem:[%s1833_s28 + $0xc8] sm:$0xff] }
  0x21   : > { %v1578_v24 = vpack.i.bf16 %v456_v17, %v455_v16  ;;  %v459_v25 = vsel %vm439_vm0, %v457_v11, %v458_v12  ;;  %v460_v34 = vsel %vm439_vm0, %v458_v12, %v1891_v41  ;;  %v318_v36 = vmul.f32 %v1826_v0, %v279_v20 }
  0x22   : > { %1549 = vrot.lane.b32.xlu1 %v1548_v62, %s1774_s7  ;;  %v1951_v21 = vmax.f32 %v352_v13, 0.0  ;;  %v1953_v22 = vmax.f32 %v353_v14, 0.0  ;;  %v354_v42 = vadd.f32 %v1838_v1, %v315_v18  ;;  %v355_v43 = vadd.f32 %v1838_v1, %v316_v19  ;;  %v288_v62 = vld [vmem:[%s1833_s28 + $0xc0] sm:$0xff]  ;;  %v290_v18 = vld [vmem:[%s1833_s28 + $0xd0] sm:$0xff] }
  0x23   : > { %1559 = vrot.lane.b32.xlu0 %v1558_v4, %s1775_s12  ;;  %v1588_v45 = vpack.i.bf16 %v460_v34, %v459_v25  ;;  %v356_v46 = vadd.f32 %v1838_v1, %v317_v23  ;;  %v357_v47 = vadd.f32 %v1838_v1, %v318_v36  ;;  %v319_v55 = vmul.f32 %v1826_v0, %v280_v44  ;;  %v284_v25 = vld [vmem:[%s1833_s28 + $0xa0] sm:$0xff]  ;;  %v285_v34 = vld [vmem:[%s1833_s28 + $0xa8] sm:$0xff] }
  0x24   : > { %v461_v37 = vrot.slane %v1951_v21, 1  ;;  %v462_v38 = vrot.slane %v1953_v22, 1  ;;  %v1975_v53 = vmax.f32 %v354_v42, 0.0  ;;  %v1977_v54 = vmax.f32 %v355_v43, 0.0  ;;  %v291_v42 = vld [vmem:[%s1833_s28 + $0xd8] sm:$0xff]  ;;  %v292_v44 = vld [vmem:[%s1833_s28 + $0xe0] sm:$0xff] }
  0x25   : > { %v320_v56 = vmul.f32 %v1826_v0, %v281_v48  ;;  %v1982_v58 = vmax.f32 %v356_v46, 0.0  ;;  %v1984_v59 = vmax.f32 %v357_v47, 0.0  ;;  %v358_v63 = vadd.f32 %v1838_v1, %v319_v55  ;;  %v294_v47 = vld [vmem:[%s1833_s28 + $0xf0] sm:$0xff]  ;;  %v295_v48 = vld [vmem:[%s1833_s28 + $0xf8] sm:$0xff] }
  0x26   : > { %1569 = vrot.lane.b32.xlu1 %v1568_v10, %s1776_s13  ;;  %v463_v49 = vsel %vm439_vm0, %v461_v37, %v462_v38  ;;  %v464_v50 = vsel %vm439_vm0, %v462_v38, %v1891_v41  ;;  %v465_v60 = vrot.slane %v1975_v53, 1  ;;  %v466_v61 = vrot.slane %v1977_v54, 1 }
  0x27   : > { %1564 = vrot.lane.b32.xlu0 %v1558_v4, %s1776_s13  ;;  %v1598_v57 = vpack.i.bf16 %v464_v50, %v463_v49  ;;  %v1603_v4 = vpack.i.bf16 %v1953_v22, %v1951_v21  ;;  %v359_v5 = vadd.f32 %v1838_v1, %v320_v56  ;;  %v1608_v7 = vpack.i.bf16 %v1977_v54, %v1975_v53 }
  0x28   : > { %v469_v8 = vrot.slane %v1982_v58, 1  ;;  %v470_v9 = vrot.slane %v1984_v59, 1  ;;  %v467_v11 = vsel %vm439_vm0, %v465_v60, %v466_v61  ;;  %v468_v12 = vsel %vm439_vm0, %v466_v61, %v1891_v41 }
  0x29   : > { %v321_v13 = vmul.f32 %v1826_v0, %v282_v2  ;;  %v322_v14 = vmul.f32 %v1826_v0, %v283_v3  ;;  %v2009_v15 = vmax.f32 %v358_v63, 0.0  ;;  %v328_v16 = vmul.f32 %v1826_v0, %v289_v6 }
  0x2a   : > { %1579 = vrot.lane.b32.xlu1 %v1578_v24, %s1775_s12  ;;  %v2016_v19 = vmax.f32 %v359_v5, 0.0  ;;  %v1618_v20 = vpack.i.bf16 %v468_v12, %v467_v11  ;;  %v471_v23 = vsel %vm439_vm0, %v469_v8, %v470_v9  ;;  %v329_v43 = vmul.f32 %v1826_v0, %v290_v18 }
  0x2b   : > { %1574 = vrot.lane.b32.xlu0 %v1568_v10, %s1775_s12  ;;  %v327_v10 = vmul.f32 %v1826_v0, %v288_v62  ;;  %v2025_v36 = vadd.f32 %v1838_v1, %v328_v16  ;;  %v360_v37 = vadd.f32 %v1838_v1, %v321_v13  ;;  %v361_v38 = vadd.f32 %v1838_v1, %v322_v14 }
  0x2c   : > { %v473_v46 = vrot.slane %v2009_v15, 1  ;;  %v474_v50 = vrot.slane %v2016_v19, 1  ;;  %v323_v55 = vmul.f32 %v1826_v0, %v284_v25  ;;  %v324_v56 = vmul.f32 %v1826_v0, %v285_v34 }
  0x2d   : > { %v2013_v17 = vadd.f32 %v1838_v1, %v327_v10  ;;  %v330_v60 = vmul.f32 %v1826_v0, %v291_v42  ;;  %v368_v61 = vadd.f32 %v1838_v1, %v329_v43  ;;  %v331_v62 = vmul.f32 %v1826_v0, %v292_v44 }
  0x2e   : > { %1589 = vrot.lane.b32.xlu1 %v1588_v45, %s1776_s13  ;;  %v2046_v2 = vmax.f32 %v360_v37, 0.0  ;;  %v2048_v3 = vmax.f32 %v361_v38, 0.0  ;;  %v333_v5 = vmul.f32 %v1826_v0, %v294_v47  ;;  %v334_v6 = vmul.f32 %v1826_v0, %v295_v48 }
  0x2f   : > { %1584 = vrot.lane.b32.xlu0 %v1578_v24, %s1776_s13  ;;  %v472_v24 = vsel %vm439_vm0, %v470_v9, %v1891_v41  ;;  %v369_v8 = vadd.f32 %v1838_v1, %v330_v60  ;;  %v2056_v9 = vadd.f32 %v1838_v1, %v331_v62  ;;  %v1633_v11 = vpack.i.bf16 %v1984_v59, %v1982_v58 }
  0x30   : > { %v1628_v49 = vpack.i.bf16 %v472_v24, %v471_v23  ;;  %v2066_v12 = vadd.f32 %v1838_v1, %v333_v5  ;;  %v2069_v13 = vadd.f32 %v1838_v1, %v334_v6  ;;  %v475_v14 = vsel %vm439_vm0, %v473_v46, %v474_v50 }
  0x31   : > { %v476_v16 = vsel %vm439_vm0, %v474_v50, %v1891_v41  ;;  %v362_v18 = vadd.f32 %v1838_v1, %v323_v55  ;;  %v477_v24 = vrot.slane %v2046_v2, 1  ;;  %v478_v25 = vrot.slane %v2048_v3, 1 }
  0x32   : > { %1599 = vrot.lane.b32.xlu1 %v1598_v57, %s1775_s12  ;;  %v363_v34 = vadd.f32 %v1838_v1, %v324_v56  ;;  %v1648_v38 = vpack.i.bf16 %v476_v16, %v475_v14 }
  0x33   : > { %1594 = vrot.lane.b32.xlu0 %v1588_v45, %s1775_s12  ;;  %v293_v45 = vld [vmem:[%s1833_s28 + $0xe8] sm:$0xff]  ;;  %v2083_v42 = vmax.f32 %v362_v18, 0.0  ;;  %v479_v44 = vsel %vm439_vm0, %v477_v24, %v478_v25  ;;  %v2127_v18 = vmax.f32 %v368_v61, 0.0 }
  0x34   : > { %v332_v63 = vmul.f32 %v1826_v0, %v293_v45  ;;  %v2090_v45 = vmax.f32 %v363_v34, 0.0 }
  0x35   : > { %v481_v47 = vrot.slane %v2083_v42, 1  ;;  %v493_v61 = vrot.slane %v2127_v18, 1 }
  0x36   : > { %1609 = vrot.lane.b32.xlu1 %v1608_v7, %s1774_s7  ;;  %v287_v7 = vld [vmem:[%s1833_s28 + $0xb8] sm:$0xff]  ;;  %v2059_v10 = vadd.f32 %v1838_v1, %v332_v63  ;;  %v482_v48 = vrot.slane %v2090_v45, 1  ;;  %v1668_v56 = vpack.i.bf16 %v2090_v45, %v2083_v42 }
  0x37   : > { %1604 = vrot.lane.b32.xlu0 %v1603_v4, %s1774_s7  ;;  %v286_v4 = vld [vmem:[%s1833_s28 + $0xb0] sm:$0xff]  ;;  %v326_v37 = vmul.f32 %v1826_v0, %v287_v7  ;;  %v2118_v7 = vmax.f32 %v2013_v17, 0.0 }
  0x38   : > { %v325_v23 = vmul.f32 %v1826_v0, %v286_v4  ;;  %v484_v60 = vsel %vm439_vm0, %v482_v48, %v1891_v41 }
  0x39   : > { %v365_v46 = vadd.f32 %v1838_v1, %v326_v37  ;;  %v489_v14 = vrot.slane %v2118_v7, 1 }
  0x3a   : > { %1619 = vrot.lane.b32.xlu1 %v1618_v20, %s1776_s13  ;;  %v364_v43 = vadd.f32 %v1838_v1, %v325_v23  ;;  %v1663_v1 = vpack.i.bf16 %v2048_v3, %v2046_v2  ;;  %v2129_v23 = vmax.f32 %v369_v8, 0.0 }
  0x3b   : > { %1614 = vrot.lane.b32.xlu0 %v1598_v57, %s1776_s13  ;;  %v1638_v57 = vpack.i.bf16 %v2016_v19, %v2009_v15  ;;  %v2099_v55 = vmax.f32 %v365_v46, 0.0 }
  0x3c   : > { %v2097_v50 = vmax.f32 %v364_v43, 0.0  ;;  %v494_v8 = vrot.slane %v2129_v23, 1  ;;  %v2148_v43 = vmax.f32 %v2056_v9, 0.0 }
  0x3d   : > { %v486_v63 = vrot.slane %v2099_v55, 1 }
  0x3e   : > { %1629 = vrot.lane.b32.xlu1 %v1628_v49, %s1775_s12  ;;  %v485_v62 = vrot.slane %v2097_v50, 1  ;;  %v495_v37 = vsel %vm439_vm0, %v493_v61, %v494_v8  ;;  %v497_v46 = vrot.slane %v2148_v43, 1 }
  0x3f   : > { %1624 = vrot.lane.b32.xlu0 %v1618_v20, %s1775_s12  ;;  %v480_v20 = vsel %vm439_vm0, %v478_v25, %v1891_v41  ;;  %v488_v6 = vsel %vm439_vm0, %v486_v63, %v1891_v41 }
  0x40   : > { %v1658_v0 = vpack.i.bf16 %v480_v20, %v479_v44  ;;  %v487_v5 = vsel %vm439_vm0, %v485_v62, %v486_v63  ;;  %v2151_v44 = vmax.f32 %v2059_v10, 0.0  ;;  %v1723_v10 = vpack.i.bf16 %v2129_v23, %v2127_v18 }
  0x42   : > { %1639 = vrot.lane.b32.xlu1 %v1638_v57, %s1774_s7  ;;  %v2121_v57 = vmax.f32 %v2025_v36, 0.0  ;;  %v1693_v36 = vpack.i.bf16 %v2099_v55, %v2097_v50  ;;  %v1728_v9 = vpack.i.bf16 %v2151_v44, %v2148_v43 }
  0x43   : > { %1634 = vrot.lane.b32.xlu0 %v1633_v11, %s1774_s7  ;;  %v1688_v11 = vpack.i.bf16 %v488_v6, %v487_v5 }
  0x44   : > { %v490_v16 = vrot.slane %v2121_v57, 1  ;;  %v1698_v17 = vpack.i.bf16 %v2121_v57, %v2118_v7 }
  0x46   : > { %1649 = vrot.lane.b32.xlu1 %v1648_v38, %s1776_s13  ;;  %v491_v24 = vsel %vm439_vm0, %v489_v14, %v490_v16  ;;  %v492_v25 = vsel %vm439_vm0, %v490_v16, %v1891_v41 }
  0x47   : > { %1644 = vrot.lane.b32.xlu0 %v1628_v49, %s1776_s13  ;;  %v483_v49 = vsel %vm439_vm0, %v481_v47, %v482_v48  ;;  %v1708_v34 = vpack.i.bf16 %v492_v25, %v491_v24  ;;  %v2158_v47 = vmax.f32 %v2066_v12, 0.0  ;;  %v2161_v48 = vmax.f32 %v2069_v13, 0.0 }
  0x48   : > { %v1678_v4 = vpack.i.bf16 %v484_v60, %v483_v49 }
  0x49   : > { %v501_v12 = vrot.slane %v2158_v47, 1  ;;  %v502_v13 = vrot.slane %v2161_v48, 1 }
  0x4a   : > { %1659 = vrot.lane.b32.xlu1 %v1658_v0, %s1775_s12 }
  0x4b   : > { %1654 = vrot.lane.b32.xlu0 %v1648_v38, %s1775_s12  ;;  %v496_v38 = vsel %vm439_vm0, %v494_v8, %v1891_v41  ;;  %v503_v60 = vsel %vm439_vm0, %v501_v12, %v502_v13  ;;  %v504_v62 = vsel %vm439_vm0, %v502_v13, %v1891_v41 }
  0x4c   : > { %v1718_v20 = vpack.i.bf16 %v496_v38, %v495_v37  ;;  %v1748_v63 = vpack.i.bf16 %v504_v62, %v503_v60 }
  0x4e   : > { %1669 = vrot.lane.b32.xlu1 %v1668_v56, %s1774_s7 }
  0x4f   : > { %1664 = vrot.lane.b32.xlu0 %v1663_v1, %s1774_s7 }
  0x52   : > { %1679 = vrot.lane.b32.xlu1 %v1678_v4, %s1776_s13 }
  0x53   : > { %1674 = vrot.lane.b32.xlu0 %v1658_v0, %s1776_s13  ;;  %v498_v0 = vrot.slane %v2151_v44, 1 }
  0x55   : > { %v499_v56 = vsel %vm439_vm0, %v497_v46, %v498_v0  ;;  %v500_v1 = vsel %vm439_vm0, %v498_v0, %v1891_v41 }
  0x56   : > { %1689 = vrot.lane.b32.xlu1 %v1688_v11, %s1775_s12  ;;  %v1738_v49 = vpack.i.bf16 %v500_v1, %v499_v56 }
  0x57   : > { %1684 = vrot.lane.b32.xlu0 %v1678_v4, %s1775_s12  ;;  %v1753_v4 = vpack.i.bf16 %v2161_v48, %v2158_v47 }
  0x5a   : > { %1699 = vrot.lane.b32.xlu1 %v1698_v17, %s1774_s7 }
  0x5b   : > { %1694 = vrot.lane.b32.xlu0 %v1693_v36, %s1774_s7 }
  0x5e   : > { %1709 = vrot.lane.b32.xlu1 %v1708_v34, %s1776_s13 }
  0x5f   : > { %1704 = vrot.lane.b32.xlu0 %v1688_v11, %s1776_s13 }
  0x62   : > { %1719 = vrot.lane.b32.xlu1 %v1718_v20, %s1775_s12 }
  0x63   : > { %1714 = vrot.lane.b32.xlu0 %v1708_v34, %s1775_s12 }
  0x66   : > { %1729 = vrot.lane.b32.xlu1 %v1728_v9, %s1774_s7 }
  0x67   : > { %1724 = vrot.lane.b32.xlu0 %v1723_v10, %s1774_s7 }
  0x6a   : > { %1739 = vrot.lane.b32.xlu1 %v1738_v49, %s1776_s13 }
  0x6b   : > { %1734 = vrot.lane.b32.xlu0 %v1718_v20, %s1776_s13 }
  0x6e   : > { %1749 = vrot.lane.b32.xlu1 %v1748_v63, %s1775_s12 }
  0x6f   : > { %1744 = vrot.lane.b32.xlu0 %v1738_v49, %s1775_s12 }
  0x72   : > { %662 = vrot.lane.b32.xlu1 %v1773_v40, %s1774_s7 }
  0x73   : > { %1754 = vrot.lane.b32.xlu0 %v1753_v4, %s1774_s7 }
  0x76   : > { %755 = vrot.lane.b32.xlu1 %v1891_v41, %s1776_s13 }
  0x77   : > { %1759 = vrot.lane.b32.xlu0 %v1748_v63, %s1776_s13 }
  0x8b   : > { %v2191_v5 = vpop.permute.xlu0 %1544 }
  0x8c   : > { %v1535_v6 = vpop.permute.xlu1 %1534 }
  0x8d   : > { %v1537_v46 = vunpack.i.h.bf16 %v1535_v6  ;;  %v1536_v0 = vunpack.i.l.bf16 %v1535_v6 }
  0x90   : > { %v1540_v11 = vpop.permute.xlu1 %1539 }
  0x91   : > { %v1555_v14 = vpop.permute.xlu0 %1554  ;;  %v1542_v40 = vunpack.i.h.bf16 %v1540_v11  ;;  %v1541_v8 = vunpack.i.l.bf16 %v1540_v11 }
  0x92   : > { %v1557_v16 = vunpack.i.h.bf16 %v1555_v14  ;;  %v1556_v17 = vunpack.i.l.bf16 %v1555_v14 }
  0x94   : > { %v1550_v36 = vpop.permute.xlu1 %1549  ;;  %v790_v41 = vsel %vm788_vm1, %v375_v39, %v1557_v16  ;;  %v789_v34 = vsel %vm788_vm1, %v374_v35, %v1556_v17 }
  0x95   : > { %v1560_v24 = vpop.permute.xlu0 %1559 }
  0x96   : > { %v1562_v25 = vunpack.i.h.bf16 %v1560_v24  ;;  %v1561_v61 = vunpack.i.l.bf16 %v1560_v24 }
  0x98   : > { %v792_v37 = vsel %vm788_vm1, %v1873_v30, %v1562_v25  ;;  %v791_v38 = vsel %vm788_vm1, %v1868_v28, %v1561_v61  ;;  %v1570_v20 = vpop.permute.xlu1 %1569  ;;  %v822_v30 = vsel %vm821_vm2, %v789_v34, %v1536_v0  ;;  %v823_v28 = vsel %vm821_vm2, %v790_v41, %v1537_v46 }
  0x99   : > { %v1572_v9 = vunpack.i.h.bf16 %v1570_v20  ;;  %v1571_v10 = vunpack.i.l.bf16 %v1570_v20  ;;  %v1565_v56 = vpop.permute.xlu0 %1564  ;;  %v824_v33 = vsel %vm821_vm2, %v791_v38, %v1541_v8  ;;  %v825_v39 = vsel %vm821_vm2, %v792_v37, %v1542_v40 }
  0x9a   : > { %v1567_v1 = vunpack.i.h.bf16 %v1565_v56  ;;  %v1566_v29 = vunpack.i.l.bf16 %v1565_v56  ;;  %v1552_v25 = vunpack.i.h.bf16 %v1550_v36  ;;  %v1551_v61 = vunpack.i.l.bf16 %v1550_v36 }
  0x9b   : > { %v857_v35 = vsel %vm854_vm3, %v824_v33, %v1571_v10  ;;  %v858_v12 = vsel %vm854_vm3, %v825_v39, %v1572_v9  ;;  %v1547_v34 = vunpack.i.h.bf16 %v2191_v5 }
  0x9c   : > { %v888_v13 = vpack.c.bf16 %v858_v12, %v857_v35  ;;  %v1580_v49 = vpop.permute.xlu1 %1579  ;;  %v855_v60 = vsel %vm854_vm3, %v822_v30, %v1566_v29  ;;  %v856_v62 = vsel %vm854_vm3, %v823_v28, %v1567_v1 }
  0x9d   : > { %v1582_v63 = vunpack.i.h.bf16 %v1580_v49  ;;  %v1581_v4 = vunpack.i.l.bf16 %v1580_v49  ;;  %v1575_v6 = vpop.permute.xlu0 %1574  ;;  %v887_v11 = vpack.c.bf16 %v856_v62, %v855_v60 }
  0x9e   : > { %v1577_v14 = vunpack.i.h.bf16 %v1575_v6  ;;  %v1576_v16 = vunpack.i.l.bf16 %v1575_v6 }
  0x9f   : > { %v796_v17 = vsel %vm788_vm1, %v1866_v27, %v1582_v63  ;;  %v795_v24 = vsel %vm788_vm1, %v1864_v26, %v1581_v4  ;;  %1485 = vmatprep.mubr.msk.bf16.mxu0 %vm926_vm4, %v887_v11  ;;  %v1546_v27 = vunpack.i.l.bf16 %v2191_v5 }
  0xa0   : > { %v794_v40 = vsel %vm788_vm1, %v1877_v32, %v1577_v14  ;;  %v793_v8 = vsel %vm788_vm1, %v1875_v31, %v1576_v16  ;;  %1486 = vmatmul.mubr.msk.bf16.vlgmr.msra.gmra.mrb[0].mxu0 %vm926_vm4, %v888_v13  ;;  %v1590_v41 = vpop.permute.xlu1 %1589  ;;  %v828_v20 = vsel %vm821_vm2, %v795_v24, %v1551_v61  ;;  %v829_v36 = vsel %vm821_vm2, %v796_v17, %v1552_v25 }
  0xa1   : > { %v1592_v37 = vunpack.i.h.bf16 %v1590_v41  ;;  %v1591_v38 = vunpack.i.l.bf16 %v1590_v41  ;;  %v1585_v26 = vpop.permute.xlu0 %1584  ;;  %v826_v9 = vsel %vm821_vm2, %v793_v8, %v1546_v27  ;;  %v827_v10 = vsel %vm821_vm2, %v794_v40, %v1547_v34 }
  0xa2   : > { %v1587_v46 = vunpack.i.h.bf16 %v1585_v26  ;;  %v1586_v0 = vunpack.i.l.bf16 %v1585_v26 }
  0xa3   : > { %v861_v32 = vsel %vm854_vm3, %v828_v20, %v1591_v38  ;;  %v862_v31 = vsel %vm854_vm3, %v829_v36, %v1592_v37 }
  0xa4   : > { %v890_v56 = vpack.c.bf16 %v862_v31, %v861_v32  ;;  %v859_v5 = vsel %vm854_vm3, %v826_v9, %v1586_v0  ;;  %v860_v33 = vsel %vm854_vm3, %v827_v10, %v1587_v46  ;;  %v1600_v39 = vpop.permute.xlu1 %1599 }
  0xa5   : > { %v889_v1 = vpack.c.bf16 %v860_v33, %v859_v5  ;;  %v1595_v29 = vpop.permute.xlu0 %1594  ;;  %v1602_v35 = vunpack.i.h.bf16 %v1600_v39  ;;  %v1601_v12 = vunpack.i.l.bf16 %v1600_v39 }
  0xa6   : > { %v1597_v28 = vunpack.i.h.bf16 %v1595_v29  ;;  %v1596_v13 = vunpack.i.l.bf16 %v1595_v29 }
  0xa7   : > { %1489 = vmatprep.mubr.msk.bf16.mxu0 %vm926_vm4, %v889_v1  ;;  %v800_v63 = vsel %vm788_vm1, %v1953_v22, %v1602_v35  ;;  %v799_v4 = vsel %vm788_vm1, %v1951_v21, %v1601_v12 }
  0xa8   : > { %1490 = vmatmul.mubr.msk.bf16.gmra.mrb[4].mxu0 %vm926_vm4, %v890_v56  ;;  %v1610_v30 = vpop.permute.xlu1 %1609  ;;  %v798_v16 = vsel %vm788_vm1, %v1909_v52, %v1597_v28  ;;  %v797_v17 = vsel %vm788_vm1, %v1907_v51, %v1596_v13 }
  0xa9   : > { %v1605_v49 = vpop.permute.xlu0 %1604  ;;  %v1612_v60 = vunpack.i.h.bf16 %v1610_v30  ;;  %v1611_v62 = vunpack.i.l.bf16 %v1610_v30 }
  0xaa   : > { %v1607_v6 = vunpack.i.h.bf16 %v1605_v49  ;;  %v1606_v11 = vunpack.i.l.bf16 %v1605_v49 }
  0xab   : > { %v832_v40 = vsel %vm821_vm2, %v799_v4, %v1611_v62  ;;  %v833_v8 = vsel %vm821_vm2, %v800_v63, %v1612_v60 }
  0xac   : > { %v1620_v14 = vpop.permute.xlu1 %1619  ;;  %v830_v21 = vsel %vm821_vm2, %v797_v17, %v1606_v11  ;;  %v831_v34 = vsel %vm821_vm2, %v798_v16, %v1607_v6 }
  0xad   : > { %v1622_v24 = vunpack.i.h.bf16 %v1620_v14  ;;  %v1621_v25 = vunpack.i.l.bf16 %v1620_v14  ;;  %v1615_v61 = vpop.permute.xlu0 %1614 }
  0xae   : > { %v1617_v22 = vunpack.i.h.bf16 %v1615_v61  ;;  %v1616_v41 = vunpack.i.l.bf16 %v1615_v61 }
  0xaf   : > { %v865_v27 = vsel %vm854_vm3, %v832_v40, %v1621_v25  ;;  %v866_v52 = vsel %vm854_vm3, %v833_v8, %v1622_v24 }
  0xb0   : > { %v892_v37 = vpack.c.bf16 %v866_v52, %v865_v27  ;;  %v863_v51 = vsel %vm854_vm3, %v830_v21, %v1616_v41  ;;  %v864_v38 = vsel %vm854_vm3, %v831_v34, %v1617_v22  ;;  %v1630_v26 = vpop.permute.xlu1 %1629 }
  0xb1   : > { %v891_v20 = vpack.c.bf16 %v864_v38, %v863_v51  ;;  %v1625_v36 = vpop.permute.xlu0 %1624  ;;  %v1632_v46 = vunpack.i.h.bf16 %v1630_v26  ;;  %v1631_v0 = vunpack.i.l.bf16 %v1630_v26 }
  0xb2   : > { %v1627_v31 = vunpack.i.h.bf16 %v1625_v36  ;;  %v1626_v9 = vunpack.i.l.bf16 %v1625_v36 }
  0xb3   : > { %1493 = vmatprep.mubr.msk.bf16.mxu0 %vm926_vm4, %v891_v20  ;;  %v804_v33 = vsel %vm788_vm1, %v1984_v59, %v1632_v46  ;;  %v803_v39 = vsel %vm788_vm1, %v1982_v58, %v1631_v0 }
  0xb4   : > { %1494 = vmatmul.mubr.msk.bf16.gmra.mrb[8].mxu0 %vm926_vm4, %v892_v37  ;;  %v1640_v32 = vpop.permute.xlu1 %1639  ;;  %v802_v12 = vsel %vm788_vm1, %v1977_v54, %v1627_v31  ;;  %v801_v30 = vsel %vm788_vm1, %v1975_v53, %v1626_v9 }
  0xb5   : > { %v1635_v10 = vpop.permute.xlu0 %1634  ;;  %v1642_v56 = vunpack.i.h.bf16 %v1640_v32  ;;  %v1641_v5 = vunpack.i.l.bf16 %v1640_v32 }
  0xb6   : > { %v1637_v1 = vunpack.i.h.bf16 %v1635_v10  ;;  %v1636_v29 = vunpack.i.l.bf16 %v1635_v10 }
  0xb7   : > { %v836_v60 = vsel %vm821_vm2, %v803_v39, %v1641_v5  ;;  %v837_v62 = vsel %vm821_vm2, %v804_v33, %v1642_v56 }
  0xb8   : > { %v1650_v35 = vpop.permute.xlu1 %1649  ;;  %v834_v58 = vsel %vm821_vm2, %v801_v30, %v1636_v29  ;;  %v835_v4 = vsel %vm821_vm2, %v802_v12, %v1637_v1 }
  0xb9   : > { %v1652_v28 = vunpack.i.h.bf16 %v1650_v35  ;;  %v1651_v13 = vunpack.i.l.bf16 %v1650_v35  ;;  %v1645_v49 = vpop.permute.xlu0 %1644 }
  0xba   : > { %v1647_v59 = vunpack.i.h.bf16 %v1645_v49  ;;  %v1646_v63 = vunpack.i.l.bf16 %v1645_v49 }
  0xbb   : > { %v869_v6 = vsel %vm854_vm3, %v836_v60, %v1651_v13  ;;  %v870_v54 = vsel %vm854_vm3, %v837_v62, %v1652_v28 }
  0xbc   : > { %v894_v11 = vpack.c.bf16 %v870_v54, %v869_v6  ;;  %v867_v53 = vsel %vm854_vm3, %v834_v58, %v1646_v63  ;;  %v868_v14 = vsel %vm854_vm3, %v835_v4, %v1647_v59  ;;  %v1660_v16 = vpop.permute.xlu1 %1659 }
  0xbd   : > { %v893_v17 = vpack.c.bf16 %v868_v14, %v867_v53  ;;  %v1655_v24 = vpop.permute.xlu0 %1654  ;;  %v1662_v25 = vunpack.i.h.bf16 %v1660_v16  ;;  %v1661_v61 = vunpack.i.l.bf16 %v1660_v16 }
  0xbe   : > { %v1657_v8 = vunpack.i.h.bf16 %v1655_v24  ;;  %v1656_v22 = vunpack.i.l.bf16 %v1655_v24 }
  0xbf   : > { %1497 = vmatprep.mubr.msk.bf16.mxu0 %vm926_vm4, %v893_v17  ;;  %v808_v27 = vsel %vm788_vm1, %v2048_v3, %v1662_v25  ;;  %v807_v52 = vsel %vm788_vm1, %v2046_v2, %v1661_v61 }
  0xc0   : > { %1498 = vmatmul.mubr.msk.bf16.gmra.mrb[12].mxu0 %vm926_vm4, %v894_v11  ;;  %v1670_v40 = vpop.permute.xlu1 %1669  ;;  %v806_v26 = vsel %vm788_vm1, %v2016_v19, %v1657_v8  ;;  %v805_v20 = vsel %vm788_vm1, %v2009_v15, %v1656_v22 }
  0xc1   : > { %v1665_v41 = vpop.permute.xlu0 %1664  ;;  %v1672_v21 = vunpack.i.h.bf16 %v1670_v40  ;;  %v1671_v34 = vunpack.i.l.bf16 %v1670_v40 }
  0xc2   : > { %v1667_v37 = vunpack.i.h.bf16 %v1665_v41  ;;  %v1666_v51 = vunpack.i.l.bf16 %v1665_v41 }
  0xc3   : > { %v840_v32 = vsel %vm821_vm2, %v807_v52, %v1671_v34  ;;  %v841_v31 = vsel %vm821_vm2, %v808_v27, %v1672_v21 }
  0xc4   : > { %v1680_v38 = vpop.permute.xlu1 %1679  ;;  %v838_v56 = vsel %vm821_vm2, %v805_v20, %v1666_v51  ;;  %v839_v19 = vsel %vm821_vm2, %v806_v26, %v1667_v37 }
  0xc5   : > { %v1682_v36 = vunpack.i.h.bf16 %v1680_v38  ;;  %v1681_v46 = vunpack.i.l.bf16 %v1680_v38  ;;  %v1675_v0 = vpop.permute.xlu0 %1674 }
  0xc6   : > { %v1677_v3 = vunpack.i.h.bf16 %v1675_v0  ;;  %v1676_v9 = vunpack.i.l.bf16 %v1675_v0 }
  0xc7   : > { %v873_v2 = vsel %vm854_vm3, %v840_v32, %v1681_v46  ;;  %v874_v10 = vsel %vm854_vm3, %v841_v31, %v1682_v36 }
  0xc8   : > { %v896_v5 = vpack.c.bf16 %v874_v10, %v873_v2  ;;  %v1690_v33 = vpop.permute.xlu1 %1689  ;;  %v871_v15 = vsel %vm854_vm3, %v838_v56, %v1676_v9  ;;  %v872_v39 = vsel %vm854_vm3, %v839_v19, %v1677_v3 }
  0xc9   : > { %v1685_v1 = vpop.permute.xlu0 %1684  ;;  %v895_v29 = vpack.c.bf16 %v872_v39, %v871_v15  ;;  %v1692_v35 = vunpack.i.h.bf16 %v1690_v33  ;;  %v1691_v12 = vunpack.i.l.bf16 %v1690_v33 }
  0xca   : > { %v1687_v28 = vunpack.i.h.bf16 %v1685_v1  ;;  %v1686_v13 = vunpack.i.l.bf16 %v1685_v1 }
  0xcb   : > { %1501 = vmatprep.mubr.msk.bf16.mxu1 %vm926_vm4, %v895_v29  ;;  %v812_v59 = vsel %vm788_vm1, %v2099_v55, %v1692_v35  ;;  %v811_v63 = vsel %vm788_vm1, %v2097_v50, %v1691_v12 }
  0xcc   : > { %1502 = vmatmul.mubr.msk.bf16.vlgmr.msra.gmra.mrb[0].mxu1 %vm926_vm4, %v896_v5  ;;  %v1700_v30 = vpop.permute.xlu1 %1699  ;;  %v810_v54 = vsel %vm788_vm1, %v2090_v45, %v1687_v28  ;;  %v809_v11 = vsel %vm788_vm1, %v2083_v42, %v1686_v13 }
  0xcd   : > { %v1695_v49 = vpop.permute.xlu0 %1694  ;;  %v1702_v60 = vunpack.i.h.bf16 %v1700_v30  ;;  %v1701_v62 = vunpack.i.l.bf16 %v1700_v30 }
  0xce   : > { %v1697_v58 = vunpack.i.h.bf16 %v1695_v49  ;;  %v1696_v4 = vunpack.i.l.bf16 %v1695_v49 }
  0xcf   : > { %v844_v17 = vsel %vm821_vm2, %v811_v63, %v1701_v62  ;;  %v845_v24 = vsel %vm821_vm2, %v812_v59, %v1702_v60 }
  0xd0   : > { %v1710_v6 = vpop.permute.xlu1 %1709  ;;  %v842_v50 = vsel %vm821_vm2, %v809_v11, %v1696_v4  ;;  %v843_v61 = vsel %vm821_vm2, %v810_v54, %v1697_v58 }
  0xd1   : > { %v1712_v53 = vunpack.i.h.bf16 %v1710_v6  ;;  %v1711_v14 = vunpack.i.l.bf16 %v1710_v6  ;;  %v1705_v16 = vpop.permute.xlu0 %1704 }
  0xd2   : > { %v1707_v55 = vunpack.i.h.bf16 %v1705_v16  ;;  %v1706_v25 = vunpack.i.l.bf16 %v1705_v16 }
  0xd3   : > { %v877_v40 = vsel %vm854_vm3, %v844_v17, %v1711_v14  ;;  %v878_v45 = vsel %vm854_vm3, %v845_v24, %v1712_v53 }
  0xd4   : > { %v898_v8 = vpack.c.bf16 %v878_v45, %v877_v40  ;;  %v875_v42 = vsel %vm854_vm3, %v842_v50, %v1706_v25  ;;  %v876_v22 = vsel %vm854_vm3, %v843_v61, %v1707_v55  ;;  %v1720_v41 = vpop.permute.xlu1 %1719 }
  0xd5   : > { %v897_v21 = vpack.c.bf16 %v876_v22, %v875_v42  ;;  %v1715_v34 = vpop.permute.xlu0 %1714  ;;  %v1722_v27 = vunpack.i.h.bf16 %v1720_v41  ;;  %v1721_v52 = vunpack.i.l.bf16 %v1720_v41 }
  0xd6   : > { %v1717_v51 = vunpack.i.h.bf16 %v1715_v34  ;;  %v1716_v38 = vunpack.i.l.bf16 %v1715_v34 }
  0xd7   : > { %1505 = vmatprep.mubr.msk.bf16.mxu1 %vm926_vm4, %v897_v21  ;;  %v816_v46 = vsel %vm788_vm1, %v2129_v23, %v1722_v27  ;;  %v815_v0 = vsel %vm788_vm1, %v2127_v18, %v1721_v52 }
  0xd8   : > { %1506 = vmatmul.mubr.msk.bf16.gmra.mrb[4].mxu1 %vm926_vm4, %v898_v8  ;;  %v1730_v37 = vpop.permute.xlu1 %1729  ;;  %v814_v9 = vsel %vm788_vm1, %v2121_v57, %v1717_v51  ;;  %v813_v2 = vsel %vm788_vm1, %v2118_v7, %v1716_v38 }
  0xd9   : > { %v1725_v26 = vpop.permute.xlu0 %1724  ;;  %v1732_v20 = vunpack.i.h.bf16 %v1730_v37  ;;  %v1731_v36 = vunpack.i.l.bf16 %v1730_v37 }
  0xda   : > { %v1727_v32 = vunpack.i.h.bf16 %v1725_v26  ;;  %v1726_v31 = vunpack.i.l.bf16 %v1725_v26 }
  0xdb   : > { %v848_v5 = vsel %vm821_vm2, %v815_v0, %v1731_v36  ;;  %v849_v33 = vsel %vm821_vm2, %v816_v46, %v1732_v20 }
  0xdc   : > { %v1740_v3 = vpop.permute.xlu1 %1739  ;;  %v846_v18 = vsel %vm821_vm2, %v813_v2, %v1726_v31  ;;  %v847_v39 = vsel %vm821_vm2, %v814_v9, %v1727_v32 }
  0xdd   : > { %v1742_v10 = vunpack.i.h.bf16 %v1740_v3  ;;  %v1741_v56 = vunpack.i.l.bf16 %v1740_v3  ;;  %v1735_v19 = vpop.permute.xlu0 %1734 }
  0xde   : > { %v1737_v23 = vunpack.i.h.bf16 %v1735_v19  ;;  %v1736_v15 = vunpack.i.l.bf16 %v1735_v19 }
  0xdf   : > { %v881_v1 = vsel %vm854_vm3, %v848_v5, %v1741_v56  ;;  %v882_v57 = vsel %vm854_vm3, %v849_v33, %v1742_v10 }
  0xe0   : > { %v900_v29 = vpack.c.bf16 %v882_v57, %v881_v1  ;;  %v879_v7 = vsel %vm854_vm3, %v846_v18, %v1736_v15  ;;  %v880_v35 = vsel %vm854_vm3, %v847_v39, %v1737_v23  ;;  %v1750_v12 = vpop.permute.xlu1 %1749 }
  0xe1   : > { %v899_v30 = vpack.c.bf16 %v880_v35, %v879_v7  ;;  %v1752_v28 = vunpack.i.h.bf16 %v1750_v12  ;;  %v1751_v13 = vunpack.i.l.bf16 %v1750_v12  ;;  %v1745_v49 = vpop.permute.xlu0 %1744 }
  0xe2   : > { %v1747_v58 = vunpack.i.h.bf16 %v1745_v49  ;;  %v1746_v4 = vunpack.i.l.bf16 %v1745_v49 }
  0xe3   : > { %1509 = vmatprep.mubr.msk.bf16.mxu1 %vm926_vm4, %v899_v30  ;;  %v819_v62 = vsel %vm788_vm1, %v2158_v47, %v1751_v13  ;;  %v820_v59 = vsel %vm788_vm1, %v2161_v48, %v1752_v28 }
  0xe4   : > { %1510 = vmatmul.mubr.msk.bf16.gmra.mrb[8].mxu1 %vm926_vm4, %v900_v29  ;;  %v663_v60 = vpop.permute.xlu1 %662  ;;  %v818_v17 = vsel %vm788_vm1, %v2151_v44, %v1747_v58  ;;  %v817_v47 = vsel %vm788_vm1, %v2148_v43, %v1746_v4  ;;  %v2344_v43 = vld [vmem:[%s2524_s4] ss:$0 sm:$0xff] }
  0xe5   : > { %v1755_v63 = vpop.permute.xlu0 %1754  ;;  %v852_v11 = vsel %vm821_vm2, %v819_v62, %v663_v60  ;;  %v853_v53 = vsel %vm821_vm2, %v820_v59, %v663_v60 }
  0xe6   : > { %v1757_v6 = vunpack.i.h.bf16 %v1755_v63  ;;  %v1756_v54 = vunpack.i.l.bf16 %v1755_v63 }
  0xe8   : > { %v756_v14 = vpop.permute.xlu1 %755  ;;  %v850_v55 = vsel %vm821_vm2, %v817_v47, %v1756_v54  ;;  %v851_v25 = vsel %vm821_vm2, %v818_v17, %v1757_v6 }
  0xe9   : > { %v1760_v16 = vpop.permute.xlu0 %1759  ;;  %v885_v50 = vsel %vm854_vm3, %v852_v11, %v756_v14  ;;  %v886_v61 = vsel %vm854_vm3, %v853_v53, %v756_v14 }
  0xea   : > { %v1762_v24 = vunpack.i.h.bf16 %v1760_v16  ;;  %v1761_v48 = vunpack.i.l.bf16 %v1760_v16  ;;  %v902_v42 = vpack.c.bf16 %v886_v61, %v885_v50 }
  0xec   : > { %v883_v40 = vsel %vm854_vm3, %v850_v55, %v1761_v48  ;;  %v884_v45 = vsel %vm854_vm3, %v851_v25, %v1762_v24 }
  0xed   : > { %v901_v8 = vpack.c.bf16 %v884_v45, %v883_v40 }
  0xef   : > { %1513 = vmatprep.mubr.msk.bf16.mxu1 %vm926_vm4, %v901_v8 }
  0xf0   : > { %1514 = vmatmul.mubr.msk.bf16.gmra.mrb[12].mxu1 %vm926_vm4, %v902_v42 }
 0x173   : > { %v1487_v44 = vpop.f32.mrb[0].mxu0 }
 0x174   : > { %v1018_v22 = vadd.f32 %v1487_v44, %v2344_v43  ;;  %v1009_v41 = vpop.f32.mrb[1].mxu0 }
 0x175   : > { %v1010_v21 = vadd.f32 %v2344_v43, %v1009_v41  ;;  %v1488_v34 = vpop.f32.mrb[2].mxu0 }
 0x176   : > { %1312 = vst.msk [vmem:[%s2351_s18 + $0x10] sm:$0xff] %vm821_vm2, %v1018_v22  ;;  %v1021_v27 = vadd.f32 %v1488_v34, %v2344_v43  ;;  %v1012_v52 = vpop.f32.mrb[3].mxu0  ;;  %v1207_v38 = vmul.f32 %v1018_v22, %v1018_v22  ;;  %v1139_v32 = vsel %vm821_vm2, %v1018_v22, 0.0 }
 0x177   : > { %v1205_v37 = vmul.f32 %v1010_v21, %v1010_v21  ;;  %1310 = vst.msk [vmem:[%s2351_s18] sm:$0xff] %vm821_vm2, %v1010_v21  ;;  %v1013_v51 = vadd.f32 %v2344_v43, %v1012_v52  ;;  %v1136_v26 = vsel %vm821_vm2, %v1010_v21, 0.0 }
 0x178   : > { %1313 = vst.msk [vmem:[%s2351_s18 + $0x18] sm:$0xff] %vm821_vm2, %v1021_v27  ;;  %v1208_v46 = vmul.f32 %v1021_v27, %v1021_v27  ;;  %v1240_v5 = vsel %vm821_vm2, %v1207_v38, 0.0  ;;  %v1141_v33 = vsel %vm821_vm2, %v1021_v27, 0.0 }
 0x179   : > { %v1137_v20 = vsel %vm821_vm2, %v1013_v51, 0.0  ;;  %v1206_v36 = vmul.f32 %v1013_v51, %v1013_v51  ;;  %1311 = vst.msk [vmem:[%s2351_s18 + $0x8] sm:$0xff] %vm821_vm2, %v1013_v51  ;;  %v1237_v31 = vsel %vm821_vm2, %v1205_v37, 0.0 }
 0x17a   : > { %v1138_v0 = vadd.f32 %v1137_v20, %v1136_v26  ;;  %v1242_v18 = vsel %vm821_vm2, %v1208_v46, 0.0 }
 0x17b   : > { %v1238_v3 = vsel %vm821_vm2, %v1206_v36, 0.0  ;;  %v1491_v9 = vpop.f32.mrb[4].mxu0 }
 0x17c   : > { %v1140_v2 = vadd.f32 %v1139_v32, %v1138_v0  ;;  %v1239_v10 = vadd.f32 %v1238_v3, %v1237_v31  ;;  %v1034_v56 = vadd.f32 %v1491_v9, %v2344_v43  ;;  %v1025_v19 = vpop.f32.mrb[5].mxu0 }
 0x17d   : > { %v1026_v23 = vadd.f32 %v2344_v43, %v1025_v19  ;;  %v1492_v15 = vpop.f32.mrb[6].mxu0 }
 0x17e   : > { %v1241_v39 = vadd.f32 %v1240_v5, %v1239_v10  ;;  %1316 = vst.msk [vmem:[%s2351_s18 + $0x30] sm:$0xff] %vm821_vm2, %v1034_v56  ;;  %v1142_v1 = vadd.f32 %v1141_v33, %v1140_v2  ;;  %v1028_v57 = vpop.f32.mrb[7].mxu0  ;;  %v1037_v35 = vadd.f32 %v1492_v15, %v2344_v43  ;;  %v1211_v60 = vmul.f32 %v1034_v56, %v1034_v56 }
 0x17f   : > { %v1143_v29 = vsel %vm821_vm2, %v1026_v23, 0.0  ;;  %v1209_v7 = vmul.f32 %v1026_v23, %v1026_v23  ;;  %1314 = vst.msk [vmem:[%s2351_s18 + $0x20] sm:$0xff] %vm821_vm2, %v1026_v23  ;;  %v1029_v12 = vadd.f32 %v2344_v43, %v1028_v57  ;;  %v1147_v58 = vsel %vm821_vm2, %v1034_v56, 0.0 }
 0x180   : > { %v1144_v30 = vadd.f32 %v1143_v29, %v1142_v1  ;;  %v1243_v28 = vadd.f32 %v1242_v18, %v1241_v39  ;;  %1317 = vst.msk [vmem:[%s2351_s18 + $0x38] sm:$0xff] %vm821_vm2, %v1037_v35  ;;  %v1212_v4 = vmul.f32 %v1037_v35, %v1037_v35  ;;  %v1149_v11 = vsel %vm821_vm2, %v1037_v35, 0.0 }
 0x181   : > { %v1244_v13 = vsel %vm821_vm2, %v1209_v7, 0.0  ;;  %v1145_v49 = vsel %vm821_vm2, %v1029_v12, 0.0  ;;  %1315 = vst.msk [vmem:[%s2351_s18 + $0x28] sm:$0xff] %vm821_vm2, %v1029_v12  ;;  %v1210_v63 = vmul.f32 %v1029_v12, %v1029_v12  ;;  %v1248_v14 = vsel %vm821_vm2, %v1211_v60, 0.0 }
 0x182   : > { %v1245_v62 = vadd.f32 %v1244_v13, %v1243_v28  ;;  %v1146_v59 = vadd.f32 %v1145_v49, %v1144_v30  ;;  %v1250_v24 = vsel %vm821_vm2, %v1212_v4, 0.0 }
 0x183   : > { %v1246_v54 = vsel %vm821_vm2, %v1210_v63, 0.0 }
 0x184   : > { %v1148_v6 = vadd.f32 %v1147_v58, %v1146_v59  ;;  %v1247_v53 = vadd.f32 %v1246_v54, %v1245_v62 }
 0x186   : > { %v1150_v16 = vadd.f32 %v1149_v11, %v1148_v6  ;;  %v1249_v17 = vadd.f32 %v1248_v14, %v1247_v53 }
 0x187   : > { %v1495_v47 = vpop.f32.mrb[8].mxu0 }
 0x188   : > { %v1050_v48 = vadd.f32 %v1495_v47, %v2344_v43  ;;  %v1041_v55 = vpop.f32.mrb[9].mxu0  ;;  %v1251_v50 = vadd.f32 %v1250_v24, %v1249_v17 }
 0x189   : > { %v1042_v25 = vadd.f32 %v2344_v43, %v1041_v55  ;;  %v1496_v61 = vpop.f32.mrb[10].mxu0 }
 0x18a   : > { %1320 = vst.msk [vmem:[%s2351_s18 + $0x50] sm:$0xff] %vm821_vm2, %v1050_v48  ;;  %v1053_v40 = vadd.f32 %v1496_v61, %v2344_v43  ;;  %v1044_v45 = vpop.f32.mrb[11].mxu0  ;;  %v1215_v41 = vmul.f32 %v1050_v48, %v1050_v48  ;;  %v1155_v51 = vsel %vm821_vm2, %v1050_v48, 0.0 }
 0x18b   : > { %v1151_v8 = vsel %vm821_vm2, %v1042_v25, 0.0  ;;  %v1213_v42 = vmul.f32 %v1042_v25, %v1042_v25  ;;  %1318 = vst.msk [vmem:[%s2351_s18 + $0x40] sm:$0xff] %vm821_vm2, %v1042_v25  ;;  %v1045_v44 = vadd.f32 %v2344_v43, %v1044_v45 }
 0x18c   : > { %v1152_v22 = vadd.f32 %v1151_v8, %v1150_v16  ;;  %1321 = vst.msk [vmem:[%s2351_s18 + $0x58] sm:$0xff] %vm821_vm2, %v1053_v40  ;;  %v1216_v38 = vmul.f32 %v1053_v40, %v1053_v40  ;;  %v1256_v46 = vsel %vm821_vm2, %v1215_v41, 0.0  ;;  %v1157_v0 = vsel %vm821_vm2, %v1053_v40, 0.0 }
 0x18d   : > { %v1252_v21 = vsel %vm821_vm2, %v1213_v42, 0.0  ;;  %v1153_v34 = vsel %vm821_vm2, %v1045_v44, 0.0  ;;  %v1214_v27 = vmul.f32 %v1045_v44, %v1045_v44  ;;  %1319 = vst.msk [vmem:[%s2351_s18 + $0x48] sm:$0xff] %vm821_vm2, %v1045_v44 }
 0x18e   : > { %v1253_v52 = vadd.f32 %v1252_v21, %v1251_v50  ;;  %v1154_v37 = vadd.f32 %v1153_v34, %v1152_v22  ;;  %v1258_v3 = vsel %vm821_vm2, %v1216_v38, 0.0 }
 0x18f   : > { %v1254_v26 = vsel %vm821_vm2, %v1214_v27, 0.0 }
 0x190   : > { %v1156_v20 = vadd.f32 %v1155_v51, %v1154_v37  ;;  %v1255_v36 = vadd.f32 %v1254_v26, %v1253_v52 }
 0x192   : > { %v1257_v32 = vadd.f32 %v1256_v46, %v1255_v36  ;;  %v1158_v31 = vadd.f32 %v1157_v0, %v1156_v20 }
 0x193   : > { %v1499_v9 = vpop.f32.mrb[12].mxu0 }
 0x194   : > { %v1066_v2 = vadd.f32 %v1499_v9, %v2344_v43  ;;  %v1057_v10 = vpop.f32.mrb[13].mxu0  ;;  %v1259_v56 = vadd.f32 %v1258_v3, %v1257_v32 }
 0x195   : > { %v1058_v19 = vadd.f32 %v2344_v43, %v1057_v10  ;;  %v1500_v5 = vpop.f32.mrb[14].mxu0 }
 0x196   : > { %1324 = vst.msk [vmem:[%s2351_s18 + $0x70] sm:$0xff] %vm821_vm2, %v1066_v2  ;;  %v1069_v33 = vadd.f32 %v1500_v5, %v2344_v43  ;;  %v1060_v23 = vpop.f32.mrb[15].mxu0  ;;  %v1219_v57 = vmul.f32 %v1066_v2, %v1066_v2  ;;  %v1163_v28 = vsel %vm821_vm2, %v1066_v2, 0.0 }
 0x197   : > { %v1159_v15 = vsel %vm821_vm2, %v1058_v19, 0.0  ;;  %v1217_v18 = vmul.f32 %v1058_v19, %v1058_v19  ;;  %1322 = vst.msk [vmem:[%s2351_s18 + $0x60] sm:$0xff] %vm821_vm2, %v1058_v19  ;;  %v1061_v39 = vadd.f32 %v2344_v43, %v1060_v23 }
 0x198   : > { %v1160_v1 = vadd.f32 %v1159_v15, %v1158_v31  ;;  %1325 = vst.msk [vmem:[%s2351_s18 + $0x78] sm:$0xff] %vm821_vm2, %v1069_v33  ;;  %v1220_v13 = vmul.f32 %v1069_v33, %v1069_v33  ;;  %v1264_v59 = vsel %vm821_vm2, %v1219_v57, 0.0  ;;  %v1165_v63 = vsel %vm821_vm2, %v1069_v33, 0.0 }
 0x199   : > { %v1260_v29 = vsel %vm821_vm2, %v1217_v18, 0.0  ;;  %v1161_v7 = vsel %vm821_vm2, %v1061_v39, 0.0  ;;  %v1218_v35 = vmul.f32 %v1061_v39, %v1061_v39  ;;  %1323 = vst.msk [vmem:[%s2351_s18 + $0x68] sm:$0xff] %vm821_vm2, %v1061_v39 }
 0x19a   : > { %v1261_v12 = vadd.f32 %v1260_v29, %v1259_v56  ;;  %v1162_v30 = vadd.f32 %v1161_v7, %v1160_v1  ;;  %v1266_v6 = vsel %vm821_vm2, %v1220_v13, 0.0 }
 0x19b   : > { %v1262_v49 = vsel %vm821_vm2, %v1218_v35, 0.0 }
 0x19c   : > { %v1164_v60 = vadd.f32 %v1163_v28, %v1162_v30  ;;  %v1263_v62 = vadd.f32 %v1262_v49, %v1261_v12 }
 0x19e   : > { %v1265_v58 = vadd.f32 %v1264_v59, %v1263_v62  ;;  %v1166_v4 = vadd.f32 %v1165_v63, %v1164_v60 }
 0x19f   : > { %v1503_v54 = vpop.f32.mrb[0].mxu1 }
 0x1a0   : > { %v1082_v11 = vadd.f32 %v1503_v54, %v2344_v43  ;;  %v1073_v53 = vpop.f32.mrb[1].mxu1  ;;  %v1267_v14 = vadd.f32 %v1266_v6, %v1265_v58 }
 0x1a1   : > { %v1074_v16 = vadd.f32 %v2344_v43, %v1073_v53  ;;  %v1504_v17 = vpop.f32.mrb[2].mxu1 }
 0x1a2   : > { %1328 = vst.msk [vmem:[%s2351_s18 + $0x90] sm:$0xff] %vm821_vm2, %v1082_v11  ;;  %v1085_v47 = vadd.f32 %v1504_v17, %v2344_v43  ;;  %v1076_v24 = vpop.f32.mrb[3].mxu1  ;;  %v1223_v61 = vmul.f32 %v1082_v11, %v1082_v11  ;;  %v1171_v22 = vsel %vm821_vm2, %v1082_v11, 0.0 }
 0x1a3   : > { %v1167_v48 = vsel %vm821_vm2, %v1074_v16, 0.0  ;;  %v1221_v55 = vmul.f32 %v1074_v16, %v1074_v16  ;;  %1326 = vst.msk [vmem:[%s2351_s18 + $0x80] sm:$0xff] %vm821_vm2, %v1074_v16  ;;  %v1077_v25 = vadd.f32 %v2344_v43, %v1076_v24 }
 0x1a4   : > { %v1168_v50 = vadd.f32 %v1167_v48, %v1166_v4  ;;  %1329 = vst.msk [vmem:[%s2351_s18 + $0x98] sm:$0xff] %vm821_vm2, %v1085_v47  ;;  %v1224_v41 = vmul.f32 %v1085_v47, %v1085_v47  ;;  %v1272_v52 = vsel %vm821_vm2, %v1223_v61, 0.0  ;;  %v1173_v37 = vsel %vm821_vm2, %v1085_v47, 0.0 }
 0x1a5   : > { %v1268_v40 = vsel %vm821_vm2, %v1221_v55, 0.0  ;;  %v1169_v45 = vsel %vm821_vm2, %v1077_v25, 0.0  ;;  %v1222_v8 = vmul.f32 %v1077_v25, %v1077_v25  ;;  %1327 = vst.msk [vmem:[%s2351_s18 + $0x88] sm:$0xff] %vm821_vm2, %v1077_v25 }
 0x1a6   : > { %v1269_v42 = vadd.f32 %v1268_v40, %v1267_v14  ;;  %v1170_v44 = vadd.f32 %v1169_v45, %v1168_v50  ;;  %v1274_v26 = vsel %vm821_vm2, %v1224_v41, 0.0 }
 0x1a7   : > { %v1270_v21 = vsel %vm821_vm2, %v1222_v8, 0.0 }
 0x1a8   : > { %v1172_v34 = vadd.f32 %v1171_v22, %v1170_v44  ;;  %v1271_v27 = vadd.f32 %v1270_v21, %v1269_v42 }
 0x1aa   : > { %v1273_v51 = vadd.f32 %v1272_v52, %v1271_v27  ;;  %v1174_v38 = vadd.f32 %v1173_v37, %v1172_v34 }
 0x1ab   : > { %v1507_v20 = vpop.f32.mrb[4].mxu1 }
 0x1ac   : > { %v1098_v36 = vadd.f32 %v1507_v20, %v2344_v43  ;;  %v1089_v46 = vpop.f32.mrb[5].mxu1  ;;  %v1275_v0 = vadd.f32 %v1274_v26, %v1273_v51 }
 0x1ad   : > { %v1090_v32 = vadd.f32 %v2344_v43, %v1089_v46  ;;  %v1508_v31 = vpop.f32.mrb[6].mxu1 }
 0x1ae   : > { %1332 = vst.msk [vmem:[%s2351_s18 + $0xb0] sm:$0xff] %vm821_vm2, %v1098_v36  ;;  %v1101_v3 = vadd.f32 %v1508_v31, %v2344_v43  ;;  %v1092_v9 = vpop.f32.mrb[7].mxu1  ;;  %v1227_v5 = vmul.f32 %v1098_v36, %v1098_v36  ;;  %v1179_v1 = vsel %vm821_vm2, %v1098_v36, 0.0 }
 0x1af   : > { %v1175_v2 = vsel %vm821_vm2, %v1090_v32, 0.0  ;;  %v1225_v10 = vmul.f32 %v1090_v32, %v1090_v32  ;;  %1330 = vst.msk [vmem:[%s2351_s18 + $0xa0] sm:$0xff] %vm821_vm2, %v1090_v32  ;;  %v1093_v56 = vadd.f32 %v2344_v43, %v1092_v9 }
 0x1b0   : > { %v1176_v19 = vadd.f32 %v1175_v2, %v1174_v38  ;;  %1333 = vst.msk [vmem:[%s2351_s18 + $0xb8] sm:$0xff] %vm821_vm2, %v1101_v3  ;;  %v1228_v57 = vmul.f32 %v1101_v3, %v1101_v3  ;;  %v1280_v12 = vsel %vm821_vm2, %v1227_v5, 0.0  ;;  %v1181_v30 = vsel %vm821_vm2, %v1101_v3, 0.0 }
 0x1b1   : > { %v1276_v33 = vsel %vm821_vm2, %v1225_v10, 0.0  ;;  %v1177_v23 = vsel %vm821_vm2, %v1093_v56, 0.0  ;;  %v1226_v15 = vmul.f32 %v1093_v56, %v1093_v56  ;;  %1331 = vst.msk [vmem:[%s2351_s18 + $0xa8] sm:$0xff] %vm821_vm2, %v1093_v56 }
 0x1b2   : > { %v1277_v18 = vadd.f32 %v1276_v33, %v1275_v0  ;;  %v1178_v39 = vadd.f32 %v1177_v23, %v1176_v19  ;;  %v1282_v49 = vsel %vm821_vm2, %v1228_v57, 0.0 }
 0x1b3   : > { %v1278_v29 = vsel %vm821_vm2, %v1226_v15, 0.0 }
 0x1b4   : > { %v1180_v7 = vadd.f32 %v1179_v1, %v1178_v39  ;;  %v1279_v35 = vadd.f32 %v1278_v29, %v1277_v18 }
 0x1b6   : > { %v1281_v28 = vadd.f32 %v1280_v12, %v1279_v35  ;;  %v1182_v13 = vadd.f32 %v1181_v30, %v1180_v7 }
 0x1b7   : > { %v1511_v60 = vpop.f32.mrb[8].mxu1 }
 0x1b8   : > { %v1114_v62 = vadd.f32 %v1511_v60, %v2344_v43  ;;  %v1105_v59 = vpop.f32.mrb[9].mxu1  ;;  %v1283_v63 = vadd.f32 %v1282_v49, %v1281_v28 }
 0x1b9   : > { %v1106_v58 = vadd.f32 %v2344_v43, %v1105_v59  ;;  %v1512_v4 = vpop.f32.mrb[10].mxu1 }
 0x1ba   : > { %1336 = vst.msk [vmem:[%s2351_s18 + $0xd0] sm:$0xff] %vm821_vm2, %v1114_v62  ;;  %v1117_v6 = vadd.f32 %v1512_v4, %v2344_v43  ;;  %v1108_v54 = vpop.f32.mrb[11].mxu1  ;;  %v1231_v17 = vmul.f32 %v1114_v62, %v1114_v62  ;;  %v1187_v50 = vsel %vm821_vm2, %v1114_v62, 0.0 }
 0x1bb   : > { %v1183_v11 = vsel %vm821_vm2, %v1106_v58, 0.0  ;;  %v1229_v53 = vmul.f32 %v1106_v58, %v1106_v58  ;;  %1334 = vst.msk [vmem:[%s2351_s18 + $0xc0] sm:$0xff] %vm821_vm2, %v1106_v58  ;;  %v1109_v14 = vadd.f32 %v2344_v43, %v1108_v54 }
 0x1bc   : > { %v1184_v16 = vadd.f32 %v1183_v11, %v1182_v13  ;;  %1337 = vst.msk [vmem:[%s2351_s18 + $0xd8] sm:$0xff] %vm821_vm2, %v1117_v6  ;;  %v1232_v61 = vmul.f32 %v1117_v6, %v1117_v6  ;;  %v1288_v42 = vsel %vm821_vm2, %v1231_v17, 0.0  ;;  %v1189_v44 = vsel %vm821_vm2, %v1117_v6, 0.0 }
 0x1bd   : > { %v1284_v47 = vsel %vm821_vm2, %v1229_v53, 0.0  ;;  %v1185_v24 = vsel %vm821_vm2, %v1109_v14, 0.0  ;;  %v1230_v48 = vmul.f32 %v1109_v14, %v1109_v14  ;;  %1335 = vst.msk [vmem:[%s2351_s18 + $0xc8] sm:$0xff] %vm821_vm2, %v1109_v14 }
 0x1be   : > { %v1285_v55 = vadd.f32 %v1284_v47, %v1283_v63  ;;  %v1186_v25 = vadd.f32 %v1185_v24, %v1184_v16  ;;  %v1290_v21 = vsel %vm821_vm2, %v1232_v61, 0.0 }
 0x1bf   : > { %v1286_v40 = vsel %vm821_vm2, %v1230_v48, 0.0 }
 0x1c0   : > { %v1188_v45 = vadd.f32 %v1187_v50, %v1186_v25  ;;  %v1287_v8 = vadd.f32 %v1286_v40, %v1285_v55 }
 0x1c2   : > { %v1289_v22 = vadd.f32 %v1288_v42, %v1287_v8  ;;  %v1190_v41 = vadd.f32 %v1189_v44, %v1188_v45 }
 0x1c3   : > { %v1515_v34 = vpop.f32.mrb[12].mxu1 }
 0x1c4   : > { %v1130_v27 = vadd.f32 %v1515_v34, %v2344_v43  ;;  %v1121_v52 = vpop.f32.mrb[13].mxu1  ;;  %v1291_v37 = vadd.f32 %v1290_v21, %v1289_v22 }
 0x1c5   : > { %v1122_v51 = vadd.f32 %v2344_v43, %v1121_v52  ;;  %v1516_v38 = vpop.f32.mrb[14].mxu1 }
 0x1c6   : > { %1340 = vst.msk [vmem:[%s2351_s18 + $0xf0] sm:$0xff] %vm821_vm2, %v1130_v27  ;;  %v1133_v26 = vadd.f32 %v1516_v38, %v2344_v43  ;;  %v1124_v20 = vpop.f32.mrb[15].mxu1  ;;  %v1235_v31 = vmul.f32 %v1130_v27, %v1130_v27  ;;  %v1195_v19 = vsel %vm821_vm2, %v1130_v27, 0.0 }
 0x1c7   : > { %v1191_v36 = vsel %vm821_vm2, %v1122_v51, 0.0  ;;  %v1233_v46 = vmul.f32 %v1122_v51, %v1122_v51  ;;  %1338 = vst.msk [vmem:[%s2351_s18 + $0xe0] sm:$0xff] %vm821_vm2, %v1122_v51  ;;  %v1125_v0 = vadd.f32 %v2344_v43, %v1124_v20 }
 0x1c8   : > { %v1192_v32 = vadd.f32 %v1191_v36, %v1190_v41  ;;  %1341 = vst.msk [vmem:[%s2351_s18 + $0xf8] sm:$0xff] %vm821_vm2, %v1133_v26  ;;  %v1236_v5 = vmul.f32 %v1133_v26, %v1133_v26  ;;  %v1296_v15 = vsel %vm821_vm2, %v1235_v31, 0.0  ;;  %v1197_v18 = vsel %vm821_vm2, %v1133_v26, 0.0 }
 0x1c9   : > { %v1292_v3 = vsel %vm821_vm2, %v1233_v46, 0.0  ;;  %v1193_v9 = vsel %vm821_vm2, %v1125_v0, 0.0  ;;  %v1234_v2 = vmul.f32 %v1125_v0, %v1125_v0  ;;  %1339 = vst.msk [vmem:[%s2351_s18 + $0xe8] sm:$0xff] %vm821_vm2, %v1125_v0 }
 0x1ca   : > { %v1293_v10 = vadd.f32 %v1292_v3, %v1291_v37  ;;  %v1194_v56 = vadd.f32 %v1193_v9, %v1192_v32  ;;  %v1298_v57 = vsel %vm821_vm2, %v1236_v5, 0.0 }
 0x1cb   : > { %v1294_v33 = vsel %vm821_vm2, %v1234_v2, 0.0 }
 0x1cc   : > { %v1196_v23 = vadd.f32 %v1195_v19, %v1194_v56  ;;  %v1295_v43 = vadd.f32 %v1294_v33, %v1293_v10 }
 0x1ce   : > { %v1198_v39 = vadd.f32 %v1197_v18, %v1196_v23  ;;  %v1297_v1 = vadd.f32 %v1296_v15, %v1295_v43 }
 0x1d0   : > { %v1199_v29 = vrot.slane %v1198_v39, 4  ;;  %v1299_v7 = vadd.f32 %v1298_v57, %v1297_v1 }
 0x1d2   : > { %v1200_v35 = vadd.f32 %v1199_v29, %v1198_v39  ;;  %v1300_v12 = vrot.slane %v1299_v7, 4 }
 0x1d4   : > { %v1201_v30 = vrot.slane %v1200_v35, 2  ;;  %v1301_v28 = vadd.f32 %v1300_v12, %v1299_v7 }
 0x1d6   : > { %v1202_v13 = vadd.f32 %v1201_v30, %v1200_v35  ;;  %v1302_v49 = vrot.slane %v1301_v28, 2 }
 0x1d8   : > { %v1203_v60 = vrot.slane %v1202_v13, 1  ;;  %v1303_v62 = vadd.f32 %v1302_v49, %v1301_v28 }
 0x1da   : > { %v1304_v59 = vrot.slane %v1303_v62, 1  ;;  %v1204_v63 = vadd.f32 %v1203_v60, %v1202_v13 }
 0x1dc   : > { %v1305_v58 = vadd.f32 %v1304_v59, %v1303_v62 }
 0x1de   : > { %v1307_v4 = vsel %vm1306_vm5, %v1204_v63, %v1305_v58 }
 0x1df   : > { %1309 = vst.msk [vmem:[%s262_s24] sm:$0x3] %vm1308_vm6, %v1307_v4 }
 0x1e0 PF: > { %s17_s21 = sadd.s32 1, %s1771_s21  }
 0x1e1   : > { %p14_p4 = scmp.ge.s32.totalorder %s17_s21, 4  }
 0x1e3   :  { %16 = sbr.rel (!%p14_p4) target bundleno = 1 (0x1), region = 82 }

// kernel: decoder_block_forward.3
= control target key start
LH: loop header
LB: loop body
LE: loop exit
PB: predicated region body
PF: predicated region fallthrough
CT: control target
= control target key end

     0   :  { %s3339_s15 = smov 0   ;;  %s4512_s0 = inlined_call_operand.vmem [shape: f32[2,18,18,4], index: 0, kind: input, shape index: {}]   ;;  %s4513_s1 = inlined_call_operand.vmem [shape: bf16[36,8], index: 1, kind: input, shape index: {}]   ;;  %s4514_s2 = inlined_call_operand.vmem [shape: f32[1,8], index: 2, kind: input, shape index: {}]   ;;  %s4515_s3 = inlined_call_operand.vmem [shape: f32[2,16,16,8], index: 3, kind: output, shape index: {0}]   ;;  %s4516_s4 = inlined_call_operand.vmem [shape: f32[2,2,8], index: 4, kind: output, shape index: {1}]  }
   0x1 LB: > { %s2337_s16 = sadd.s32 4294967295, %s3304_s15   ;;  %p2341_p0 = scmp.ge.s32.totalorder %s3304_s15, 1  ;;  %s3304_s15 = sphi %s3339_s15, %s15_s15  }
   0x2   : > { %p165_p1 = scmp.lt.s32.totalorder %s3304_s15, 3 }
   0x4   : > { %p166_p2 = pnand %p2341_p0, %p165_p1 }
   0x6   : > { %169 = sbr.rel (%p166_p2) target bundleno = 636 (0x27c), region = 32 }
   0xd   : > { %p195_p3 = scmp.lt.s32.totalorder %s2337_s16, 1  ;;  %s3306_s21 = smov 4   ;;  %vm1880_vm0 = vcmask 1041408   ;;  %vm1524_vm1 = vcmask 31744   ;;  %vm1557_vm2 = vcmask 64512   ;;  %vm1590_vm3 = vcmask 97280  }
   0xe   : > { %s3307_s22 = smov 8   ;;  %s3308_s23 = smov 12   ;;  %vm1623_vm4 = vcmask 130048   ;;  %vm1656_vm5 = vcmask 162816   ;;  %vm1689_vm6 = vcmask 195584   ;;  %vm1722_vm7 = vcmask 228352  }
   0xf   : > { %s4571_s16 = smov (!%p195_p3, %s2337_s16), 1  ;;  %s3309_s26 = smov 16   ;;  %vm1755_vm8 = vcmask 261120   ;;  %vm1831_vm9 = vcmask 293888   ;;  %vm2215_vm10 = vcmask 1040384   ;;  %vm2217_vm11 = vcmask 58368  }
  0x10   : > { %s2626_s17 = smul.u32 432, %s4571_s16  ;;  %s3310_s29 = smov 20  }
  0x11   : > { %s3311_s6 = smov 24   ;;  %s3312_s7 = smov 28  }
  0x12   : > { %s3353_s20 = scalar_lea.vmem %s4512_s0, %s2626_s17  ;;  %s3313_s8 = smov 32  }
  0x13   : > { %v246_v0 = vld [vmem:[%s3353_s20 + $0x31] sm:$0xff]  ;;  %v247_v1 = vld [vmem:[%s3353_s20 + $0x39] sm:$0xff]  ;;  %v242_v2 = vld [vmem:[%s3353_s20 + $0x1] sm:$0xff]  ;;  %s2560_s9 = sshll.u32 %s4571_s16, 8  ;;  %s2345_s17 = sshll.u32 %s4571_s16, 1 }
  0x14   : > { %v3358_v3 = vpack.i.bf16 %v247_v1, %v246_v0  ;;  %v243_v4 = vld [vmem:[%s3353_s20 + $0x9] sm:$0xff]  ;;  %v249_v6 = vld [vmem:[%s3353_s20 + $0x51] sm:$0xff]  ;;  %v244_v8 = vld [vmem:[%s3353_s20 + $0x19] sm:$0xff]  ;;  %s4343_s14 = scalar_lea.vmem %s4515_s3, %s2560_s9 }
  0x15   : > { %v248_v5 = vld [vmem:[%s3353_s20 + $0x49] sm:$0xff]  ;;  %v2643_v7 = vpack.i.bf16 %v243_v4, %v242_v2  ;;  %v245_v9 = vld [vmem:[%s3353_s20 + $0x21] sm:$0xff]  ;;  %v252_v12 = vld [vmem:[%s3353_s20 + $0x79] sm:$0xff] }
  0x16   : > { %2654 = vrot.lane.b32.xlu1 %v3358_v3, %s3306_s21  ;;  %v3367_v10 = vpack.i.bf16 %v249_v6, %v248_v5  ;;  %v3370_v11 = vpack.i.bf16 %v245_v9, %v244_v8  ;;  %v253_v13 = vld [vmem:[%s3353_s20 + $0x81] sm:$0xff]  ;;  %v251_v15 = vld [vmem:[%s3353_s20 + $0x69] sm:$0xff]  ;;  %v257_v19 = vld [vmem:[%s3353_s20 + $0xb1] sm:$0xff] }
  0x17   : > { %2644 = vrot.lane.b32.xlu0 %v2643_v7, %s3306_s21  ;;  %v250_v14 = vld [vmem:[%s3353_s20 + $0x61] sm:$0xff]  ;;  %v3378_v16 = vpack.i.bf16 %v253_v13, %v252_v12  ;;  %v256_v18 = vld [vmem:[%s3353_s20 + $0xa9] sm:$0xff]  ;;  %v254_v20 = vld [vmem:[%s3353_s20 + $0x91] sm:$0xff] }
  0x18   : > { %v3382_v17 = vpack.i.bf16 %v251_v15, %v250_v14  ;;  %v255_v21 = vld [vmem:[%s3353_s20 + $0x99] sm:$0xff]  ;;  %v3390_v22 = vpack.i.bf16 %v257_v19, %v256_v18  ;;  %v261_v25 = vld [vmem:[%s3353_s20 + $0xe1] sm:$0xff]  ;;  %v259_v27 = vld [vmem:[%s3353_s20 + $0xc9] sm:$0xff] }
  0x19   : > { %v3394_v23 = vpack.i.bf16 %v255_v21, %v254_v20  ;;  %v260_v24 = vld [vmem:[%s3353_s20 + $0xd9] sm:$0xff]  ;;  %v258_v26 = vld [vmem:[%s3353_s20 + $0xc1] sm:$0xff]  ;;  %v264_v30 = vld [vmem:[%s3353_s20 + $0x109] sm:$0xff] }
  0x1a   : > { %2659 = vrot.lane.b32.xlu1 %v3367_v10, %s3306_s21  ;;  %v3402_v28 = vpack.i.bf16 %v261_v25, %v260_v24  ;;  %v3406_v29 = vpack.i.bf16 %v259_v27, %v258_v26  ;;  %v265_v31 = vld [vmem:[%s3353_s20 + $0x111] sm:$0xff]  ;;  %v263_v33 = vld [vmem:[%s3353_s20 + $0xf9] sm:$0xff]  ;;  %v269_v37 = vld [vmem:[%s3353_s20 + $0x141] sm:$0xff] }
  0x1b   : > { %2649 = vrot.lane.b32.xlu0 %v3370_v11, %s3306_s21  ;;  %v262_v32 = vld [vmem:[%s3353_s20 + $0xf1] sm:$0xff]  ;;  %v2698_v34 = vpack.i.bf16 %v265_v31, %v264_v30  ;;  %v268_v36 = vld [vmem:[%s3353_s20 + $0x139] sm:$0xff]  ;;  %v266_v38 = vld [vmem:[%s3353_s20 + $0x121] sm:$0xff] }
  0x1c   : > { %v3416_v35 = vpack.i.bf16 %v263_v33, %v262_v32  ;;  %v267_v39 = vld [vmem:[%s3353_s20 + $0x129] sm:$0xff]  ;;  %v2708_v40 = vpack.i.bf16 %v269_v37, %v268_v36  ;;  %v273_v43 = vld [vmem:[%s3353_s20 + $0x171] sm:$0xff]  ;;  %v271_v45 = vld [vmem:[%s3353_s20 + $0x159] sm:$0xff] }
  0x1d   : > { %v2703_v41 = vpack.i.bf16 %v267_v39, %v266_v38  ;;  %v272_v42 = vld [vmem:[%s3353_s20 + $0x169] sm:$0xff]  ;;  %v270_v44 = vld [vmem:[%s3353_s20 + $0x151] sm:$0xff]  ;;  %v276_v48 = vld [vmem:[%s3353_s20 + $0x1a] sm:$0xff] }
  0x1e   : > { %2669 = vrot.lane.b32.xlu1 %v3378_v16, %s3306_s21  ;;  %v2718_v46 = vpack.i.bf16 %v273_v43, %v272_v42  ;;  %v2713_v47 = vpack.i.bf16 %v271_v45, %v270_v44  ;;  %v277_v49 = vld [vmem:[%s3353_s20 + $0x22] sm:$0xff]  ;;  %v275_v51 = vld [vmem:[%s3353_s20 + $0xa] sm:$0xff]  ;;  %v281_v55 = vld [vmem:[%s3353_s20 + $0x52] sm:$0xff] }
  0x1f   : > { %2664 = vrot.lane.b32.xlu0 %v3382_v17, %s3306_s21  ;;  %v274_v50 = vld [vmem:[%s3353_s20 + $0x2] sm:$0xff]  ;;  %v3436_v52 = vpack.i.bf16 %v277_v49, %v276_v48  ;;  %v280_v54 = vld [vmem:[%s3353_s20 + $0x4a] sm:$0xff]  ;;  %v278_v56 = vld [vmem:[%s3353_s20 + $0x32] sm:$0xff] }
  0x20   : > { %v2723_v53 = vpack.i.bf16 %v275_v51, %v274_v50  ;;  %v279_v57 = vld [vmem:[%s3353_s20 + $0x3a] sm:$0xff]  ;;  %v3445_v58 = vpack.i.bf16 %v281_v55, %v280_v54  ;;  %v285_v61 = vld [vmem:[%s3353_s20 + $0x82] sm:$0xff]  ;;  %v283_v63 = vld [vmem:[%s3353_s20 + $0x6a] sm:$0xff] }
  0x21   : > { %v3448_v59 = vpack.i.bf16 %v279_v57, %v278_v56  ;;  %v284_v60 = vld [vmem:[%s3353_s20 + $0x7a] sm:$0xff]  ;;  %v282_v62 = vld [vmem:[%s3353_s20 + $0x62] sm:$0xff]  ;;  %v288_v2 = vld [vmem:[%s3353_s20 + $0xaa] sm:$0xff] }
  0x22   : > { %2679 = vrot.lane.b32.xlu1 %v3390_v22, %s3306_s21  ;;  %v3456_v0 = vpack.i.bf16 %v285_v61, %v284_v60  ;;  %v3460_v1 = vpack.i.bf16 %v283_v63, %v282_v62  ;;  %v289_v4 = vld [vmem:[%s3353_s20 + $0xb2] sm:$0xff]  ;;  %v287_v6 = vld [vmem:[%s3353_s20 + $0x9a] sm:$0xff]  ;;  %v293_v12 = vld [vmem:[%s3353_s20 + $0xe2] sm:$0xff] }
  0x23   : > { %2674 = vrot.lane.b32.xlu0 %v3394_v23, %s3306_s21  ;;  %v286_v5 = vld [vmem:[%s3353_s20 + $0x92] sm:$0xff]  ;;  %v3468_v7 = vpack.i.bf16 %v289_v4, %v288_v2  ;;  %v292_v9 = vld [vmem:[%s3353_s20 + $0xda] sm:$0xff]  ;;  %v290_v13 = vld [vmem:[%s3353_s20 + $0xc2] sm:$0xff] }
  0x24   : > { %v3472_v8 = vpack.i.bf16 %v287_v6, %v286_v5  ;;  %v291_v14 = vld [vmem:[%s3353_s20 + $0xca] sm:$0xff]  ;;  %v3480_v15 = vpack.i.bf16 %v293_v12, %v292_v9  ;;  %v297_v20 = vld [vmem:[%s3353_s20 + $0x112] sm:$0xff]  ;;  %v295_v24 = vld [vmem:[%s3353_s20 + $0xfa] sm:$0xff] }
  0x25   : > { %v3484_v18 = vpack.i.bf16 %v291_v14, %v290_v13  ;;  %v296_v19 = vld [vmem:[%s3353_s20 + $0x10a] sm:$0xff]  ;;  %v294_v21 = vld [vmem:[%s3353_s20 + $0xf2] sm:$0xff]  ;;  %v300_v27 = vld [vmem:[%s3353_s20 + $0x13a] sm:$0xff] }
  0x26   : > { %2689 = vrot.lane.b32.xlu1 %v3402_v28, %s3306_s21  ;;  %v3492_v25 = vpack.i.bf16 %v297_v20, %v296_v19  ;;  %v3496_v26 = vpack.i.bf16 %v295_v24, %v294_v21  ;;  %v301_v30 = vld [vmem:[%s3353_s20 + $0x142] sm:$0xff]  ;;  %v299_v32 = vld [vmem:[%s3353_s20 + $0x12a] sm:$0xff]  ;;  %v305_v37 = vld [vmem:[%s3353_s20 + $0x172] sm:$0xff] }
  0x27   : > { %2684 = vrot.lane.b32.xlu0 %v3406_v29, %s3306_s21  ;;  %v298_v31 = vld [vmem:[%s3353_s20 + $0x122] sm:$0xff]  ;;  %v2788_v33 = vpack.i.bf16 %v301_v30, %v300_v27  ;;  %v304_v36 = vld [vmem:[%s3353_s20 + $0x16a] sm:$0xff]  ;;  %v302_v38 = vld [vmem:[%s3353_s20 + $0x152] sm:$0xff] }
  0x28   : > { %v303_v39 = vld [vmem:[%s3353_s20 + $0x15a] sm:$0xff]  ;;  %v3516_v42 = vld [vmem:[%s3353_s20 + $0x30] sm:$0xff]  ;;  %v3537_v49 = vld [vmem:[%s3353_s20 + $0x68] sm:$0xff] }
  0x29   : > { %v3519_v43 = vld [vmem:[%s3353_s20 + $0x38] sm:$0xff]  ;;  %v3525_v45 = vld [vmem:[%s3353_s20 + $0x20] sm:$0xff]  ;;  %v3540_v50 = vld [vmem:[%s3353_s20 + $0x48] sm:$0xff] }
  0x2a   : > { %2699 = vrot.lane.b32.xlu1 %v2698_v34, %s3306_s21  ;;  %v3506_v34 = vpack.i.bf16 %v299_v32, %v298_v31  ;;  %v3522_v44 = vld [vmem:[%s3353_s20 + $0x18] sm:$0xff]  ;;  %v3534_v48 = vld [vmem:[%s3353_s20 + $0x60] sm:$0xff]  ;;  %v3543_v51 = vld [vmem:[%s3353_s20 + $0x50] sm:$0xff] }
  0x2b   : > { %2694 = vrot.lane.b32.xlu0 %v3416_v35, %s3306_s21  ;;  %v2813_v54 = vpack.i.bf16 %v3543_v51, %v3540_v50  ;;  %v2356_v55 = vld [vmem:[%s3353_s20 + $0x90] sm:$0xff]  ;;  %v2357_v56 = vld [vmem:[%s3353_s20 + $0x98] sm:$0xff]  ;;  %v3557_v60 = vld [vmem:[%s3353_s20 + $0x80] sm:$0xff] }
  0x2c   : > { %v3554_v57 = vld [vmem:[%s3353_s20 + $0x78] sm:$0xff]  ;;  %v2828_v61 = vpack.i.bf16 %v2357_v56, %v2356_v55  ;;  %v3283_v63 = vld [vmem:[%s4513_s1] sm:$0xff]   ;;  %v3284_v2 = vld [vmem:[%s4513_s1 + $0x8] sm:$0xff]  }
  0x2d   : > { %v2823_v62 = vpack.i.bf16 %v3557_v60, %v3554_v57  ;;  %2580 = vmatprep.subr.bf16.mxu0 %v3283_v63  ;;  %2618 = vmatprep.subr.bf16.mxu1 %v3283_v63  ;;  %v3285_v4 = vld [vmem:[%s4513_s1 + $0x10] ss:$0 sps:$4 sm:$0x33]   ;;  %v226_v12 = vld [vmem:[%s3353_s20 + $0xc0] sm:$0xff]  ;;  %v3679_v31 = vld [vmem:[%s3353_s20 + $0xd8] sm:$0xff] }
  0x2e   : > { %2709 = vrot.lane.b32.xlu1 %v2708_v40, %s3306_s21  ;;  %v2798_v40 = vpack.i.bf16 %v305_v37, %v304_v36  ;;  %2581 = vmatpush3.bf16.msra.mxu0 %v3283_v63  ;;  %v1882_v5 = vsel %vm1880_vm0, %v3285_v4, 0  ;;  %v3676_v30 = vld [vmem:[%s3353_s20 + $0x170] sm:$0xff]  ;;  %4539 = vst [vmem:[#allocation9_spill] sm:$0xff] %v3679_v31  ;;  %v3682_v32 = vld [vmem:[%s3353_s20 + $0xe0] sm:$0xff] }
  0x2f   : > { %2704 = vrot.lane.b32.xlu0 %v2703_v41, %s3306_s21  ;;  %v2793_v41 = vpack.i.bf16 %v303_v39, %v302_v38  ;;  %2621 = vmatpush3.bf16.msra.mxu1 %v3283_v63  ;;  %4540 = vst [vmem:[#allocation10_spill] sm:$0xff] %v3682_v32 }
  0x30   : > { %2582 = vmatprep.subr.bf16.mxu0 %v3284_v2  ;;  %2619 = vmatprep.subr.bf16.mxu1 %v3284_v2 }
  0x32   : > { %2719 = vrot.lane.b32.xlu1 %v2718_v46, %s3306_s21  ;;  %v2808_v46 = vpack.i.bf16 %v3519_v43, %v3516_v42  ;;  %2583 = vmatpush3.bf16.msra.mxu0 %v3284_v2 }
  0x33   : > { %2714 = vrot.lane.b32.xlu0 %v2713_v47, %s3306_s21  ;;  %v2803_v47 = vpack.i.bf16 %v3525_v45, %v3522_v44  ;;  %2622 = vmatpush3.bf16.msra.mxu1 %v3284_v2  ;;  %v232_v2 = vld [vmem:[%s3353_s20 + $0x108] sm:$0xff] }
  0x34   : > { %2624 = vmatprep.subr.msk.bf16.mxu0 %vm1880_vm0, %v3285_v4  ;;  %2625 = vmatprep.subr.msk.bf16.mxu1 %vm1880_vm0, %v3285_v4  ;;  %v233_v4 = vld [vmem:[%s3353_s20 + $0x110] sm:$0xff] }
  0x36   : > { %2729 = vrot.lane.b32.xlu1 %v3436_v52, %s3307_s22  ;;  %2585 = vmatpush3.bf16.msra.mxu0 %v1882_v5 }
  0x37   : > { %2724 = vrot.lane.b32.xlu0 %v2723_v53, %s3307_s22  ;;  %v2818_v53 = vpack.i.bf16 %v3537_v49, %v3534_v48  ;;  %2623 = vmatpush3.bf16.msra.mxu1 %v1882_v5 }
  0x3a   : > { %2739 = vrot.lane.b32.xlu1 %v3445_v58, %s3307_s22 }
  0x3b   : > { %2734 = vrot.lane.b32.xlu0 %v3448_v59, %s3307_s22 }
  0x3e   : > { %2749 = vrot.lane.b32.xlu1 %v3456_v0, %s3307_s22 }
  0x3f   : > { %2744 = vrot.lane.b32.xlu0 %v3460_v1, %s3307_s22 }
  0x42   : > { %2759 = vrot.lane.b32.xlu1 %v3468_v7, %s3307_s22 }
  0x43   : > { %2754 = vrot.lane.b32.xlu0 %v3472_v8, %s3307_s22 }
  0x46   : > { %2769 = vrot.lane.b32.xlu1 %v3480_v15, %s3307_s22 }
  0x47   : > { %2764 = vrot.lane.b32.xlu0 %v3484_v18, %s3307_s22 }
  0x4a   : > { %2779 = vrot.lane.b32.xlu1 %v3492_v25, %s3307_s22 }
  0x4b   : > { %2774 = vrot.lane.b32.xlu0 %v3496_v26, %s3307_s22 }
  0x4e   : > { %2789 = vrot.lane.b32.xlu1 %v2788_v33, %s3307_s22 }
  0x4f   : > { %2784 = vrot.lane.b32.xlu0 %v3506_v34, %s3307_s22 }
  0x52   : > { %2799 = vrot.lane.b32.xlu1 %v2798_v40, %s3307_s22 }
  0x53   : > { %2794 = vrot.lane.b32.xlu0 %v2793_v41, %s3307_s22 }
  0x56   : > { %2809 = vrot.lane.b32.xlu1 %v2808_v46, %s3308_s23 }
  0x57   : > { %2804 = vrot.lane.b32.xlu0 %v2803_v47, %s3308_s23 }
  0x5a   : > { %2819 = vrot.lane.b32.xlu1 %v2818_v53, %s3308_s23 }
  0x5b   : > { %2814 = vrot.lane.b32.xlu0 %v2813_v54, %s3308_s23 }
  0x5e   : > { %2829 = vrot.lane.b32.xlu1 %v2828_v61, %s3308_s23 }
  0x5f   : > { %2824 = vrot.lane.b32.xlu0 %v2823_v62, %s3308_s23 }
  0x62   : > { %2839 = vrot.lane.b32.xlu1 %v3358_v3, %s3309_s26 }
  0x63   : > { %2834 = vrot.lane.b32.xlu0 %v3370_v11, %s3309_s26  ;;  %v3619_v11 = vld [vmem:[%s3353_s20 + $0xa8] sm:$0xff] }
  0x66   : > { %2849 = vrot.lane.b32.xlu1 %v3448_v59, %s3310_s29 }
  0x67   : > { %2844 = vrot.lane.b32.xlu0 %v3436_v52, %s3310_s29 }
  0x6a   : > { %2859 = vrot.lane.b32.xlu1 %v2813_v54, %s3311_s6  ;;  %v231_v54 = vld [vmem:[%s3353_s20 + $0xf8] sm:$0xff] }
  0x6b   : > { %2854 = vrot.lane.b32.xlu0 %v2808_v46, %s3311_s6 }
  0x6e   : > { %2869 = vrot.lane.b32.xlu1 %v3367_v10, %s3312_s7 }
  0x6f   : > { %2864 = vrot.lane.b32.xlu0 %v3358_v3, %s3312_s7 }
  0x72   : > { %2879 = vrot.lane.b32.xlu1 %v3445_v58, %s3313_s8 }
  0x73   : > { %2874 = vrot.lane.b32.xlu0 %v3448_v59, %s3313_s8 }
  0x76   : > { %2889 = vrot.lane.b32.xlu1 %v3382_v17, %s3309_s26 }
  0x77   : > { %2884 = vrot.lane.b32.xlu0 %v3367_v10, %s3309_s26 }
  0x7a   : > { %2899 = vrot.lane.b32.xlu1 %v3460_v1, %s3310_s29 }
  0x7b   : > { %2894 = vrot.lane.b32.xlu0 %v3445_v58, %s3310_s29 }
  0x7e   : > { %2909 = vrot.lane.b32.xlu1 %v2823_v62, %s3311_s6 }
  0x7f   : > { %2904 = vrot.lane.b32.xlu0 %v2818_v53, %s3311_s6 }
  0x82   : > { %2919 = vrot.lane.b32.xlu1 %v3378_v16, %s3312_s7 }
  0x83   : > { %2914 = vrot.lane.b32.xlu0 %v3382_v17, %s3312_s7  ;;  %v3622_v17 = vld [vmem:[%s3353_s20 + $0xb0] sm:$0xff] }
  0x84   : > { %4532 = vst [vmem:[#allocation2_spill] sm:$0xff] %v3622_v17  ;;  %v2958_v59 = vpack.i.bf16 %v3622_v17, %v3619_v11 }
  0x86   : > { %2929 = vrot.lane.b32.xlu1 %v3456_v0, %s3313_s8 }
  0x87   : > { %2924 = vrot.lane.b32.xlu0 %v3460_v1, %s3313_s8 }
  0x88   : > { %v3610_v3 = vpop.permute.xlu1 %2654 }
  0x89   : > { %v3612_v10 = vpop.permute.xlu0 %2644 }
  0x8a   : > { %2939 = vrot.lane.b32.xlu1 %v3394_v23, %s3309_s26 }
  0x8b   : > { %2934 = vrot.lane.b32.xlu0 %v3378_v16, %s3309_s26 }
  0x8c   : > { %v3624_v52 = vpop.permute.xlu1 %2659 }
  0x8d   : > { %v3626_v58 = vpop.permute.xlu0 %2649 }
  0x8e   : > { %2949 = vrot.lane.b32.xlu1 %v3472_v8, %s3310_s29 }
  0x8f   : > { %2944 = vrot.lane.b32.xlu0 %v3456_v0, %s3310_s29  ;;  %v227_v0 = vld [vmem:[%s3353_s20 + $0xc8] sm:$0xff] }
  0x90   : > { %v3634_v16 = vpop.permute.xlu1 %2669  ;;  %v2988_v19 = vpack.i.bf16 %v227_v0, %v226_v12  ;;  %v2492_v12 = vld [vmem:[%s3353_s20 + $0x109] sm:$0xff] }
  0x91   : > { %v3636_v1 = vpop.permute.xlu0 %2664 }
  0x92   : > { %2959 = vrot.lane.b32.xlu1 %v2958_v59, %s3311_s6 }
  0x93   : > { %2954 = vrot.lane.b32.xlu0 %v2828_v61, %s3311_s6 }
  0x94   : > { %v3640_v6 = vpop.permute.xlu1 %2679 }
  0x95   : > { %v3642_v9 = vpop.permute.xlu0 %2674 }
  0x96   : > { %2969 = vrot.lane.b32.xlu1 %v3390_v22, %s3312_s7 }
  0x97   : > { %2964 = vrot.lane.b32.xlu0 %v3394_v23, %s3312_s7 }
  0x98   : > { %v3650_v13 = vpop.permute.xlu1 %2689 }
  0x99   : > { %4533 = vst [vmem:[#allocation3_spill] sm:$0xff] %v3650_v13  ;;  %v3652_v14 = vpop.permute.xlu0 %2684 }
  0x9a   : > { %4534 = vst [vmem:[#allocation4_spill] sm:$0xff] %v3652_v14  ;;  %2979 = vrot.lane.b32.xlu1 %v3468_v7, %s3313_s8 }
  0x9b   : > { %2974 = vrot.lane.b32.xlu0 %v3472_v8, %s3313_s8  ;;  %v3673_v8 = vld [vmem:[%s3353_s20 + $0x168] sm:$0xff] }
  0x9c   : > { %v3658_v20 = vpop.permute.xlu1 %2699 }
  0x9d   : > { %4535 = vst [vmem:[#allocation5_spill] sm:$0xff] %v3658_v20  ;;  %v3660_v23 = vpop.permute.xlu0 %2694 }
  0x9e   : > { %4536 = vst [vmem:[#allocation6_spill] sm:$0xff] %v3660_v23  ;;  %2989 = vrot.lane.b32.xlu1 %v2988_v19, %s3308_s23  ;;  %v2404_v23 = vld [vmem:[%s3353_s20 + $0x151] sm:$0xff] }
  0x9f   : > { %2984 = vrot.lane.b32.xlu0 %v2958_v59, %s3308_s23  ;;  %v3078_v59 = vpack.i.bf16 %v233_v4, %v232_v2  ;;  %v3756_v2 = vld [vmem:[%s3353_s20 + $0x158] sm:$0xff] }
  0xa0   : > { %v3664_v21 = vpop.permute.xlu1 %2709 }
  0xa1   : > { %4537 = vst [vmem:[#allocation7_spill] sm:$0xff] %v3664_v21  ;;  %v3666_v24 = vpop.permute.xlu0 %2704 }
  0xa2   : > { %4538 = vst [vmem:[#allocation8_spill] sm:$0xff] %v3666_v24  ;;  %2999 = vrot.lane.b32.xlu1 %v3406_v29, %s3309_s26 }
  0xa3   : > { %2994 = vrot.lane.b32.xlu0 %v3390_v22, %s3309_s26  ;;  %v3018_v22 = vpack.i.bf16 %v3682_v32, %v3679_v31 }
  0xa4   : > { %v2720_v27 = vpop.permute.xlu1 %2719 }
  0xa5   : > { %v2722_v33 = vunpack.i.h.bf16 %v2720_v27  ;;  %v2721_v36 = vunpack.i.l.bf16 %v2720_v27  ;;  %v2715_v37 = vpop.permute.xlu0 %2714 }
  0xa6   : > { %3009 = vrot.lane.b32.xlu1 %v3484_v18, %s3310_s29 }
  0xa7   : > { %v1555_v38 = vsel %vm1524_vm1, %v3673_v8, %v2721_v36  ;;  %v1556_v39 = vsel %vm1524_vm1, %v3676_v30, %v2722_v33  ;;  %3004 = vrot.lane.b32.xlu0 %v3468_v7, %s3310_s29  ;;  %v230_v7 = vld [vmem:[%s3353_s20 + $0xf0] sm:$0xff]  ;;  %v2717_v36 = vunpack.i.h.bf16 %v2715_v37 }
  0xa8   : > { %v3694_v40 = vpop.permute.xlu1 %2729  ;;  %v3048_v56 = vpack.i.bf16 %v231_v54, %v230_v7  ;;  %v3753_v54 = vld [vmem:[%s3353_s20 + $0x150] sm:$0xff] }
  0xa9   : > { %v3696_v41 = vpop.permute.xlu0 %2724  ;;  %v2732_v20 = vunpack.i.h.bf16 %v3694_v40  ;;  %v2731_v32 = vunpack.i.l.bf16 %v3694_v40  ;;  %v3850_v40 = vpack.i.bf16 %v3756_v2, %v3753_v54 }
  0xaa   : > { %3019 = vrot.lane.b32.xlu1 %v3018_v22, %s3311_s6 }
  0xab   : > { %3014 = vrot.lane.b32.xlu0 %v2988_v19, %s3311_s6  ;;  %v2491_v19 = vld [vmem:[%s3353_s20 + $0xf9] sm:$0xff] }
  0xac   : > { %v3700_v46 = vpop.permute.xlu1 %2739 }
  0xad   : > { %v3702_v47 = vpop.permute.xlu0 %2734 }
  0xae   : > { %3029 = vrot.lane.b32.xlu1 %v3402_v28, %s3312_s7 }
  0xaf   : > { %3024 = vrot.lane.b32.xlu0 %v3406_v29, %s3312_s7 }
  0xb0   : > { %v3708_v53 = vpop.permute.xlu1 %2749 }
  0xb1   : > { %v3712_v55 = vpop.permute.xlu0 %2744 }
  0xb2   : > { %3039 = vrot.lane.b32.xlu1 %v3480_v15, %s3313_s8 }
  0xb3   : > { %3034 = vrot.lane.b32.xlu0 %v3484_v18, %s3313_s8 }
  0xb4   : > { %v3718_v61 = vpop.permute.xlu1 %2759 }
  0xb5   : > { %v3720_v29 = vpop.permute.xlu0 %2754 }
  0xb6   : > { %3049 = vrot.lane.b32.xlu1 %v3048_v56, %s3308_s23 }
  0xb7   : > { %3044 = vrot.lane.b32.xlu0 %v3018_v22, %s3308_s23  ;;  %v2716_v22 = vunpack.i.l.bf16 %v2715_v37 }
  0xb8   : > { %v3724_v62 = vpop.permute.xlu1 %2769 }
  0xb9   : > { %4541 = vst [vmem:[#allocation11_spill] sm:$0xff] %v3724_v62  ;;  %v3726_v63 = vpop.permute.xlu0 %2764  ;;  %v1553_v37 = vsel %vm1524_vm1, %v3753_v54, %v2716_v22  ;;  %v234_v22 = vld [vmem:[%s3353_s20 + $0x120] sm:$0xff]  ;;  %v211_v62 = vld [vmem:[%s3353_s20 + $0x8] sm:$0xff] }
  0xba   : > { %4542 = vst [vmem:[#allocation12_spill] sm:$0xff] %v3726_v63  ;;  %3059 = vrot.lane.b32.xlu1 %v3416_v35, %s3309_s26  ;;  %v2493_v35 = vld [vmem:[%s3353_s20 + $0x111] sm:$0xff]  ;;  %v210_v63 = vld [vmem:[%s3353_s20] sm:$0xff] }
  0xbb   : > { %3054 = vrot.lane.b32.xlu0 %v3402_v28, %s3309_s26  ;;  %v2490_v28 = vld [vmem:[%s3353_s20 + $0xf1] sm:$0xff]  ;;  %v3088_v33 = vpack.i.bf16 %v2493_v35, %v2492_v12 }
  0xbc   : > { %v3732_v18 = vpop.permute.xlu1 %2779  ;;  %v3083_v7 = vpack.i.bf16 %v2491_v19, %v2490_v28 }
  0xbd   : > { %4543 = vst [vmem:[#allocation13_spill] sm:$0xff] %v3732_v18  ;;  %v3736_v5 = vpop.permute.xlu0 %2774 }
  0xbe   : > { %4544 = vst [vmem:[#allocation14_spill] sm:$0xff] %v3736_v5  ;;  %3069 = vrot.lane.b32.xlu1 %v3496_v26, %s3310_s29  ;;  %v2651_v5 = vunpack.i.l.bf16 %v3626_v58 }
  0xbf   : > { %3064 = vrot.lane.b32.xlu0 %v3480_v15, %s3310_s29 }
  0xc0   : > { %v3744_v0 = vpop.permute.xlu1 %2789 }
  0xc1   : > { %4545 = vst [vmem:[#allocation15_spill] sm:$0xff] %v3744_v0  ;;  %v3748_v27 = vpop.permute.xlu0 %2784 }
  0xc2   : > { %4546 = vst [vmem:[#allocation16_spill] sm:$0xff] %v3748_v27  ;;  %3079 = vrot.lane.b32.xlu1 %v3078_v59, %s3311_s6 }
  0xc3   : > { %3074 = vrot.lane.b32.xlu0 %v3048_v56, %s3311_s6  ;;  %v1554_v56 = vsel %vm1524_vm1, %v3756_v2, %v2717_v36  ;;  %v235_v36 = vld [vmem:[%s3353_s20 + $0x128] sm:$0xff] }
  0xc4   : > { %v2800_v15 = vpop.permute.xlu1 %2799 }
  0xc5   : > { %v2802_v4 = vunpack.i.h.bf16 %v2800_v15  ;;  %v2801_v0 = vunpack.i.l.bf16 %v2800_v15  ;;  %v2795_v24 = vpop.permute.xlu0 %2794 }
  0xc6   : > { %v2797_v27 = vunpack.i.h.bf16 %v2795_v24  ;;  %v2796_v21 = vunpack.i.l.bf16 %v2795_v24  ;;  %3089 = vrot.lane.b32.xlu1 %v3088_v33, %s3312_s7 }
  0xc7   : > { %v3764_v12 = vsel %vm1557_vm2, %v1555_v38, %v2801_v0  ;;  %v3767_v35 = vsel %vm1557_vm2, %v1556_v39, %v2802_v4  ;;  %3084 = vrot.lane.b32.xlu0 %v3083_v7, %s3312_s7  ;;  %v3108_v38 = vpack.i.bf16 %v235_v36, %v234_v22  ;;  %v2401_v39 = vld [vmem:[%s3353_s20 + $0x129] sm:$0xff]  ;;  %v2431_v4 = vld [vmem:[%s3353_s20 + $0x112] sm:$0xff] }
  0xc8   : > { %4547 = vst [vmem:[#allocation17_spill] sm:$0xff] %v3764_v12  ;;  %4548 = vst [vmem:[#allocation18_spill] sm:$0xff] %v3767_v35  ;;  %v3771_v24 = vsel %vm1557_vm2, %v1553_v37, %v2796_v21  ;;  %v3774_v28 = vsel %vm1557_vm2, %v1554_v56, %v2797_v27  ;;  %v3776_v19 = vpop.permute.xlu1 %2809  ;;  %v2400_v21 = vld [vmem:[%s3353_s20 + $0x121] sm:$0xff]  ;;  %v2496_v36 = vld [vmem:[%s3353_s20 + $0x139] sm:$0xff] }
  0xc9   : > { %4549 = vst [vmem:[#allocation19_spill] sm:$0xff] %v3771_v24  ;;  %4550 = vst [vmem:[#allocation20_spill] sm:$0xff] %v3774_v28  ;;  %v3780_v15 = vpop.permute.xlu0 %2804  ;;  %v3793_v7 = vpack.i.bf16 %v2401_v39, %v2400_v21  ;;  %v2497_v21 = vld [vmem:[%s3353_s20 + $0x141] sm:$0xff]  ;;  %v2811_v13 = vunpack.i.l.bf16 %v3776_v19 }
  0xca   : > { %3099 = vrot.lane.b32.xlu1 %v3492_v25, %s3313_s8  ;;  %v237_v39 = vld [vmem:[%s3353_s20 + $0x140] sm:$0xff]  ;;  %v3828_v18 = vpack.i.bf16 %v2497_v21, %v2496_v36 }
  0xcb   : > { %3094 = vrot.lane.b32.xlu0 %v3496_v26, %s3313_s8  ;;  %v2430_v26 = vld [vmem:[%s3353_s20 + $0x10a] sm:$0xff]  ;;  %v2528_v24 = vld [vmem:[%s3353_s20 + $0x13a] sm:$0xff]  ;;  %v2529_v12 = vld [vmem:[%s3353_s20 + $0x142] sm:$0xff] }
  0xcc   : > { %v3788_v0 = vpop.permute.xlu1 %2819  ;;  %v3123_v56 = vpack.i.bf16 %v2431_v4, %v2430_v26  ;;  %v3823_v26 = vld [vmem:[%s3353_s20 + $0x12a] sm:$0xff]  ;;  %v2652_v4 = vunpack.i.h.bf16 %v3626_v58  ;;  %v2727_v58 = vunpack.i.h.bf16 %v3696_v41  ;;  %v3840_v21 = vpack.i.bf16 %v2529_v12, %v2528_v24 }
  0xcd   : > { %v3790_v27 = vpop.permute.xlu0 %2814  ;;  %v2807_v24 = vunpack.i.h.bf16 %v3780_v15 }
  0xce   : > { %3109 = vrot.lane.b32.xlu1 %v3108_v38, %s3308_s23  ;;  %v1528_v12 = vsel %vm1524_vm1, %v3525_v45, %v2652_v4 }
  0xcf   : > { %3104 = vrot.lane.b32.xlu0 %v3078_v59, %s3308_s23  ;;  %v236_v59 = vld [vmem:[%s3353_s20 + $0x138] sm:$0xff]  ;;  %v1561_v2 = vsel %vm1557_vm2, %v1528_v12, %v2732_v20 }
  0xd0   : > { %v3796_v25 = vpop.permute.xlu1 %2829  ;;  %v3816_v35 = vpack.i.bf16 %v237_v39, %v236_v59  ;;  %v2647_v59 = vunpack.i.h.bf16 %v3612_v10  ;;  %v2646_v39 = vunpack.i.l.bf16 %v3612_v10  ;;  %v2812_v10 = vunpack.i.h.bf16 %v3776_v19 }
  0xd1   : > { %v3800_v37 = vpop.permute.xlu0 %2824 }
  0xd2   : > { %3119 = vrot.lane.b32.xlu1 %v3793_v7, %s3309_s26  ;;  %v1525_v19 = vsel %vm1524_vm1, %v210_v63, %v2646_v39  ;;  %v1526_v54 = vsel %vm1524_vm1, %v211_v62, %v2647_v59  ;;  %v1594_v63 = vsel %vm1590_vm3, %v1561_v2, %v2812_v10 }
  0xd3   : > { %3114 = vrot.lane.b32.xlu0 %v3088_v33, %s3309_s26  ;;  %v3820_v33 = vld [vmem:[%s3353_s20 + $0x122] sm:$0xff]  ;;  %v1559_v45 = vsel %vm1557_vm2, %v1526_v54, %v2727_v58 }
  0xd4   : > { %v3805_v22 = vpop.permute.xlu1 %2839  ;;  %v3153_v14 = vpack.i.bf16 %v3823_v26, %v3820_v33  ;;  %v2806_v33 = vunpack.i.l.bf16 %v3780_v15 }
  0xd5   : > { %v3811_v28 = vpop.permute.xlu0 %2834  ;;  %v2841_v15 = vunpack.i.l.bf16 %v3805_v22 }
  0xd6   : > { %3129 = vrot.lane.b32.xlu1 %v3506_v34, %s3310_s29  ;;  %v2405_v34 = vld [vmem:[%s3353_s20 + $0x159] sm:$0xff]  ;;  %v2837_v62 = vunpack.i.h.bf16 %v3811_v28 }
  0xd7   : > { %3124 = vrot.lane.b32.xlu0 %v3123_v56, %s3310_s29  ;;  %v2726_v56 = vunpack.i.l.bf16 %v3696_v41  ;;  %v3852_v17 = vpack.i.bf16 %v2405_v34, %v2404_v23  ;;  %v1527_v41 = vsel %vm1524_vm1, %v3522_v44, %v2651_v5  ;;  %v2842_v5 = vunpack.i.h.bf16 %v3805_v22 }
  0xd8   : > { %v2850_v31 = vpop.permute.xlu1 %2849  ;;  %v1560_v23 = vsel %vm1557_vm2, %v1527_v41, %v2731_v32  ;;  %v2836_v32 = vunpack.i.l.bf16 %v3811_v28  ;;  %v1592_v34 = vsel %vm1590_vm3, %v1559_v45, %v2807_v24 }
  0xd9   : > { %v2845_v36 = vpop.permute.xlu0 %2844  ;;  %v1558_v44 = vsel %vm1557_vm2, %v1525_v19, %v2726_v56  ;;  %v1593_v4 = vsel %vm1590_vm3, %v1560_v23, %v2811_v13  ;;  %v2852_v59 = vunpack.i.h.bf16 %v2850_v31  ;;  %v2851_v39 = vunpack.i.l.bf16 %v2850_v31 }
  0xda   : > { %3139 = vrot.lane.b32.xlu1 %v3816_v35, %s3311_s6  ;;  %v1591_v20 = vsel %vm1590_vm3, %v1558_v44, %v2806_v33  ;;  %v2847_v22 = vunpack.i.h.bf16 %v2845_v36  ;;  %v2846_v13 = vunpack.i.l.bf16 %v2845_v36  ;;  %v1626_v41 = vsel %vm1623_vm4, %v1593_v4, %v2841_v15 }
  0xdb   : > { %3134 = vrot.lane.b32.xlu0 %v3108_v38, %s3311_s6  ;;  %v1627_v28 = vsel %vm1623_vm4, %v1594_v63, %v2842_v5  ;;  %v1624_v33 = vsel %vm1623_vm4, %v1591_v20, %v2836_v32  ;;  %v1625_v24 = vsel %vm1623_vm4, %v1592_v34, %v2837_v62 }
  0xdc   : > { %v2860_v26 = vpop.permute.xlu1 %2859  ;;  %v1660_v36 = vsel %vm1656_vm5, %v1627_v28, %v2852_v59  ;;  %v1657_v44 = vsel %vm1656_vm5, %v1624_v33, %v2846_v13  ;;  %v1658_v45 = vsel %vm1656_vm5, %v1625_v24, %v2847_v22 }
  0xdd   : > { %v2855_v38 = vpop.permute.xlu0 %2854  ;;  %v2862_v58 = vunpack.i.h.bf16 %v2860_v26  ;;  %v2861_v56 = vunpack.i.l.bf16 %v2860_v26 }
  0xde   : > { %3149 = vrot.lane.b32.xlu1 %v3828_v18, %s3312_s7  ;;  %v2857_v12 = vunpack.i.h.bf16 %v2855_v38  ;;  %v2856_v19 = vunpack.i.l.bf16 %v2855_v38 }
  0xdf   : > { %3144 = vrot.lane.b32.xlu0 %v3793_v7, %s3312_s7  ;;  %v1659_v7 = vsel %vm1656_vm5, %v1626_v41, %v2851_v39  ;;  %v1693_v15 = vsel %vm1689_vm6, %v1660_v36, %v2862_v58  ;;  %v2437_v41 = vld [vmem:[%s3353_s20 + $0x15a] sm:$0xff]  ;;  %v2662_v36 = vunpack.i.h.bf16 %v3624_v52 }
  0xe0   : > { %v2870_v10 = vpop.permute.xlu1 %2869  ;;  %v1692_v5 = vsel %vm1689_vm6, %v1659_v7, %v2861_v56  ;;  %v1690_v4 = vsel %vm1689_vm6, %v1657_v44, %v2856_v19  ;;  %v1691_v63 = vsel %vm1689_vm6, %v1658_v45, %v2857_v12  ;;  %v2532_v7 = vld [vmem:[%s3353_s20 + $0x16a] sm:$0xff]  ;;  %v2376_v44 = vld [vmem:[%s3353_s20 + $0x180] sm:$0xff] }
  0xe1   : > { %v2865_v54 = vpop.permute.xlu0 %2864  ;;  %v2872_v31 = vunpack.i.h.bf16 %v2870_v10  ;;  %v2871_v23 = vunpack.i.l.bf16 %v2870_v10  ;;  %v2436_v10 = vld [vmem:[%s3353_s20 + $0x152] sm:$0xff]  ;;  %v2377_v45 = vld [vmem:[%s3353_s20 + $0x188] sm:$0xff] }
  0xe2   : > { %3159 = vrot.lane.b32.xlu1 %v3840_v21, %s3313_s8  ;;  %v2867_v2 = vunpack.i.h.bf16 %v2865_v54  ;;  %v2866_v26 = vunpack.i.l.bf16 %v2865_v54  ;;  %v3914_v24 = vpack.i.bf16 %v2437_v41, %v2436_v10 }
  0xe3   : > { %3154 = vrot.lane.b32.xlu0 %v3153_v14, %s3313_s8  ;;  %v1725_v14 = vsel %vm1722_vm7, %v1692_v5, %v2871_v23  ;;  %v1726_v34 = vsel %vm1722_vm7, %v1693_v15, %v2872_v31  ;;  %v2500_v31 = vld [vmem:[%s3353_s20 + $0x169] sm:$0xff]  ;;  %v2501_v23 = vld [vmem:[%s3353_s20 + $0x171] sm:$0xff]  ;;  %v2657_v5 = vunpack.i.h.bf16 %v3610_v3  ;;  %v2656_v15 = vunpack.i.l.bf16 %v3610_v3 }
  0xe4   : > { %v2880_v38 = vpop.permute.xlu1 %2879  ;;  %v1723_v58 = vsel %vm1722_vm7, %v1690_v4, %v2866_v26  ;;  %v1724_v56 = vsel %vm1722_vm7, %v1691_v63, %v2867_v2  ;;  %v2661_v2 = vunpack.i.l.bf16 %v3624_v52  ;;  %v2533_v26 = vld [vmem:[%s3353_s20 + $0x172] sm:$0xff]  ;;  %v2741_v4 = vunpack.i.l.bf16 %v3700_v46 }
  0xe5   : > { %v2882_v62 = vunpack.i.h.bf16 %v2880_v38  ;;  %v2881_v32 = vunpack.i.l.bf16 %v2880_v38  ;;  %v2875_v20 = vpop.permute.xlu0 %2874  ;;  %v2742_v38 = vunpack.i.h.bf16 %v3700_v46  ;;  %v2737_v52 = vunpack.i.h.bf16 %v3702_v47 }
  0xe6   : > { %v2877_v59 = vunpack.i.h.bf16 %v2875_v20  ;;  %v2876_v39 = vunpack.i.l.bf16 %v2875_v20  ;;  %3169 = vrot.lane.b32.xlu1 %v3850_v40, %s3308_s23  ;;  %v3938_v20 = vpack.i.bf16 %v2501_v23, %v2500_v31  ;;  %v2822_v3 = vunpack.i.h.bf16 %v3788_v0 }
  0xe7   : > { %v1758_v22 = vsel %vm1755_vm8, %v1725_v14, %v2881_v32  ;;  %v1759_v13 = vsel %vm1755_vm8, %v1726_v34, %v2882_v62  ;;  %3164 = vrot.lane.b32.xlu0 %v3816_v35, %s3308_s23  ;;  %v3936_v32 = vpack.i.bf16 %v3676_v30, %v3673_v8  ;;  %v2821_v14 = vunpack.i.l.bf16 %v3788_v0 }
  0xe8   : > { %v1789_v28 = vpack.c.bf16 %v1759_v13, %v1758_v22  ;;  %v3906_v12 = vpop.permute.xlu1 %2889  ;;  %v1756_v19 = vsel %vm1755_vm8, %v1723_v58, %v2876_v39  ;;  %v1757_v54 = vsel %vm1755_vm8, %v1724_v56, %v2877_v59  ;;  %v3944_v46 = vpack.i.bf16 %v2533_v26, %v2532_v7 }
  0xe9   : > { %v3910_v33 = vpop.permute.xlu0 %2884  ;;  %v1788_v35 = vpack.c.bf16 %v1757_v54, %v1756_v19  ;;  %v3946_v34 = vpack.i.bf16 %v2377_v45, %v2376_v44  ;;  %v1532_v8 = vsel %vm1524_vm1, %v3543_v51, %v2662_v36  ;;  %v2817_v30 = vunpack.i.h.bf16 %v3790_v27 }
  0xea   : > { %3179 = vrot.lane.b32.xlu1 %v3852_v17, %s3309_s26  ;;  %v2816_v59 = vunpack.i.l.bf16 %v3790_v27  ;;  %v1529_v0 = vsel %vm1524_vm1, %v3516_v42, %v2656_v15  ;;  %v1530_v39 = vsel %vm1524_vm1, %v3519_v43, %v2657_v5  ;;  %v2892_v27 = vunpack.i.h.bf16 %v3906_v12 }
  0xeb   : > { %3174 = vrot.lane.b32.xlu0 %v3828_v18, %s3309_s26  ;;  %2586 = vmatprep.mubr.msk.bf16.mxu0 %vm1831_vm9, %v1788_v35  ;;  %v2736_v18 = vunpack.i.l.bf16 %v3702_v47  ;;  %v1531_v47 = vsel %vm1524_vm1, %v3540_v50, %v2661_v2  ;;  %v1565_v50 = vsel %vm1557_vm2, %v1532_v8, %v2742_v38  ;;  %v1563_v58 = vsel %vm1557_vm2, %v1530_v39, %v2737_v52 }
  0xec   : > { %2587 = vmatmul.mubr.msk.bf16.vlgmr.msra.gmra.mrb[0].mxu0 %vm1831_vm9, %v1789_v28  ;;  %v2900_v63 = vpop.permute.xlu1 %2899  ;;  %v1564_v22 = vsel %vm1557_vm2, %v1531_v47, %v2741_v4  ;;  %v2891_v56 = vunpack.i.l.bf16 %v3906_v12  ;;  %v1598_v42 = vsel %vm1590_vm3, %v1565_v50, %v2822_v3  ;;  %v2887_v43 = vunpack.i.h.bf16 %v3910_v33 }
  0xed   : > { %v2895_v62 = vpop.permute.xlu0 %2894  ;;  %v1562_v51 = vsel %vm1557_vm2, %v1529_v0, %v2736_v18  ;;  %v1597_v10 = vsel %vm1590_vm3, %v1564_v22, %v2821_v14  ;;  %v2886_v41 = vunpack.i.l.bf16 %v3910_v33  ;;  %v1596_v19 = vsel %vm1590_vm3, %v1563_v58, %v2817_v30 }
  0xee   : > { %3189 = vrot.lane.b32.xlu1 %v3914_v24, %s3310_s29  ;;  %v1595_v28 = vsel %vm1590_vm3, %v1562_v51, %v2816_v59  ;;  %v2902_v54 = vunpack.i.h.bf16 %v2900_v63  ;;  %v2901_v35 = vunpack.i.l.bf16 %v2900_v63  ;;  %v2897_v12 = vunpack.i.h.bf16 %v2895_v62 }
  0xef   : > { %3184 = vrot.lane.b32.xlu0 %v3840_v21, %s3310_s29  ;;  %v2896_v31 = vunpack.i.l.bf16 %v2895_v62  ;;  %v1630_v2 = vsel %vm1623_vm4, %v1597_v10, %v2891_v56  ;;  %v1631_v33 = vsel %vm1623_vm4, %v1598_v42, %v2892_v27  ;;  %v1628_v5 = vsel %vm1623_vm4, %v1595_v28, %v2886_v41  ;;  %v2408_v10 = vld [vmem:[%s3353_s20 + $0x181] sm:$0xff]  ;;  %v2409_v42 = vld [vmem:[%s3353_s20 + $0x189] sm:$0xff] }
  0xf0   : > { %v2910_v13 = vpop.permute.xlu1 %2909  ;;  %v1629_v15 = vsel %vm1623_vm4, %v1596_v19, %v2887_v43  ;;  %v1664_v63 = vsel %vm1656_vm5, %v1631_v33, %v2902_v54  ;;  %v2671_v33 = vunpack.i.l.bf16 %v3634_v16 }
  0xf1   : > { %v2905_v21 = vpop.permute.xlu0 %2904  ;;  %v2912_v23 = vunpack.i.h.bf16 %v2910_v13  ;;  %v2911_v7 = vunpack.i.l.bf16 %v2910_v13  ;;  %v1661_v62 = vsel %vm1656_vm5, %v1628_v5, %v2896_v31  ;;  %v1662_v3 = vsel %vm1656_vm5, %v1629_v15, %v2897_v12  ;;  %v2440_v12 = vld [vmem:[%s3353_s20 + $0x182] sm:$0xff]  ;;  %v2441_v31 = vld [vmem:[%s3353_s20 + $0x18a] sm:$0xff] }
  0xf2   : > { %3199 = vrot.lane.b32.xlu1 %v3936_v32, %s3311_s6  ;;  %v2907_v26 = vunpack.i.h.bf16 %v2905_v21  ;;  %v2906_v44 = vunpack.i.l.bf16 %v2905_v21  ;;  %v2667_v5 = vunpack.i.h.bf16 %v3636_v1  ;;  %v2666_v15 = vunpack.i.l.bf16 %v3636_v1 }
  0xf3   : > { %3194 = vrot.lane.b32.xlu0 %v3850_v40, %s3311_s6  ;;  %v1663_v40 = vsel %vm1656_vm5, %v1630_v2, %v2901_v35  ;;  %v1697_v47 = vsel %vm1689_vm6, %v1664_v63, %v2912_v23  ;;  %v4017_v23 = vld [vmem:[%s3353_s20 + $0x198] sm:$0xff]  ;;  %v2672_v2 = vunpack.i.h.bf16 %v3634_v16  ;;  %v2831_v1 = vunpack.i.l.bf16 %v3796_v25 }
  0xf4   : > { %v2920_v36 = vpop.permute.xlu1 %2919  ;;  %v1696_v14 = vsel %vm1689_vm6, %v1663_v40, %v2911_v7  ;;  %v1694_v30 = vsel %vm1689_vm6, %v1661_v62, %v2906_v44  ;;  %v1695_v59 = vsel %vm1689_vm6, %v1662_v3, %v2907_v26  ;;  %v4020_v7 = vld [vmem:[%s3353_s20 + $0x1a0] sm:$0xff]  ;;  %v2746_v40 = vunpack.i.l.bf16 %v3712_v55 }
  0xf5   : > { %v2915_v45 = vpop.permute.xlu0 %2914  ;;  %v2922_v38 = vunpack.i.h.bf16 %v2920_v36  ;;  %v2921_v4 = vunpack.i.l.bf16 %v2920_v36  ;;  %v4023_v36 = vld [vmem:[%s3353_s20 + $0x199] sm:$0xff]  ;;  %v4031_v26 = vld [vmem:[%s3353_s20 + $0x1a1] sm:$0xff]  ;;  %v2832_v62 = vunpack.i.h.bf16 %v3796_v25  ;;  %v1533_v25 = vsel %vm1524_vm1, %v3534_v48, %v2666_v15 }
  0xf6   : > { %3209 = vrot.lane.b32.xlu1 %v3938_v20, %s3312_s7  ;;  %v2917_v52 = vunpack.i.h.bf16 %v2915_v45  ;;  %v2916_v18 = vunpack.i.l.bf16 %v2915_v45  ;;  %v4034_v44 = vld [vmem:[%s3353_s20 + $0x19a] sm:$0xff]  ;;  %v4037_v45 = vld [vmem:[%s3353_s20 + $0x1a2] sm:$0xff] }
  0xf7   : > { %3204 = vrot.lane.b32.xlu0 %v3852_v17, %s3312_s7  ;;  %v1729_v17 = vsel %vm1722_vm7, %v1696_v14, %v2921_v4  ;;  %v1730_v50 = vsel %vm1722_vm7, %v1697_v47, %v2922_v38  ;;  %v2752_v38 = vunpack.i.h.bf16 %v3708_v53  ;;  %v2751_v4 = vunpack.i.l.bf16 %v3708_v53 }
  0xf8   : > { %v2930_v8 = vpop.permute.xlu1 %2929  ;;  %v1727_v58 = vsel %vm1722_vm7, %v1694_v30, %v2916_v18  ;;  %v1728_v27 = vsel %vm1722_vm7, %v1695_v59, %v2917_v52  ;;  %v4046_v52 = vpack.i.bf16 %v2441_v31, %v2440_v12  ;;  %v3258_v18 = vpack.i.bf16 %v4020_v7, %v4017_v23 }
  0xf9   : > { %v2932_v0 = vunpack.i.h.bf16 %v2930_v8  ;;  %v2931_v39 = vunpack.i.l.bf16 %v2930_v8  ;;  %v2925_v22 = vpop.permute.xlu0 %2924  ;;  %v3268_v53 = vpack.i.bf16 %v4031_v26, %v4023_v36  ;;  %v3278_v3 = vpack.i.bf16 %v4037_v45, %v4034_v44 }
  0xfa   : > { %v2927_v13 = vunpack.i.h.bf16 %v2925_v22  ;;  %v2926_v51 = vunpack.i.l.bf16 %v2925_v22  ;;  %3219 = vrot.lane.b32.xlu1 %v3944_v46, %s3313_s8  ;;  %v1536_v14 = vsel %vm1524_vm1, %v3557_v60, %v2672_v2  ;;  %v2827_v47 = vunpack.i.h.bf16 %v3800_v37 }
  0xfb   : > { %v1762_v56 = vsel %vm1755_vm8, %v1729_v17, %v2931_v39  ;;  %v1763_v21 = vsel %vm1755_vm8, %v1730_v50, %v2932_v0  ;;  %3214 = vrot.lane.b32.xlu0 %v3914_v24, %s3313_s8  ;;  %v4014_v24 = vpack.i.bf16 %v2409_v42, %v2408_v10  ;;  %v2826_v8 = vunpack.i.l.bf16 %v3800_v37 }
  0xfc   : > { %v1791_v43 = vpack.c.bf16 %v1763_v21, %v1762_v56  ;;  %v1760_v41 = vsel %vm1755_vm8, %v1727_v58, %v2926_v51  ;;  %v1761_v28 = vsel %vm1755_vm8, %v1728_v27, %v2927_v13  ;;  %v4006_v19 = vpop.permute.xlu1 %2939  ;;  %v1534_v30 = vsel %vm1524_vm1, %v3537_v49, %v2667_v5 }
  0xfd   : > { %v1790_v54 = vpack.c.bf16 %v1761_v28, %v1760_v41  ;;  %v4008_v35 = vpop.permute.xlu0 %2934  ;;  %v1566_v60 = vsel %vm1557_vm2, %v1533_v25, %v2746_v40  ;;  %v2942_v37 = vunpack.i.h.bf16 %v4006_v19  ;;  %v2941_v22 = vunpack.i.l.bf16 %v4006_v19 }
  0xfe   : > { %3229 = vrot.lane.b32.xlu1 %v3946_v34, %s3308_s23  ;;  %v2937_v49 = vunpack.i.h.bf16 %v4008_v35  ;;  %v2936_v50 = vunpack.i.l.bf16 %v4008_v35  ;;  %v1599_v13 = vsel %vm1590_vm3, %v1566_v60, %v2826_v8  ;;  %v2676_v44 = vunpack.i.l.bf16 %v3642_v9 }
  0xff   : > { %3224 = vrot.lane.b32.xlu0 %v3936_v32, %s3308_s23  ;;  %2590 = vmatprep.mubr.msk.bf16.mxu0 %vm1831_vm9, %v1790_v54  ;;  %v2747_v32 = vunpack.i.h.bf16 %v3712_v55  ;;  %v1535_v55 = vsel %vm1524_vm1, %v3554_v57, %v2671_v33  ;;  %v1569_v57 = vsel %vm1557_vm2, %v1536_v14, %v2752_v38  ;;  %v2762_v45 = vunpack.i.h.bf16 %v3718_v61 }
 0x100   : > { %2591 = vmatmul.mubr.msk.bf16.gmra.mrb[4].mxu0 %vm1831_vm9, %v1791_v43  ;;  %v2950_v16 = vpop.permute.xlu1 %2949  ;;  %v1568_v59 = vsel %vm1557_vm2, %v1535_v55, %v2751_v4  ;;  %v1602_v48 = vsel %vm1590_vm3, %v1569_v57, %v2832_v62  ;;  %v1632_v12 = vsel %vm1623_vm4, %v1599_v13, %v2936_v50 }
 0x101   : > { %v2945_v63 = vpop.permute.xlu0 %2944  ;;  %v1567_v39 = vsel %vm1557_vm2, %v1534_v30, %v2747_v32  ;;  %v1601_v17 = vsel %vm1590_vm3, %v1568_v59, %v2831_v1  ;;  %v2952_v58 = vunpack.i.h.bf16 %v2950_v16  ;;  %v2951_v27 = vunpack.i.l.bf16 %v2950_v16 }
 0x102   : > { %3239 = vrot.lane.b32.xlu1 %v4014_v24, %s3309_s26  ;;  %v1600_v51 = vsel %vm1590_vm3, %v1567_v39, %v2827_v47  ;;  %v2947_v56 = vunpack.i.h.bf16 %v2945_v63  ;;  %v2946_v21 = vunpack.i.l.bf16 %v2945_v63  ;;  %v1634_v41 = vsel %vm1623_vm4, %v1601_v17, %v2941_v22 }
 0x103   : > { %3234 = vrot.lane.b32.xlu0 %v3938_v20, %s3309_s26  ;;  %v1635_v28 = vsel %vm1623_vm4, %v1602_v48, %v2942_v37  ;;  %v1633_v31 = vsel %vm1623_vm4, %v1600_v51, %v2937_v49  ;;  %v2682_v37 = vunpack.i.h.bf16 %v3640_v6  ;;  %v2681_v22 = vunpack.i.l.bf16 %v3640_v6  ;;  %v4551_v51 = vld [vmem:[#allocation2_spill] sm:$0xff] }
 0x104   : > { %v2960_v0 = vpop.permute.xlu1 %2959  ;;  %v1668_v36 = vsel %vm1656_vm5, %v1635_v28, %v2952_v58  ;;  %v1665_v26 = vsel %vm1656_vm5, %v1632_v12, %v2946_v21  ;;  %v1666_v5 = vsel %vm1656_vm5, %v1633_v31, %v2947_v56  ;;  %v2757_v17 = vunpack.i.h.bf16 %v3720_v29  ;;  %v3286_v56 = vld [vmem:[%s3353_s20 + $0x90] sm:$0xff] }
 0x105   : > { %v2955_v20 = vpop.permute.xlu0 %2954  ;;  %v2962_v10 = vunpack.i.h.bf16 %v2960_v0  ;;  %v2961_v42 = vunpack.i.l.bf16 %v2960_v0  ;;  %v2756_v48 = vunpack.i.l.bf16 %v3720_v29  ;;  %v1539_v6 = vsel %vm1524_vm1, %v3619_v11, %v2681_v22 }
 0x106   : > { %3249 = vrot.lane.b32.xlu1 %v4046_v52, %s3310_s29  ;;  %v2957_v19 = vunpack.i.h.bf16 %v2955_v20  ;;  %v2956_v54 = vunpack.i.l.bf16 %v2955_v20  ;;  %v2677_v20 = vunpack.i.h.bf16 %v3642_v9  ;;  %v1540_v58 = vsel %vm1524_vm1, %v4551_v51, %v2682_v37 }
 0x107   : > { %3244 = vrot.lane.b32.xlu0 %v3944_v46, %s3310_s29  ;;  %v1667_v46 = vsel %vm1656_vm5, %v1634_v41, %v2951_v27  ;;  %v1701_v38 = vsel %vm1689_vm6, %v1668_v36, %v2962_v10  ;;  %v1537_v21 = vsel %vm1524_vm1, %v3286_v56, %v2676_v44  ;;  %v1573_v29 = vsel %vm1557_vm2, %v1540_v58, %v2762_v45  ;;  %v4552_v56 = vld [vmem:[#allocation3_spill] sm:$0xff] }
 0x108   : > { %v2970_v43 = vpop.permute.xlu1 %2969  ;;  %v1700_v15 = vsel %vm1689_vm6, %v1667_v46, %v2961_v42  ;;  %v1698_v16 = vsel %vm1689_vm6, %v1665_v26, %v2956_v54  ;;  %v1699_v32 = vsel %vm1689_vm6, %v1666_v5, %v2957_v19  ;;  %v1570_v41 = vsel %vm1557_vm2, %v1537_v21, %v2756_v48 }
 0x109   : > { %v2965_v35 = vpop.permute.xlu0 %2964  ;;  %v2972_v23 = vunpack.i.h.bf16 %v2970_v43  ;;  %v2971_v7 = vunpack.i.l.bf16 %v2970_v43  ;;  %v2692_v21 = vunpack.i.h.bf16 %v4552_v56 }
 0x10a   : > { %3259 = vrot.lane.b32.xlu1 %v3258_v18, %s3311_s6  ;;  %v2967_v2 = vunpack.i.h.bf16 %v2965_v35  ;;  %v2966_v33 = vunpack.i.l.bf16 %v2965_v35 }
 0x10b   : > { %3254 = vrot.lane.b32.xlu0 %v3946_v34, %s3311_s6  ;;  %v1733_v62 = vsel %vm1722_vm7, %v1700_v15, %v2971_v7  ;;  %v1734_v34 = vsel %vm1722_vm7, %v1701_v38, %v2972_v23 }
 0x10c   : > { %v2980_v4 = vpop.permute.xlu1 %2979  ;;  %v1731_v14 = vsel %vm1722_vm7, %v1698_v16, %v2966_v33  ;;  %v1732_v47 = vsel %vm1722_vm7, %v1699_v32, %v2967_v2 }
 0x10d   : > { %v2982_v40 = vunpack.i.h.bf16 %v2980_v4  ;;  %v2981_v63 = vunpack.i.l.bf16 %v2980_v4  ;;  %v2975_v18 = vpop.permute.xlu0 %2974 }
 0x10e   : > { %v2977_v1 = vunpack.i.h.bf16 %v2975_v18  ;;  %v2976_v55 = vunpack.i.l.bf16 %v2975_v18  ;;  %3269 = vrot.lane.b32.xlu1 %v3268_v53, %s3312_s7 }
 0x10f   : > { %v1766_v8 = vsel %vm1755_vm8, %v1733_v62, %v2981_v63  ;;  %v1767_v25 = vsel %vm1755_vm8, %v1734_v34, %v2982_v40  ;;  %3264 = vrot.lane.b32.xlu0 %v4014_v24, %s3312_s7 }
 0x110   : > { %v1793_v30 = vpack.c.bf16 %v1767_v25, %v1766_v8  ;;  %v1764_v59 = vsel %vm1755_vm8, %v1731_v14, %v2976_v55  ;;  %v1765_v57 = vsel %vm1755_vm8, %v1732_v47, %v2977_v1  ;;  %v2990_v0 = vpop.permute.xlu1 %2989 }
 0x111   : > { %v1792_v60 = vpack.c.bf16 %v1765_v57, %v1764_v59  ;;  %v2985_v39 = vpop.permute.xlu0 %2984  ;;  %v2992_v50 = vunpack.i.h.bf16 %v2990_v0  ;;  %v2991_v13 = vunpack.i.l.bf16 %v2990_v0 }
 0x112   : > { %3279 = vrot.lane.b32.xlu1 %v3278_v3, %s3313_s8  ;;  %v2987_v27 = vunpack.i.h.bf16 %v2985_v39  ;;  %v2986_v9 = vunpack.i.l.bf16 %v2985_v39 }
 0x113   : > { %3274 = vrot.lane.b32.xlu0 %v4046_v52, %s3313_s8  ;;  %2594 = vmatprep.mubr.msk.bf16.mxu0 %vm1831_vm9, %v1792_v60  ;;  %v2761_v52 = vunpack.i.l.bf16 %v3718_v61  ;;  %v3287_v61 = vld [vmem:[%s3353_s20 + $0x98] sm:$0xff]  ;;  %v1606_v12 = vsel %vm1590_vm3, %v1573_v29, %v2992_v50 }
 0x114   : > { %2595 = vmatmul.mubr.msk.bf16.gmra.mrb[8].mxu0 %vm1831_vm9, %v1793_v30  ;;  %v3000_v24 = vpop.permute.xlu1 %2999  ;;  %v1538_v10 = vsel %vm1524_vm1, %v3287_v61, %v2677_v20  ;;  %v1603_v7 = vsel %vm1590_vm3, %v1570_v41, %v2986_v9  ;;  %v2691_v61 = vunpack.i.l.bf16 %v4552_v56 }
 0x115   : > { %v2995_v53 = vpop.permute.xlu0 %2994  ;;  %v1572_v42 = vsel %vm1557_vm2, %v1539_v6, %v2761_v52  ;;  %v1571_v11 = vsel %vm1557_vm2, %v1538_v10, %v2757_v17  ;;  %v3002_v28 = vunpack.i.h.bf16 %v3000_v24  ;;  %v3001_v19 = vunpack.i.l.bf16 %v3000_v24  ;;  %v4553_v10 = vld [vmem:[#allocation4_spill] sm:$0xff] }
 0x116   : > { %v1605_v35 = vsel %vm1590_vm3, %v1572_v42, %v2991_v13  ;;  %v2997_v31 = vunpack.i.h.bf16 %v2995_v53  ;;  %v2996_v23 = vunpack.i.l.bf16 %v2995_v53  ;;  %v1604_v46 = vsel %vm1590_vm3, %v1571_v11, %v2987_v27 }
 0x117   : > { %v1638_v4 = vsel %vm1623_vm4, %v1605_v35, %v3001_v19  ;;  %v1639_v16 = vsel %vm1623_vm4, %v1606_v12, %v3002_v28  ;;  %v2687_v42 = vunpack.i.h.bf16 %v4553_v10  ;;  %v2686_v29 = vunpack.i.l.bf16 %v4553_v10  ;;  %v4555_v19 = vld [vmem:[#allocation12_spill] sm:$0xff] }
 0x118   : > { %v3010_v3 = vpop.permute.xlu1 %3009  ;;  %v1636_v18 = vsel %vm1623_vm4, %v1603_v7, %v2996_v23  ;;  %v1637_v62 = vsel %vm1623_vm4, %v1604_v46, %v2997_v31  ;;  %v2766_v35 = vunpack.i.l.bf16 %v4555_v19  ;;  %v4556_v7 = vld [vmem:[#allocation9_spill] sm:$0xff] }
 0x119   : > { %v3005_v49 = vpop.permute.xlu0 %3004  ;;  %v3012_v36 = vunpack.i.h.bf16 %v3010_v3  ;;  %v3011_v2 = vunpack.i.l.bf16 %v3010_v3  ;;  %v1543_v46 = vsel %vm1524_vm1, %v4556_v7, %v2691_v61 }
 0x11a   : > { %v3007_v33 = vunpack.i.h.bf16 %v3005_v49  ;;  %v3006_v26 = vunpack.i.l.bf16 %v3005_v49 }
 0x11b   : > { %v1671_v55 = vsel %vm1656_vm5, %v1638_v4, %v3011_v2  ;;  %v1672_v14 = vsel %vm1656_vm5, %v1639_v16, %v3012_v36  ;;  %v4557_v36 = vld [vmem:[#allocation10_spill] sm:$0xff] }
 0x11c   : > { %v3020_v43 = vpop.permute.xlu1 %3019  ;;  %v1669_v25 = vsel %vm1656_vm5, %v1636_v18, %v3006_v26  ;;  %v1670_v30 = vsel %vm1656_vm5, %v1637_v62, %v3007_v33  ;;  %v1544_v2 = vsel %vm1524_vm1, %v4557_v36, %v2692_v21 }
 0x11d   : > { %v3015_v54 = vpop.permute.xlu0 %3014  ;;  %v3022_v5 = vunpack.i.h.bf16 %v3020_v43  ;;  %v3021_v15 = vunpack.i.l.bf16 %v3020_v43  ;;  %v4554_v43 = vld [vmem:[#allocation11_spill] sm:$0xff] }
 0x11e   : > { %v3017_v32 = vunpack.i.h.bf16 %v3015_v54  ;;  %v3016_v40 = vunpack.i.l.bf16 %v3015_v54  ;;  %v2772_v41 = vunpack.i.h.bf16 %v4554_v43  ;;  %v2771_v11 = vunpack.i.l.bf16 %v4554_v43 }
 0x11f   : > { %v1704_v59 = vsel %vm1689_vm6, %v1671_v55, %v3021_v15  ;;  %v1705_v57 = vsel %vm1689_vm6, %v1672_v14, %v3022_v5  ;;  %v2767_v54 = vunpack.i.h.bf16 %v4555_v19  ;;  %v3288_v5 = vld [vmem:[%s3353_s20 + $0xc0] sm:$0xff] }
 0x120   : > { %v3030_v38 = vpop.permute.xlu1 %3029  ;;  %v1702_v60 = vsel %vm1689_vm6, %v1669_v25, %v3016_v40  ;;  %v1703_v39 = vsel %vm1689_vm6, %v1670_v30, %v3017_v32  ;;  %v1541_v15 = vsel %vm1524_vm1, %v3288_v5, %v2686_v29  ;;  %v1576_v16 = vsel %vm1557_vm2, %v1543_v46, %v2771_v11  ;;  %v4558_v5 = vld [vmem:[#allocation5_spill] sm:$0xff] }
 0x121   : > { %v3025_v63 = vpop.permute.xlu0 %3024  ;;  %v3032_v34 = vunpack.i.h.bf16 %v3030_v38  ;;  %v3031_v1 = vunpack.i.l.bf16 %v3030_v38  ;;  %v3289_v38 = vld [vmem:[%s3353_s20 + $0xc8] sm:$0xff]  ;;  %v1577_v32 = vsel %vm1557_vm2, %v1544_v2, %v2772_v41 }
 0x122   : > { %v3027_v47 = vunpack.i.h.bf16 %v3025_v63  ;;  %v3026_v8 = vunpack.i.l.bf16 %v3025_v63  ;;  %v1542_v4 = vsel %vm1524_vm1, %v3289_v38, %v2687_v42  ;;  %v1574_v63 = vsel %vm1557_vm2, %v1541_v15, %v2766_v35 }
 0x123   : > { %v1737_v22 = vsel %vm1722_vm7, %v1704_v59, %v3031_v1  ;;  %v1738_v20 = vsel %vm1722_vm7, %v1705_v57, %v3032_v34  ;;  %v1575_v18 = vsel %vm1557_vm2, %v1542_v4, %v2767_v54  ;;  %v2702_v15 = vunpack.i.h.bf16 %v4558_v5  ;;  %v4559_v4 = vld [vmem:[#allocation6_spill] sm:$0xff] }
 0x124   : > { %v3040_v0 = vpop.permute.xlu1 %3039  ;;  %v1735_v52 = vsel %vm1722_vm7, %v1702_v60, %v3026_v8  ;;  %v1736_v3 = vsel %vm1722_vm7, %v1703_v39, %v3027_v47  ;;  %v2701_v38 = vunpack.i.l.bf16 %v4558_v5 }
 0x125   : > { %v3042_v24 = vunpack.i.h.bf16 %v3040_v0  ;;  %v3041_v53 = vunpack.i.l.bf16 %v3040_v0  ;;  %v3035_v37 = vpop.permute.xlu0 %3034 }
 0x126   : > { %v3037_v44 = vunpack.i.h.bf16 %v3035_v37  ;;  %v3036_v45 = vunpack.i.l.bf16 %v3035_v37 }
 0x127   : > { %v1770_v17 = vsel %vm1755_vm8, %v1737_v22, %v3041_v53  ;;  %v1771_v48 = vsel %vm1755_vm8, %v1738_v20, %v3042_v24 }
 0x128   : > { %v1795_v49 = vpack.c.bf16 %v1771_v48, %v1770_v17  ;;  %v1768_v50 = vsel %vm1755_vm8, %v1735_v52, %v3036_v45  ;;  %v1769_v13 = vsel %vm1755_vm8, %v1736_v3, %v3037_v44  ;;  %v3050_v6 = vpop.permute.xlu1 %3049 }
 0x129   : > { %v1794_v51 = vpack.c.bf16 %v1769_v13, %v1768_v50  ;;  %v3045_v58 = vpop.permute.xlu0 %3044  ;;  %v3052_v31 = vunpack.i.h.bf16 %v3050_v6  ;;  %v3051_v23 = vunpack.i.l.bf16 %v3050_v6 }
 0x12a   : > { %v3047_v33 = vunpack.i.h.bf16 %v3045_v58  ;;  %v3046_v26 = vunpack.i.l.bf16 %v3045_v58 }
 0x12b   : > { %2598 = vmatprep.mubr.msk.bf16.mxu0 %vm1831_vm9, %v1794_v51  ;;  %v1609_v55 = vsel %vm1590_vm3, %v1576_v16, %v3051_v23  ;;  %v1610_v14 = vsel %vm1590_vm3, %v1577_v32, %v3052_v31  ;;  %v2697_v16 = vunpack.i.h.bf16 %v4559_v4  ;;  %v2696_v32 = vunpack.i.l.bf16 %v4559_v4 }
 0x12c   : > { %2599 = vmatmul.mubr.msk.bf16.gmra.mrb[12].mxu0 %vm1831_vm9, %v1795_v49  ;;  %v3060_v27 = vpop.permute.xlu1 %3059  ;;  %v1607_v25 = vsel %vm1590_vm3, %v1574_v63, %v3046_v26  ;;  %v1608_v30 = vsel %vm1590_vm3, %v1575_v18, %v3047_v33 }
 0x12d   : > { %v3055_v9 = vpop.permute.xlu0 %3054  ;;  %v3062_v62 = vunpack.i.h.bf16 %v3060_v27  ;;  %v3061_v34 = vunpack.i.l.bf16 %v3060_v27 }
 0x12e   : > { %v3057_v47 = vunpack.i.h.bf16 %v3055_v9  ;;  %v3056_v8 = vunpack.i.l.bf16 %v3055_v9 }
 0x12f   : > { %v1642_v37 = vsel %vm1623_vm4, %v1609_v55, %v3061_v34  ;;  %v1643_v22 = vsel %vm1623_vm4, %v1610_v14, %v3062_v62  ;;  %v4561_v34 = vld [vmem:[#allocation14_spill] sm:$0xff] }
 0x130   : > { %v3070_v28 = vpop.permute.xlu1 %3069  ;;  %v1640_v52 = vsel %vm1623_vm4, %v1607_v25, %v3056_v8  ;;  %v1641_v3 = vsel %vm1623_vm4, %v1608_v30, %v3057_v47  ;;  %v2776_v55 = vunpack.i.l.bf16 %v4561_v34  ;;  %v3290_v25 = vld [vmem:[%s3353_s20 + $0x108] sm:$0xff] }
 0x131   : > { %v3065_v12 = vpop.permute.xlu0 %3064  ;;  %v3072_v59 = vunpack.i.h.bf16 %v3070_v28  ;;  %v3071_v57 = vunpack.i.l.bf16 %v3070_v28  ;;  %v1547_v30 = vsel %vm1524_vm1, %v3290_v25, %v2701_v38 }
 0x132   : > { %v3067_v0 = vunpack.i.h.bf16 %v3065_v12  ;;  %v3066_v60 = vunpack.i.l.bf16 %v3065_v12 }
 0x133   : > { %v1675_v49 = vsel %vm1656_vm5, %v1642_v37, %v3071_v57  ;;  %v1676_v50 = vsel %vm1656_vm5, %v1643_v22, %v3072_v59  ;;  %v3291_v59 = vld [vmem:[%s3353_s20 + $0x110] sm:$0xff] }
 0x134   : > { %v3080_v40 = vpop.permute.xlu1 %3079  ;;  %v1673_v51 = vsel %vm1656_vm5, %v1640_v52, %v3066_v60  ;;  %v1674_v58 = vsel %vm1656_vm5, %v1641_v3, %v3067_v0  ;;  %v1548_v57 = vsel %vm1524_vm1, %v3291_v59, %v2702_v15 }
 0x135   : > { %v3075_v1 = vpop.permute.xlu0 %3074  ;;  %v3082_v39 = vunpack.i.h.bf16 %v3080_v40  ;;  %v3081_v24 = vunpack.i.l.bf16 %v3080_v40  ;;  %v4560_v40 = vld [vmem:[#allocation13_spill] sm:$0xff] }
 0x136   : > { %v3077_v20 = vunpack.i.h.bf16 %v3075_v1  ;;  %v3076_v44 = vunpack.i.l.bf16 %v3075_v1  ;;  %v2782_v63 = vunpack.i.h.bf16 %v4560_v40  ;;  %v2781_v18 = vunpack.i.l.bf16 %v4560_v40 }
 0x137   : > { %v1708_v27 = vsel %vm1689_vm6, %v1675_v49, %v3081_v24  ;;  %v1709_v9 = vsel %vm1689_vm6, %v1676_v50, %v3082_v39  ;;  %v2777_v1 = vunpack.i.h.bf16 %v4561_v34  ;;  %v3292_v39 = vld [vmem:[%s3353_s20 + $0xf0] sm:$0xff] }
 0x138   : > { %v3090_v53 = vpop.permute.xlu1 %3089  ;;  %v1706_v21 = vsel %vm1689_vm6, %v1673_v51, %v3076_v44  ;;  %v1707_v61 = vsel %vm1689_vm6, %v1674_v58, %v3077_v20  ;;  %v1545_v24 = vsel %vm1524_vm1, %v3292_v39, %v2696_v32  ;;  %v1580_v22 = vsel %vm1557_vm2, %v1547_v30, %v2781_v18  ;;  %v4562_v39 = vld [vmem:[#allocation7_spill] sm:$0xff] }
 0x139   : > { %v3085_v45 = vpop.permute.xlu0 %3084  ;;  %v3092_v17 = vunpack.i.h.bf16 %v3090_v53  ;;  %v3091_v48 = vunpack.i.l.bf16 %v3090_v53  ;;  %v3293_v53 = vld [vmem:[%s3353_s20 + $0xf8] sm:$0xff]  ;;  %v1581_v20 = vsel %vm1557_vm2, %v1548_v57, %v2782_v63 }
 0x13a   : > { %v3087_v13 = vunpack.i.h.bf16 %v3085_v45  ;;  %v3086_v6 = vunpack.i.l.bf16 %v3085_v45  ;;  %v1546_v37 = vsel %vm1524_vm1, %v3293_v53, %v2697_v16  ;;  %v1578_v45 = vsel %vm1557_vm2, %v1545_v24, %v2776_v55 }
 0x13b   : > { %v1741_v43 = vsel %vm1722_vm7, %v1708_v27, %v3091_v48  ;;  %v1742_v41 = vsel %vm1722_vm7, %v1709_v9, %v3092_v17  ;;  %v1579_v52 = vsel %vm1557_vm2, %v1546_v37, %v2777_v1  ;;  %v2712_v24 = vunpack.i.h.bf16 %v4562_v39  ;;  %v4563_v37 = vld [vmem:[#allocation8_spill] sm:$0xff] }
 0x13c   : > { %v3100_v56 = vpop.permute.xlu1 %3099  ;;  %v1739_v35 = vsel %vm1722_vm7, %v1706_v21, %v3086_v6  ;;  %v1740_v12 = vsel %vm1722_vm7, %v1707_v61, %v3087_v13  ;;  %v2711_v53 = vunpack.i.l.bf16 %v4562_v39 }
 0x13d   : > { %v3102_v10 = vunpack.i.h.bf16 %v3100_v56  ;;  %v3101_v42 = vunpack.i.l.bf16 %v3100_v56  ;;  %v3095_v29 = vpop.permute.xlu0 %3094 }
 0x13e   : > { %v3097_v11 = vunpack.i.h.bf16 %v3095_v29  ;;  %v3096_v28 = vunpack.i.l.bf16 %v3095_v29 }
 0x13f   : > { %v1774_v19 = vsel %vm1755_vm8, %v1741_v43, %v3101_v42  ;;  %v1775_v54 = vsel %vm1755_vm8, %v1742_v41, %v3102_v10 }
 0x140   : > { %v1797_v31 = vpack.c.bf16 %v1775_v54, %v1774_v19  ;;  %v3110_v23 = vpop.permute.xlu1 %3109  ;;  %v1772_v7 = vsel %vm1755_vm8, %v1739_v35, %v3096_v28  ;;  %v1773_v46 = vsel %vm1755_vm8, %v1740_v12, %v3097_v11 }
 0x141   : > { %v3105_v36 = vpop.permute.xlu0 %3104  ;;  %v1796_v2 = vpack.c.bf16 %v1773_v46, %v1772_v7  ;;  %v3112_v47 = vunpack.i.h.bf16 %v3110_v23  ;;  %v3111_v8 = vunpack.i.l.bf16 %v3110_v23 }
 0x142   : > { %v3107_v0 = vunpack.i.h.bf16 %v3105_v36  ;;  %v3106_v60 = vunpack.i.l.bf16 %v3105_v36 }
 0x143   : > { %2602 = vmatprep.mubr.msk.bf16.mxu1 %vm1831_vm9, %v1796_v2  ;;  %v1613_v49 = vsel %vm1590_vm3, %v1580_v22, %v3111_v8  ;;  %v1614_v50 = vsel %vm1590_vm3, %v1581_v20, %v3112_v47  ;;  %v2707_v22 = vunpack.i.h.bf16 %v4563_v37  ;;  %v2706_v20 = vunpack.i.l.bf16 %v4563_v37 }
 0x144   : > { %2603 = vmatmul.mubr.msk.bf16.vlgmr.msra.gmra.mrb[0].mxu1 %vm1831_vm9, %v1797_v31  ;;  %v3120_v33 = vpop.permute.xlu1 %3119  ;;  %v1611_v51 = vsel %vm1590_vm3, %v1578_v45, %v3106_v60  ;;  %v1612_v58 = vsel %vm1590_vm3, %v1579_v52, %v3107_v0 }
 0x145   : > { %v3115_v26 = vpop.permute.xlu0 %3114  ;;  %v3122_v3 = vunpack.i.h.bf16 %v3120_v33  ;;  %v3121_v17 = vunpack.i.l.bf16 %v3120_v33 }
 0x146   : > { %v3117_v13 = vunpack.i.h.bf16 %v3115_v26  ;;  %v3116_v6 = vunpack.i.l.bf16 %v3115_v26 }
 0x147   : > { %v1646_v29 = vsel %vm1623_vm4, %v1613_v49, %v3121_v17  ;;  %v1647_v43 = vsel %vm1623_vm4, %v1614_v50, %v3122_v3  ;;  %v4565_v17 = vld [vmem:[#allocation16_spill] sm:$0xff] }
 0x148   : > { %v3130_v62 = vpop.permute.xlu1 %3129  ;;  %v1644_v19 = vsel %vm1623_vm4, %v1611_v51, %v3116_v6  ;;  %v1645_v54 = vsel %vm1623_vm4, %v1612_v58, %v3117_v13  ;;  %v2786_v49 = vunpack.i.l.bf16 %v4565_v17  ;;  %v3294_v51 = vld [vmem:[%s3353_s20 + $0x138] sm:$0xff] }
 0x149   : > { %v3125_v14 = vpop.permute.xlu0 %3124  ;;  %v3132_v27 = vunpack.i.h.bf16 %v3130_v62  ;;  %v3131_v9 = vunpack.i.l.bf16 %v3130_v62  ;;  %v1551_v58 = vsel %vm1524_vm1, %v3294_v51, %v2711_v53 }
 0x14a   : > { %v3127_v56 = vunpack.i.h.bf16 %v3125_v14  ;;  %v3126_v21 = vunpack.i.l.bf16 %v3125_v14 }
 0x14b   : > { %v1679_v31 = vsel %vm1656_vm5, %v1646_v29, %v3131_v9  ;;  %v1680_v23 = vsel %vm1656_vm5, %v1647_v43, %v3132_v27  ;;  %v3295_v27 = vld [vmem:[%s3353_s20 + $0x140] sm:$0xff] }
 0x14c   : > { %v3140_v44 = vpop.permute.xlu1 %3139  ;;  %v1677_v36 = vsel %vm1656_vm5, %v1644_v19, %v3126_v21  ;;  %v1678_v2 = vsel %vm1656_vm5, %v1645_v54, %v3127_v56  ;;  %v1552_v9 = vsel %vm1524_vm1, %v3295_v27, %v2712_v24 }
 0x14d   : > { %v3135_v48 = vpop.permute.xlu0 %3134  ;;  %v3142_v61 = vunpack.i.h.bf16 %v3140_v44  ;;  %v3141_v10 = vunpack.i.l.bf16 %v3140_v44  ;;  %v4564_v44 = vld [vmem:[#allocation15_spill] sm:$0xff] }
 0x14e   : > { %v3137_v41 = vunpack.i.h.bf16 %v3135_v48  ;;  %v3136_v11 = vunpack.i.l.bf16 %v3135_v48  ;;  %v2792_v45 = vunpack.i.h.bf16 %v4564_v44  ;;  %v2791_v52 = vunpack.i.l.bf16 %v4564_v44 }
 0x14f   : > { %v1712_v33 = vsel %vm1689_vm6, %v1679_v31, %v3141_v10  ;;  %v1713_v26 = vsel %vm1689_vm6, %v1680_v23, %v3142_v61  ;;  %v2787_v48 = vunpack.i.h.bf16 %v4565_v17  ;;  %v3296_v61 = vld [vmem:[%s3353_s20 + $0x120] sm:$0xff] }
 0x150   : > { %v3150_v42 = vpop.permute.xlu1 %3149  ;;  %v1710_v15 = vsel %vm1689_vm6, %v1677_v36, %v3136_v11  ;;  %v1711_v38 = vsel %vm1689_vm6, %v1678_v2, %v3137_v41  ;;  %v1549_v10 = vsel %vm1524_vm1, %v3296_v61, %v2706_v20  ;;  %v1584_v43 = vsel %vm1557_vm2, %v1551_v58, %v2791_v52 }
 0x151   : > { %v3145_v28 = vpop.permute.xlu0 %3144  ;;  %v3152_v35 = vunpack.i.h.bf16 %v3150_v42  ;;  %v3151_v12 = vunpack.i.l.bf16 %v3150_v42  ;;  %v3297_v42 = vld [vmem:[%s3353_s20 + $0x128] sm:$0xff]  ;;  %v1585_v41 = vsel %vm1557_vm2, %v1552_v9, %v2792_v45  ;;  %s208_s20 = scalar_lea.vmem %s4516_s4, %s2345_s17 }
 0x152   : > { %v3147_v7 = vunpack.i.h.bf16 %v3145_v28  ;;  %v3146_v46 = vunpack.i.l.bf16 %v3145_v28  ;;  %v1550_v29 = vsel %vm1524_vm1, %v3297_v42, %v2707_v22  ;;  %v1582_v28 = vsel %vm1557_vm2, %v1549_v10, %v2786_v49 }
 0x153   : > { %v1745_v40 = vsel %vm1722_vm7, %v1712_v33, %v3151_v12  ;;  %v1746_v63 = vsel %vm1722_vm7, %v1713_v26, %v3152_v35  ;;  %v1583_v19 = vsel %vm1557_vm2, %v1550_v29, %v2787_v48 }
 0x154   : > { %v3160_v5 = vpop.permute.xlu1 %3159  ;;  %v1743_v34 = vsel %vm1722_vm7, %v1710_v15, %v3146_v46  ;;  %v1744_v1 = vsel %vm1722_vm7, %v1711_v38, %v3147_v7 }
 0x155   : > { %v3162_v4 = vunpack.i.h.bf16 %v3160_v5  ;;  %v3161_v16 = vunpack.i.l.bf16 %v3160_v5  ;;  %v3155_v32 = vpop.permute.xlu0 %3154 }
 0x156   : > { %v3157_v18 = vunpack.i.h.bf16 %v3155_v32  ;;  %v3156_v62 = vunpack.i.l.bf16 %v3155_v32 }
 0x157   : > { %v1778_v55 = vsel %vm1755_vm8, %v1745_v40, %v3161_v16  ;;  %v1779_v14 = vsel %vm1755_vm8, %v1746_v63, %v3162_v4 }
 0x158   : > { %v1799_v47 = vpack.c.bf16 %v1779_v14, %v1778_v55  ;;  %v1776_v8 = vsel %vm1755_vm8, %v1743_v34, %v3156_v62  ;;  %v1777_v25 = vsel %vm1755_vm8, %v1744_v1, %v3157_v18  ;;  %v3170_v30 = vpop.permute.xlu1 %3169 }
 0x159   : > { %v1798_v59 = vpack.c.bf16 %v1777_v25, %v1776_v8  ;;  %v3165_v57 = vpop.permute.xlu0 %3164  ;;  %v3172_v13 = vunpack.i.h.bf16 %v3170_v30  ;;  %v3171_v6 = vunpack.i.l.bf16 %v3170_v30 }
 0x15a   : > { %v3167_v56 = vunpack.i.h.bf16 %v3165_v57  ;;  %v3166_v21 = vunpack.i.l.bf16 %v3165_v57 }
 0x15b   : > { %2606 = vmatprep.mubr.msk.bf16.mxu1 %vm1831_vm9, %v1798_v59  ;;  %v1617_v31 = vsel %vm1590_vm3, %v1584_v43, %v3171_v6  ;;  %v1618_v23 = vsel %vm1590_vm3, %v1585_v41, %v3172_v13 }
 0x15c   : > { %2607 = vmatmul.mubr.msk.bf16.gmra.mrb[4].mxu1 %vm1831_vm9, %v1799_v47  ;;  %v3180_v0 = vpop.permute.xlu1 %3179  ;;  %v1615_v36 = vsel %vm1590_vm3, %v1582_v28, %v3166_v21  ;;  %v1616_v2 = vsel %vm1590_vm3, %v1583_v19, %v3167_v56 }
 0x15d   : > { %v3175_v60 = vpop.permute.xlu0 %3174  ;;  %v3182_v54 = vunpack.i.h.bf16 %v3180_v0  ;;  %v3181_v35 = vunpack.i.l.bf16 %v3180_v0 }
 0x15e   : > { %v3177_v7 = vunpack.i.h.bf16 %v3175_v60  ;;  %v3176_v46 = vunpack.i.l.bf16 %v3175_v60 }
 0x15f   : > { %v1650_v32 = vsel %vm1623_vm4, %v1617_v31, %v3181_v35  ;;  %v1651_v40 = vsel %vm1623_vm4, %v1618_v23, %v3182_v54  ;;  %v4566_v35 = vld [vmem:[#allocation17_spill] sm:$0xff]  ;;  %v4567_v31 = vld [vmem:[#allocation18_spill] sm:$0xff] }
 0x160   : > { %v3190_v3 = vpop.permute.xlu1 %3189  ;;  %v1648_v34 = vsel %vm1623_vm4, %v1615_v36, %v3176_v46  ;;  %v1649_v1 = vsel %vm1623_vm4, %v1616_v2, %v3177_v7  ;;  %v4568_v36 = vld [vmem:[#allocation19_spill] sm:$0xff] }
 0x161   : > { %v3185_v50 = vpop.permute.xlu0 %3184  ;;  %v3192_v33 = vunpack.i.h.bf16 %v3190_v3  ;;  %v3191_v26 = vunpack.i.l.bf16 %v3190_v3 }
 0x162   : > { %v3187_v5 = vunpack.i.h.bf16 %v3185_v50  ;;  %v3186_v15 = vunpack.i.l.bf16 %v3185_v50 }
 0x163   : > { %v1683_v47 = vsel %vm1656_vm5, %v1650_v32, %v3191_v26  ;;  %v1684_v8 = vsel %vm1656_vm5, %v1651_v40, %v3192_v33  ;;  %v4569_v33 = vld [vmem:[#allocation20_spill] sm:$0xff] }
 0x164   : > { %v3200_v11 = vpop.permute.xlu1 %3199  ;;  %v1681_v59 = vsel %vm1656_vm5, %v1648_v34, %v3186_v15  ;;  %v1682_v57 = vsel %vm1656_vm5, %v1649_v1, %v3187_v5 }
 0x165   : > { %v3195_v12 = vpop.permute.xlu0 %3194  ;;  %v3202_v38 = vunpack.i.h.bf16 %v3200_v11  ;;  %v3201_v4 = vunpack.i.l.bf16 %v3200_v11 }
 0x166   : > { %v3197_v63 = vunpack.i.h.bf16 %v3195_v12  ;;  %v3196_v18 = vunpack.i.l.bf16 %v3195_v12 }
 0x167   : > { %v1716_v0 = vsel %vm1689_vm6, %v1683_v47, %v3201_v4  ;;  %v1717_v60 = vsel %vm1689_vm6, %v1684_v8, %v3202_v38 }
 0x168   : > { %v3210_v16 = vpop.permute.xlu1 %3209  ;;  %v1714_v24 = vsel %vm1689_vm6, %v1681_v59, %v3196_v18  ;;  %v1715_v53 = vsel %vm1689_vm6, %v1682_v57, %v3197_v63 }
 0x169   : > { %v3205_v62 = vpop.permute.xlu0 %3204  ;;  %v3212_v55 = vunpack.i.h.bf16 %v3210_v16  ;;  %v3211_v14 = vunpack.i.l.bf16 %v3210_v16 }
 0x16a   : > { %v3207_v25 = vunpack.i.h.bf16 %v3205_v62  ;;  %v3206_v30 = vunpack.i.l.bf16 %v3205_v62 }
 0x16b   : > { %v1749_v44 = vsel %vm1722_vm7, %v1716_v0, %v3211_v14  ;;  %v1750_v45 = vsel %vm1722_vm7, %v1717_v60, %v3212_v55 }
 0x16c   : > { %v3220_v39 = vpop.permute.xlu1 %3219  ;;  %v1747_v17 = vsel %vm1722_vm7, %v1714_v24, %v3206_v30  ;;  %v1748_v48 = vsel %vm1722_vm7, %v1715_v53, %v3207_v25 }
 0x16d   : > { %v3222_v37 = vunpack.i.h.bf16 %v3220_v39  ;;  %v3221_v22 = vunpack.i.l.bf16 %v3220_v39  ;;  %v3215_v20 = vpop.permute.xlu0 %3214 }
 0x16e   : > { %v3217_v52 = vunpack.i.h.bf16 %v3215_v20  ;;  %v3216_v3 = vunpack.i.l.bf16 %v3215_v20 }
 0x16f   : > { %v1782_v49 = vsel %vm1755_vm8, %v1749_v44, %v3221_v22  ;;  %v1783_v50 = vsel %vm1755_vm8, %v1750_v45, %v3222_v37 }
 0x170   : > { %v1801_v13 = vpack.c.bf16 %v1783_v50, %v1782_v49  ;;  %v1780_v6 = vsel %vm1755_vm8, %v1747_v17, %v3216_v3  ;;  %v1781_v51 = vsel %vm1755_vm8, %v1748_v48, %v3217_v52  ;;  %v3230_v58 = vpop.permute.xlu1 %3229 }
 0x171   : > { %v1800_v27 = vpack.c.bf16 %v1781_v51, %v1780_v6  ;;  %v3225_v9 = vpop.permute.xlu0 %3224  ;;  %v3232_v42 = vunpack.i.h.bf16 %v3230_v58  ;;  %v3231_v29 = vunpack.i.l.bf16 %v3230_v58 }
 0x172   : > { %v3227_v43 = vunpack.i.h.bf16 %v3225_v9  ;;  %v3226_v41 = vunpack.i.l.bf16 %v3225_v9 }
 0x173   : > { %2610 = vmatprep.mubr.msk.bf16.mxu1 %vm1831_vm9, %v1800_v27  ;;  %v1621_v12 = vsel %vm1590_vm3, %v4566_v35, %v3231_v29  ;;  %v1622_v23 = vsel %vm1590_vm3, %v4567_v31, %v3232_v42 }
 0x174   : > { %2611 = vmatmul.mubr.msk.bf16.gmra.mrb[8].mxu1 %vm1831_vm9, %v1801_v13  ;;  %v3240_v56 = vpop.permute.xlu1 %3239  ;;  %v1619_v2 = vsel %vm1590_vm3, %v4568_v36, %v3226_v41  ;;  %v1620_v26 = vsel %vm1590_vm3, %v4569_v33, %v3227_v43 }
 0x175   : > { %v3235_v21 = vpop.permute.xlu0 %3234  ;;  %v3242_v28 = vunpack.i.h.bf16 %v3240_v56  ;;  %v3241_v19 = vunpack.i.l.bf16 %v3240_v56  ;;  %v4338_v56 = vld [vmem:[%s4514_s2] ss:$0 sm:$0xff] }
 0x176   : > { %v3237_v7 = vunpack.i.h.bf16 %v3235_v21  ;;  %v3236_v46 = vunpack.i.l.bf16 %v3235_v21 }
 0x177   : > { %v1654_v63 = vsel %vm1623_vm4, %v1621_v12, %v3241_v19  ;;  %v1655_v18 = vsel %vm1623_vm4, %v1622_v23, %v3242_v28 }
 0x178   : > { %v3250_v61 = vpop.permute.xlu1 %3249  ;;  %v1652_v55 = vsel %vm1623_vm4, %v1619_v2, %v3236_v46  ;;  %v1653_v14 = vsel %vm1623_vm4, %v1620_v26, %v3237_v7 }
 0x179   : > { %v3245_v10 = vpop.permute.xlu0 %3244  ;;  %v3252_v5 = vunpack.i.h.bf16 %v3250_v61  ;;  %v3251_v15 = vunpack.i.l.bf16 %v3250_v61 }
 0x17a   : > { %v3247_v38 = vunpack.i.h.bf16 %v3245_v10  ;;  %v3246_v4 = vunpack.i.l.bf16 %v3245_v10 }
 0x17b   : > { %v1687_v25 = vsel %vm1656_vm5, %v1654_v63, %v3251_v15  ;;  %v1688_v30 = vsel %vm1656_vm5, %v1655_v18, %v3252_v5 }
 0x17c   : > { %v3260_v11 = vpop.permute.xlu1 %3259  ;;  %v1685_v0 = vsel %vm1656_vm5, %v1652_v55, %v3246_v4  ;;  %v1686_v60 = vsel %vm1656_vm5, %v1653_v14, %v3247_v38 }
 0x17d   : > { %v3255_v54 = vpop.permute.xlu0 %3254  ;;  %v3262_v16 = vunpack.i.h.bf16 %v3260_v11  ;;  %v3261_v32 = vunpack.i.l.bf16 %v3260_v11 }
 0x17e   : > { %v3257_v62 = vunpack.i.h.bf16 %v3255_v54  ;;  %v3256_v34 = vunpack.i.l.bf16 %v3255_v54 }
 0x17f   : > { %v1720_v39 = vsel %vm1689_vm6, %v1687_v25, %v3261_v32  ;;  %v1721_v24 = vsel %vm1689_vm6, %v1688_v30, %v3262_v16 }
 0x180   : > { %v3270_v40 = vpop.permute.xlu1 %3269  ;;  %v1718_v37 = vsel %vm1689_vm6, %v1685_v0, %v3256_v34  ;;  %v1719_v22 = vsel %vm1689_vm6, %v1686_v60, %v3257_v62 }
 0x181   : > { %v3265_v1 = vpop.permute.xlu0 %3264  ;;  %v3272_v47 = vunpack.i.h.bf16 %v3270_v40  ;;  %v3271_v8 = vunpack.i.l.bf16 %v3270_v40 }
 0x182   : > { %v3267_v59 = vunpack.i.h.bf16 %v3265_v1  ;;  %v3266_v57 = vunpack.i.l.bf16 %v3265_v1 }
 0x183   : > { %v1753_v52 = vsel %vm1722_vm7, %v1720_v39, %v3271_v8  ;;  %v1754_v3 = vsel %vm1722_vm7, %v1721_v24, %v3272_v47 }
 0x184   : > { %v3280_v53 = vpop.permute.xlu1 %3279  ;;  %v1751_v49 = vsel %vm1722_vm7, %v1718_v37, %v3266_v57  ;;  %v1752_v50 = vsel %vm1722_vm7, %v1719_v22, %v3267_v59 }
 0x185   : > { %v3282_v20 = vunpack.i.h.bf16 %v3280_v53  ;;  %v3281_v44 = vunpack.i.l.bf16 %v3280_v53  ;;  %v3275_v45 = vpop.permute.xlu0 %3274 }
 0x186   : > { %v3277_v17 = vunpack.i.h.bf16 %v3275_v45  ;;  %v3276_v48 = vunpack.i.l.bf16 %v3275_v45 }
 0x187   : > { %v1786_v13 = vsel %vm1755_vm8, %v1753_v52, %v3281_v44  ;;  %v1787_v6 = vsel %vm1755_vm8, %v1754_v3, %v3282_v20 }
 0x188   : > { %v1803_v51 = vpack.c.bf16 %v1787_v6, %v1786_v13  ;;  %v1784_v58 = vsel %vm1755_vm8, %v1751_v49, %v3276_v48  ;;  %v1785_v27 = vsel %vm1755_vm8, %v1752_v50, %v3277_v17 }
 0x189   : > { %v1802_v9 = vpack.c.bf16 %v1785_v27, %v1784_v58 }
 0x18b   : > { %2614 = vmatprep.mubr.msk.bf16.mxu1 %vm1831_vm9, %v1802_v9 }
 0x18c   : > { %2615 = vmatmul.mubr.msk.bf16.gmra.mrb[12].mxu1 %vm1831_vm9, %v1803_v51 }
 0x1bf   : > { %v2588_v21 = vpop.f32.mrb[0].mxu0 }
 0x1c0   : > { %v1927_v61 = vadd.f32 %v2588_v21, %v4338_v56  ;;  %v1918_v10 = vpop.f32.mrb[1].mxu0 }
 0x1c1   : > { %v1919_v42 = vadd.f32 %v4338_v56, %v1918_v10  ;;  %v2589_v29 = vpop.f32.mrb[2].mxu0 }
 0x1c2   : > { %2221 = vst.msk [vmem:[%s4343_s14 + $0x10] sm:$0xff] %vm1557_vm2, %v1927_v61  ;;  %v1930_v43 = vadd.f32 %v2589_v29, %v4338_v56  ;;  %v1921_v41 = vpop.f32.mrb[3].mxu0  ;;  %v2116_v19 = vmul.f32 %v1927_v61, %v1927_v61  ;;  %v2048_v23 = vsel %vm1557_vm2, %v1927_v61, 0.0 }
 0x1c3   : > { %v2114_v11 = vmul.f32 %v1919_v42, %v1919_v42  ;;  %2219 = vst.msk [vmem:[%s4343_s14] sm:$0xff] %vm1557_vm2, %v1919_v42  ;;  %v1922_v28 = vadd.f32 %v4338_v56, %v1921_v41  ;;  %v2045_v54 = vsel %vm1557_vm2, %v1919_v42, 0.0 }
 0x1c4   : > { %2222 = vst.msk [vmem:[%s4343_s14 + $0x18] sm:$0xff] %vm1557_vm2, %v1930_v43  ;;  %v2117_v46 = vmul.f32 %v1930_v43, %v1930_v43  ;;  %v2149_v26 = vsel %vm1557_vm2, %v2116_v19, 0.0  ;;  %v2050_v5 = vsel %vm1557_vm2, %v1930_v43, 0.0 }
 0x1c5   : > { %v2046_v35 = vsel %vm1557_vm2, %v1922_v28, 0.0  ;;  %v2115_v12 = vmul.f32 %v1922_v28, %v1922_v28  ;;  %2220 = vst.msk [vmem:[%s4343_s14 + $0x8] sm:$0xff] %vm1557_vm2, %v1922_v28  ;;  %v2146_v7 = vsel %vm1557_vm2, %v2114_v11, 0.0 }
 0x1c6   : > { %v2047_v31 = vadd.f32 %v2046_v35, %v2045_v54  ;;  %v2151_v4 = vsel %vm1557_vm2, %v2117_v46, 0.0 }
 0x1c7   : > { %v2147_v36 = vsel %vm1557_vm2, %v2115_v12, 0.0 }
 0x1c8   : > { %v2049_v2 = vadd.f32 %v2048_v23, %v2047_v31  ;;  %v2148_v33 = vadd.f32 %v2147_v36, %v2146_v7 }
 0x1ca   : > { %v2150_v15 = vadd.f32 %v2149_v26, %v2148_v33  ;;  %v2051_v38 = vadd.f32 %v2050_v5, %v2049_v2 }
 0x1cc   : > { %v2152_v16 = vadd.f32 %v2151_v4, %v2150_v15 }
 0x1d3   : > { %v2592_v32 = vpop.f32.mrb[4].mxu0 }
 0x1d4   : > { %v1943_v40 = vadd.f32 %v2592_v32, %v4338_v56  ;;  %v1934_v63 = vpop.f32.mrb[5].mxu0 }
 0x1d5   : > { %v1935_v18 = vadd.f32 %v4338_v56, %v1934_v63  ;;  %v2593_v62 = vpop.f32.mrb[6].mxu0 }
 0x1d6   : > { %2225 = vst.msk [vmem:[%s4343_s14 + $0x30] sm:$0xff] %vm1557_vm2, %v1943_v40  ;;  %v1946_v34 = vadd.f32 %v2593_v62, %v4338_v56  ;;  %v1937_v1 = vpop.f32.mrb[7].mxu0  ;;  %v2120_v25 = vmul.f32 %v1943_v40, %v1943_v40  ;;  %v2056_v39 = vsel %vm1557_vm2, %v1943_v40, 0.0 }
 0x1d7   : > { %v2052_v55 = vsel %vm1557_vm2, %v1935_v18, 0.0  ;;  %v2118_v14 = vmul.f32 %v1935_v18, %v1935_v18  ;;  %2223 = vst.msk [vmem:[%s4343_s14 + $0x20] sm:$0xff] %vm1557_vm2, %v1935_v18  ;;  %v1938_v47 = vadd.f32 %v4338_v56, %v1937_v1 }
 0x1d8   : > { %v2053_v8 = vadd.f32 %v2052_v55, %v2051_v38  ;;  %2226 = vst.msk [vmem:[%s4343_s14 + $0x38] sm:$0xff] %vm1557_vm2, %v1946_v34  ;;  %v2121_v24 = vmul.f32 %v1946_v34, %v1946_v34  ;;  %v2157_v20 = vsel %vm1557_vm2, %v2120_v25, 0.0  ;;  %v2058_v44 = vsel %vm1557_vm2, %v1946_v34, 0.0 }
 0x1d9   : > { %v2153_v30 = vsel %vm1557_vm2, %v2118_v14, 0.0  ;;  %v2054_v59 = vsel %vm1557_vm2, %v1938_v47, 0.0  ;;  %v2119_v57 = vmul.f32 %v1938_v47, %v1938_v47  ;;  %2224 = vst.msk [vmem:[%s4343_s14 + $0x28] sm:$0xff] %vm1557_vm2, %v1938_v47 }
 0x1da   : > { %v2154_v0 = vadd.f32 %v2153_v30, %v2152_v16  ;;  %v2055_v60 = vadd.f32 %v2054_v59, %v2053_v8  ;;  %v2159_v3 = vsel %vm1557_vm2, %v2121_v24, 0.0 }
 0x1db   : > { %v2155_v53 = vsel %vm1557_vm2, %v2119_v57, 0.0 }
 0x1dc   : > { %v2057_v37 = vadd.f32 %v2056_v39, %v2055_v60  ;;  %v2156_v22 = vadd.f32 %v2155_v53, %v2154_v0 }
 0x1de   : > { %v2158_v45 = vadd.f32 %v2157_v20, %v2156_v22  ;;  %v2059_v52 = vadd.f32 %v2058_v44, %v2057_v37 }
 0x1e0   : > { %v2160_v17 = vadd.f32 %v2159_v3, %v2158_v45 }
 0x1e7   : > { %v2596_v48 = vpop.f32.mrb[8].mxu0 }
 0x1e8   : > { %v1959_v49 = vadd.f32 %v2596_v48, %v4338_v56  ;;  %v1950_v50 = vpop.f32.mrb[9].mxu0 }
 0x1e9   : > { %v1951_v13 = vadd.f32 %v4338_v56, %v1950_v50  ;;  %v2597_v6 = vpop.f32.mrb[10].mxu0 }
 0x1ea   : > { %2229 = vst.msk [vmem:[%s4343_s14 + $0x50] sm:$0xff] %vm1557_vm2, %v1959_v49  ;;  %v1962_v51 = vadd.f32 %v2597_v6, %v4338_v56  ;;  %v1953_v58 = vpop.f32.mrb[11].mxu0  ;;  %v2124_v10 = vmul.f32 %v1959_v49, %v1959_v49  ;;  %v2064_v28 = vsel %vm1557_vm2, %v1959_v49, 0.0 }
 0x1eb   : > { %v2060_v27 = vsel %vm1557_vm2, %v1951_v13, 0.0  ;;  %v2122_v9 = vmul.f32 %v1951_v13, %v1951_v13  ;;  %2227 = vst.msk [vmem:[%s4343_s14 + $0x40] sm:$0xff] %vm1557_vm2, %v1951_v13  ;;  %v1954_v21 = vadd.f32 %v4338_v56, %v1953_v58 }
 0x1ec   : > { %v2061_v61 = vadd.f32 %v2060_v27, %v2059_v52  ;;  %2230 = vst.msk [vmem:[%s4343_s14 + $0x58] sm:$0xff] %vm1557_vm2, %v1962_v51  ;;  %v2125_v19 = vmul.f32 %v1962_v51, %v1962_v51  ;;  %v2165_v31 = vsel %vm1557_vm2, %v2124_v10, 0.0  ;;  %v2066_v23 = vsel %vm1557_vm2, %v1962_v51, 0.0 }
 0x1ed   : > { %v2161_v42 = vsel %vm1557_vm2, %v2122_v9, 0.0  ;;  %v2062_v29 = vsel %vm1557_vm2, %v1954_v21, 0.0  ;;  %v2123_v43 = vmul.f32 %v1954_v21, %v1954_v21  ;;  %2228 = vst.msk [vmem:[%s4343_s14 + $0x48] sm:$0xff] %vm1557_vm2, %v1954_v21 }
 0x1ee   : > { %v2162_v41 = vadd.f32 %v2161_v42, %v2160_v17  ;;  %v2063_v11 = vadd.f32 %v2062_v29, %v2061_v61  ;;  %v2167_v36 = vsel %vm1557_vm2, %v2125_v19, 0.0 }
 0x1ef   : > { %v2163_v54 = vsel %vm1557_vm2, %v2123_v43, 0.0 }
 0x1f0   : > { %v2065_v35 = vadd.f32 %v2064_v28, %v2063_v11  ;;  %v2164_v12 = vadd.f32 %v2163_v54, %v2162_v41 }
 0x1f2   : > { %v2166_v7 = vadd.f32 %v2165_v31, %v2164_v12  ;;  %v2067_v46 = vadd.f32 %v2066_v23, %v2065_v35 }
 0x1f4   : > { %v2168_v2 = vadd.f32 %v2167_v36, %v2166_v7 }
 0x1ff   : > { %v2600_v33 = vpop.f32.mrb[12].mxu0 }
 0x200   : > { %v1975_v26 = vadd.f32 %v2600_v33, %v4338_v56  ;;  %v1966_v5 = vpop.f32.mrb[13].mxu0 }
 0x201   : > { %v1967_v15 = vadd.f32 %v4338_v56, %v1966_v5  ;;  %v2601_v38 = vpop.f32.mrb[14].mxu0 }
 0x202   : > { %2233 = vst.msk [vmem:[%s4343_s14 + $0x70] sm:$0xff] %vm1557_vm2, %v1975_v26  ;;  %v1978_v4 = vadd.f32 %v2601_v38, %v4338_v56  ;;  %v1969_v16 = vpop.f32.mrb[15].mxu0  ;;  %v2128_v62 = vmul.f32 %v1975_v26, %v1975_v26  ;;  %v2072_v8 = vsel %vm1557_vm2, %v1975_v26, 0.0 }
 0x203   : > { %v2068_v32 = vsel %vm1557_vm2, %v1967_v15, 0.0  ;;  %v2126_v40 = vmul.f32 %v1967_v15, %v1967_v15  ;;  %2231 = vst.msk [vmem:[%s4343_s14 + $0x60] sm:$0xff] %vm1557_vm2, %v1967_v15  ;;  %v1970_v63 = vadd.f32 %v4338_v56, %v1969_v16 }
 0x204   : > { %v2069_v18 = vadd.f32 %v2068_v32, %v2067_v46  ;;  %2234 = vst.msk [vmem:[%s4343_s14 + $0x78] sm:$0xff] %vm1557_vm2, %v1978_v4  ;;  %v2129_v25 = vmul.f32 %v1978_v4, %v1978_v4  ;;  %v2173_v0 = vsel %vm1557_vm2, %v2128_v62, 0.0  ;;  %v2074_v60 = vsel %vm1557_vm2, %v1978_v4, 0.0 }
 0x205   : > { %v2169_v34 = vsel %vm1557_vm2, %v2126_v40, 0.0  ;;  %v2070_v1 = vsel %vm1557_vm2, %v1970_v63, 0.0  ;;  %v2127_v55 = vmul.f32 %v1970_v63, %v1970_v63  ;;  %2232 = vst.msk [vmem:[%s4343_s14 + $0x68] sm:$0xff] %vm1557_vm2, %v1970_v63 }
 0x206   : > { %v2170_v14 = vadd.f32 %v2169_v34, %v2168_v2  ;;  %v2071_v47 = vadd.f32 %v2070_v1, %v2069_v18  ;;  %v2175_v53 = vsel %vm1557_vm2, %v2129_v25, 0.0 }
 0x207   : > { %v2171_v30 = vsel %vm1557_vm2, %v2127_v55, 0.0 }
 0x208   : > { %v2073_v59 = vadd.f32 %v2072_v8, %v2071_v47  ;;  %v2172_v57 = vadd.f32 %v2171_v30, %v2170_v14 }
 0x20a   : > { %v2174_v39 = vadd.f32 %v2173_v0, %v2172_v57  ;;  %v2075_v24 = vadd.f32 %v2074_v60, %v2073_v59 }
 0x20c   : > { %v2176_v37 = vadd.f32 %v2175_v53, %v2174_v39 }
 0x217   : > { %v2604_v22 = vpop.f32.mrb[0].mxu1 }
 0x218   : > { %v1991_v20 = vadd.f32 %v2604_v22, %v4338_v56  ;;  %v1982_v44 = vpop.f32.mrb[1].mxu1 }
 0x219   : > { %v1983_v45 = vadd.f32 %v4338_v56, %v1982_v44  ;;  %v2605_v52 = vpop.f32.mrb[2].mxu1 }
 0x21a   : > { %2237 = vst.msk [vmem:[%s4343_s14 + $0x90] sm:$0xff] %vm1557_vm2, %v1991_v20  ;;  %v1994_v3 = vadd.f32 %v2605_v52, %v4338_v56  ;;  %v1985_v17 = vpop.f32.mrb[3].mxu1  ;;  %v2132_v6 = vmul.f32 %v1991_v20, %v1991_v20  ;;  %v2080_v61 = vsel %vm1557_vm2, %v1991_v20, 0.0 }
 0x21b   : > { %v2076_v48 = vsel %vm1557_vm2, %v1983_v45, 0.0  ;;  %v2130_v49 = vmul.f32 %v1983_v45, %v1983_v45  ;;  %2235 = vst.msk [vmem:[%s4343_s14 + $0x80] sm:$0xff] %vm1557_vm2, %v1983_v45  ;;  %v1986_v50 = vadd.f32 %v4338_v56, %v1985_v17 }
 0x21c   : > { %v2077_v13 = vadd.f32 %v2076_v48, %v2075_v24  ;;  %2238 = vst.msk [vmem:[%s4343_s14 + $0x98] sm:$0xff] %vm1557_vm2, %v1994_v3  ;;  %v2133_v10 = vmul.f32 %v1994_v3, %v1994_v3  ;;  %v2181_v41 = vsel %vm1557_vm2, %v2132_v6, 0.0  ;;  %v2082_v11 = vsel %vm1557_vm2, %v1994_v3, 0.0 }
 0x21d   : > { %v2177_v51 = vsel %vm1557_vm2, %v2130_v49, 0.0  ;;  %v2078_v58 = vsel %vm1557_vm2, %v1986_v50, 0.0  ;;  %v2131_v27 = vmul.f32 %v1986_v50, %v1986_v50  ;;  %2236 = vst.msk [vmem:[%s4343_s14 + $0x88] sm:$0xff] %vm1557_vm2, %v1986_v50 }
 0x21e   : > { %v2178_v9 = vadd.f32 %v2177_v51, %v2176_v37  ;;  %v2079_v21 = vadd.f32 %v2078_v58, %v2077_v13  ;;  %v2183_v54 = vsel %vm1557_vm2, %v2133_v10, 0.0 }
 0x21f   : > { %v2179_v42 = vsel %vm1557_vm2, %v2131_v27, 0.0 }
 0x220   : > { %v2081_v29 = vadd.f32 %v2080_v61, %v2079_v21  ;;  %v2180_v43 = vadd.f32 %v2179_v42, %v2178_v9 }
 0x222   : > { %v2182_v28 = vadd.f32 %v2181_v41, %v2180_v43  ;;  %v2083_v19 = vadd.f32 %v2082_v11, %v2081_v29 }
 0x224   : > { %v2184_v35 = vadd.f32 %v2183_v54, %v2182_v28 }
 0x22f   : > { %v2608_v12 = vpop.f32.mrb[4].mxu1 }
 0x230   : > { %v2007_v31 = vadd.f32 %v2608_v12, %v4338_v56  ;;  %v1998_v23 = vpop.f32.mrb[5].mxu1 }
 0x231   : > { %v1999_v7 = vadd.f32 %v4338_v56, %v1998_v23  ;;  %v2609_v46 = vpop.f32.mrb[6].mxu1 }
 0x232   : > { %2241 = vst.msk [vmem:[%s4343_s14 + $0xb0] sm:$0xff] %vm1557_vm2, %v2007_v31  ;;  %v2010_v36 = vadd.f32 %v2609_v46, %v4338_v56  ;;  %v2001_v2 = vpop.f32.mrb[7].mxu1  ;;  %v2136_v38 = vmul.f32 %v2007_v31, %v2007_v31  ;;  %v2088_v18 = vsel %vm1557_vm2, %v2007_v31, 0.0 }
 0x233   : > { %v2084_v33 = vsel %vm1557_vm2, %v1999_v7, 0.0  ;;  %v2134_v26 = vmul.f32 %v1999_v7, %v1999_v7  ;;  %2239 = vst.msk [vmem:[%s4343_s14 + $0xa0] sm:$0xff] %vm1557_vm2, %v1999_v7  ;;  %v2002_v5 = vadd.f32 %v4338_v56, %v2001_v2 }
 0x234   : > { %v2085_v15 = vadd.f32 %v2084_v33, %v2083_v19  ;;  %2242 = vst.msk [vmem:[%s4343_s14 + $0xb8] sm:$0xff] %vm1557_vm2, %v2010_v36  ;;  %v2137_v62 = vmul.f32 %v2010_v36, %v2010_v36  ;;  %v2189_v14 = vsel %vm1557_vm2, %v2136_v38, 0.0  ;;  %v2090_v47 = vsel %vm1557_vm2, %v2010_v36, 0.0 }
 0x235   : > { %v2185_v4 = vsel %vm1557_vm2, %v2134_v26, 0.0  ;;  %v2086_v16 = vsel %vm1557_vm2, %v2002_v5, 0.0  ;;  %v2135_v32 = vmul.f32 %v2002_v5, %v2002_v5  ;;  %2240 = vst.msk [vmem:[%s4343_s14 + $0xa8] sm:$0xff] %vm1557_vm2, %v2002_v5 }
 0x236   : > { %v2186_v40 = vadd.f32 %v2185_v4, %v2184_v35  ;;  %v2087_v63 = vadd.f32 %v2086_v16, %v2085_v15  ;;  %v2191_v30 = vsel %vm1557_vm2, %v2137_v62, 0.0 }
 0x237   : > { %v2187_v34 = vsel %vm1557_vm2, %v2135_v32, 0.0 }
 0x238   : > { %v2089_v1 = vadd.f32 %v2088_v18, %v2087_v63  ;;  %v2188_v55 = vadd.f32 %v2187_v34, %v2186_v40 }
 0x23a   : > { %v2190_v8 = vadd.f32 %v2189_v14, %v2188_v55  ;;  %v2091_v25 = vadd.f32 %v2090_v47, %v2089_v1 }
 0x23c   : > { %v2192_v59 = vadd.f32 %v2191_v30, %v2190_v8 }
 0x247   : > { %v2612_v57 = vpop.f32.mrb[8].mxu1 }
 0x248   : > { %v2023_v0 = vadd.f32 %v2612_v57, %v4338_v56  ;;  %v2014_v60 = vpop.f32.mrb[9].mxu1 }
 0x249   : > { %v2015_v39 = vadd.f32 %v4338_v56, %v2014_v60  ;;  %v2613_v24 = vpop.f32.mrb[10].mxu1 }
 0x24a   : > { %2245 = vst.msk [vmem:[%s4343_s14 + $0xd0] sm:$0xff] %vm1557_vm2, %v2023_v0  ;;  %v2026_v53 = vadd.f32 %v2613_v24, %v4338_v56  ;;  %v2017_v37 = vpop.f32.mrb[11].mxu1  ;;  %v2140_v52 = vmul.f32 %v2023_v0, %v2023_v0  ;;  %v2096_v13 = vsel %vm1557_vm2, %v2023_v0, 0.0 }
 0x24b   : > { %v2092_v22 = vsel %vm1557_vm2, %v2015_v39, 0.0  ;;  %v2138_v20 = vmul.f32 %v2015_v39, %v2015_v39  ;;  %2243 = vst.msk [vmem:[%s4343_s14 + $0xc0] sm:$0xff] %vm1557_vm2, %v2015_v39  ;;  %v2018_v44 = vadd.f32 %v4338_v56, %v2017_v37 }
 0x24c   : > { %v2093_v45 = vadd.f32 %v2092_v22, %v2091_v25  ;;  %2246 = vst.msk [vmem:[%s4343_s14 + $0xd8] sm:$0xff] %vm1557_vm2, %v2026_v53  ;;  %v2141_v6 = vmul.f32 %v2026_v53, %v2026_v53  ;;  %v2197_v9 = vsel %vm1557_vm2, %v2140_v52, 0.0  ;;  %v2098_v21 = vsel %vm1557_vm2, %v2026_v53, 0.0 }
 0x24d   : > { %v2193_v3 = vsel %vm1557_vm2, %v2138_v20, 0.0  ;;  %v2094_v17 = vsel %vm1557_vm2, %v2018_v44, 0.0  ;;  %v2139_v48 = vmul.f32 %v2018_v44, %v2018_v44  ;;  %2244 = vst.msk [vmem:[%s4343_s14 + $0xc8] sm:$0xff] %vm1557_vm2, %v2018_v44 }
 0x24e   : > { %v2194_v49 = vadd.f32 %v2193_v3, %v2192_v59  ;;  %v2095_v50 = vadd.f32 %v2094_v17, %v2093_v45  ;;  %v2199_v42 = vsel %vm1557_vm2, %v2141_v6, 0.0 }
 0x24f   : > { %v2195_v51 = vsel %vm1557_vm2, %v2139_v48, 0.0 }
 0x250   : > { %v2097_v58 = vadd.f32 %v2096_v13, %v2095_v50  ;;  %v2196_v27 = vadd.f32 %v2195_v51, %v2194_v49 }
 0x252   : > { %v2198_v61 = vadd.f32 %v2197_v9, %v2196_v27  ;;  %v2099_v10 = vadd.f32 %v2098_v21, %v2097_v58 }
 0x254   : > { %v2200_v29 = vadd.f32 %v2199_v42, %v2198_v61 }
 0x25f   : > { %v2616_v43 = vpop.f32.mrb[12].mxu1 }
 0x260   : > { %v2039_v41 = vadd.f32 %v2616_v43, %v4338_v56  ;;  %v2030_v11 = vpop.f32.mrb[13].mxu1 }
 0x261   : > { %v2031_v28 = vadd.f32 %v4338_v56, %v2030_v11  ;;  %v2617_v19 = vpop.f32.mrb[14].mxu1 }
 0x262   : > { %2249 = vst.msk [vmem:[%s4343_s14 + $0xf0] sm:$0xff] %vm1557_vm2, %v2039_v41  ;;  %v2042_v54 = vadd.f32 %v2617_v19, %v4338_v56  ;;  %v2033_v35 = vpop.f32.mrb[15].mxu1  ;;  %v2144_v46 = vmul.f32 %v2039_v41, %v2039_v41  ;;  %v2104_v15 = vsel %vm1557_vm2, %v2039_v41, 0.0 }
 0x263   : > { %v2100_v12 = vsel %vm1557_vm2, %v2031_v28, 0.0  ;;  %v2142_v31 = vmul.f32 %v2031_v28, %v2031_v28  ;;  %2247 = vst.msk [vmem:[%s4343_s14 + $0xe0] sm:$0xff] %vm1557_vm2, %v2031_v28  ;;  %v2034_v23 = vadd.f32 %v4338_v56, %v2033_v35 }
 0x264   : > { %v2101_v7 = vadd.f32 %v2100_v12, %v2099_v10  ;;  %2250 = vst.msk [vmem:[%s4343_s14 + $0xf8] sm:$0xff] %vm1557_vm2, %v2042_v54  ;;  %v2145_v38 = vmul.f32 %v2042_v54, %v2042_v54  ;;  %v2205_v32 = vsel %vm1557_vm2, %v2144_v46, 0.0  ;;  %v2106_v40 = vsel %vm1557_vm2, %v2042_v54, 0.0 }
 0x265   : > { %v2201_v36 = vsel %vm1557_vm2, %v2142_v31, 0.0  ;;  %v2102_v2 = vsel %vm1557_vm2, %v2034_v23, 0.0  ;;  %v2143_v33 = vmul.f32 %v2034_v23, %v2034_v23  ;;  %2248 = vst.msk [vmem:[%s4343_s14 + $0xe8] sm:$0xff] %vm1557_vm2, %v2034_v23 }
 0x266   : > { %v2202_v26 = vadd.f32 %v2201_v36, %v2200_v29  ;;  %v2103_v5 = vadd.f32 %v2102_v2, %v2101_v7  ;;  %v2207_v62 = vsel %vm1557_vm2, %v2145_v38, 0.0 }
 0x267   : > { %v2203_v4 = vsel %vm1557_vm2, %v2143_v33, 0.0 }
 0x268   : > { %v2105_v16 = vadd.f32 %v2104_v15, %v2103_v5  ;;  %v2204_v56 = vadd.f32 %v2203_v4, %v2202_v26 }
 0x26a   : > { %v2107_v63 = vadd.f32 %v2106_v40, %v2105_v16  ;;  %v2206_v18 = vadd.f32 %v2205_v32, %v2204_v56 }
 0x26c   : > { %v2108_v34 = vrot.slane %v2107_v63, 4  ;;  %v2208_v1 = vadd.f32 %v2207_v62, %v2206_v18 }
 0x26e   : > { %v2109_v55 = vadd.f32 %v2108_v34, %v2107_v63  ;;  %v2209_v14 = vrot.slane %v2208_v1, 4 }
 0x270   : > { %v2110_v47 = vrot.slane %v2109_v55, 2  ;;  %v2210_v8 = vadd.f32 %v2209_v14, %v2208_v1 }
 0x272   : > { %v2111_v25 = vadd.f32 %v2110_v47, %v2109_v55  ;;  %v2211_v30 = vrot.slane %v2210_v8, 2 }
 0x274   : > { %v2112_v59 = vrot.slane %v2111_v25, 1  ;;  %v2212_v57 = vadd.f32 %v2211_v30, %v2210_v8 }
 0x276   : > { %v2213_v0 = vrot.slane %v2212_v57, 1  ;;  %v2113_v60 = vadd.f32 %v2112_v59, %v2111_v25 }
 0x278   : > { %v2214_v39 = vadd.f32 %v2213_v0, %v2212_v57 }
 0x27a   : > { %v2216_v24 = vsel %vm2215_vm10, %v2113_v60, %v2214_v39 }
 0x27b   : > { %2218 = vst.msk [vmem:[%s208_s20] sm:$0x3] %vm2217_vm11, %v2216_v24 }
 0x27c PF: > { %s15_s15 = sadd.s32 1, %s3304_s15  }
 0x27d   : > { %p12_p4 = scmp.ge.s32.totalorder %s15_s15, 4  }
 0x27f   :  { %14 = sbr.rel (!%p12_p4) target bundleno = 1 (0x1), region = 76 }

</bundles_post_ra>
